<compile_context>
chip_gen: v7x
topology: tpu7x:2x2x1
jax: 0.10.0
libtpu: 0.0.40
codegen_flags: <defaults>
</compile_context>

<pallas_src>
import functools

import numpy as np
import jax
import jax.numpy as jnp
from jax.experimental import pallas as pl
from jax.experimental.pallas import tpu as pltpu

BN_EPS = 1e-5
LANE = 128
_VMEM_LIMIT_BYTES = 32 * 1024 * 1024     # safe on v5e/v6e (128 MiB) and v7x (64 MiB)
_TILE_BUDGET_BYTES = 12 * 1024 * 1024    # per-tile working-set budget (w/ headroom)


def _round_up(x, m):
    return ((x + m - 1) // m) * m


def _choose_tile_rows(total_rows, row_bytes, budget_bytes=_TILE_BUDGET_BYTES,
                      max_tile=1024):
    """Largest multiple-of-16 row tile whose double-buffered working set fits
    the VMEM budget, capped at 1024 rows (HBM-roofline saturating)."""
    tile = budget_bytes // max(2 * row_bytes, 1)
    tile = max(16, min(max_tile, tile))
    tile = (tile // 16) * 16
    tile = min(tile, _round_up(total_rows, 16))
    return tile


def _elu(z):
    # ELU(alpha=1); exp argument clamped so the discarded branch never overflows.
    return jnp.where(z > 0, z, jnp.exp(jnp.minimum(z, 0.0)) - 1.0)


def _pad_cols(a, width, value=0.0):
    return jnp.pad(a, [(0, 0)] * (a.ndim - 1) + [(0, width - a.shape[-1])],
                   constant_values=value)


# ----------------------------- Pallas kernels ------------------------------

def _block_call_a_kernel(x_ref, w_ref, b_ref, g_ref, beta_ref,
                         skip_ref, act_ref, sum_ref, sq_ref,
                         *, tile_rows, rows_valid):
    """Fused [skip_conv | latent_conv1] GEMM; two-pass BatchNorm + ELU on the
    latent_conv1 half.  grid = (2 passes, n_row_tiles)."""
    p = pl.program_id(0)
    t = pl.program_id(1)
    row0 = t * tile_rows
    rid = jax.lax.broadcasted_iota(jnp.int32, (tile_rows, 1), 0) + row0
    valid = rid < rows_valid

    @pl.when(p == 0)
    def _pass0():
        @pl.when(t == 0)
        def _init():
            sum_ref[...] = jnp.zeros_like(sum_ref)
            sq_ref[...] = jnp.zeros_like(sq_ref)

        y1 = (jnp.dot(x_ref[...], w_ref[:, LANE:],
                      preferred_element_type=jnp.float32) + b_ref[:, LANE:])
        y1 = jnp.where(valid, y1, 0.0)
        sum_ref[...] += jnp.sum(y1, axis=0, keepdims=True)
        sq_ref[...] += jnp.sum(y1 * y1, axis=0, keepdims=True)

    @pl.when(p == 1)
    def _pass1():
        y = (jnp.dot(x_ref[...], w_ref[...],
                     preferred_element_type=jnp.float32) + b_ref[...])
        skip_ref[...] = y[:, :LANE]                      # raw skip-conv output
        inv_n = 1.0 / rows_valid
        mean = sum_ref[...] * inv_n
        var = jnp.maximum(sq_ref[...] * inv_n - mean * mean, 0.0)
        z = ((y[:, LANE:] - mean) * jax.lax.rsqrt(var + BN_EPS)
             * g_ref[...] + beta_ref[...])
        act_ref[...] = _elu(z).astype(act_ref.dtype)


def _block_call_b_kernel(a_ref, w_ref, b_ref, skip_ref, m_ref, g_ref, beta_ref,
                         o_ref, sum_ref, sq_ref,
                         *, k, wpa, pad, guard, tile_rows, inv_n):
    """latent_conv2 (stride-1, same-pad) as k sublane-aligned row-shifted GEMMs
    on the dj-lane-packed activation, fused with residual add + two-pass BN
    (masked over valid rows) + ELU.  grid = (2 passes, n_row_tiles)."""
    p = pl.program_id(0)
    t = pl.program_id(1)
    base = t * tile_rows + guard

    acc = skip_ref[...] + b_ref[...]
    for di in range(k):
        off = pl.multiple_of(base + (di - pad) * wpa, 8)   # aligned row shift
        a = a_ref[pl.ds(off, tile_rows), :]
        acc = acc + jnp.dot(a, w_ref[di], preferred_element_type=jnp.float32)

    @pl.when(p == 0)
    def _pass0():
        @pl.when(t == 0)
        def _init():
            sum_ref[...] = jnp.zeros_like(sum_ref)
            sq_ref[...] = jnp.zeros_like(sq_ref)

        am = jnp.where(m_ref[...] > 0, acc, 0.0)           # mask halo rows
        sum_ref[...] += jnp.sum(am, axis=0, keepdims=True)
        sq_ref[...] += jnp.sum(am * am, axis=0, keepdims=True)

    @pl.when(p == 1)
    def _pass1():
        mean = sum_ref[...] * inv_n
        var = jnp.maximum(sq_ref[...] * inv_n - mean * mean, 0.0)
        z = (acc - mean) * jax.lax.rsqrt(var + BN_EPS) * g_ref[...] + beta_ref[...]
        o_ref[...] = _elu(z)


def _gemm_bias_kernel(x_ref, w_ref, b_ref, o_ref):
    o_ref[...] = (jnp.dot(x_ref[...], w_ref[...],
                          preferred_element_type=jnp.float32) + b_ref[...])


# ------------------------------- conv glue ---------------------------------

def _im2col(x, k, stride, pad):
    # x: (N, H, W, C) -> patches (N*Ho*Wo, k*k*C), patch order (kh, kw, C).
    N, H, W, C = x.shape
    xp = jnp.pad(x, ((0, 0), (pad, pad), (pad, pad), (0, 0)))
    Ho = (H + 2 * pad - k) // stride + 1
    Wo = (W + 2 * pad - k) // stride + 1
    cols = []
    for i in range(k):
        for j in range(k):
            cols.append(xp[:, i:i + stride * (Ho - 1) + 1:stride,
                           j:j + stride * (Wo - 1) + 1:stride, :])
    patches = jnp.stack(cols, axis=3)               # (N, Ho, Wo, k*k, C)
    return patches.reshape(N * Ho * Wo, k * k * C), Ho, Wo


def _block_forward(x, bp, k):
    """One DownSamplingResidualBlock == 2 row-tiled pallas_calls."""
    pad = k // 2
    N, H, W, cin = x.shape
    cs = bp["skip_w"].shape[-1]          # out_channels
    cm = bp["l1_w"].shape[-1]            # out_channels // 2
    kdim = k * k * cin

    # --------- call A: [skip_conv | latent_conv1] + two-pass BN + ELU --------
    P, Ho, Wo = _im2col(x, k, 2, pad)
    rows_a = N * Ho * Wo
    tile_a = _choose_tile_rows(rows_a, row_bytes=2 * kdim + 6 * LANE)
    rows_a_pad = _round_up(rows_a, tile_a)
    nt_a = rows_a_pad // tile_a
    P = jnp.pad(P, ((0, rows_a_pad - rows_a), (0, 0))).astype(jnp.bfloat16)

    w_cat = jnp.concatenate(
        [_pad_cols(bp["skip_w"].reshape(kdim, cs), LANE),
         _pad_cols(bp["l1_w"].reshape(kdim, cm), LANE)],
        axis=-1).astype(jnp.bfloat16)
    b_cat = jnp.concatenate(
        [_pad_cols(bp["skip_b"].reshape(1, cs), LANE),
         _pad_cols(bp["l1_b"].reshape(1, cm), LANE)], axis=-1)
    g1 = _pad_cols(bp["bn1_g"].reshape(1, cm), LANE, value=1.0)
    beta1 = _pad_cols(bp["bn1_b"].reshape(1, cm), LANE)

    flops_a = 2 * 2 * rows_a_pad * kdim * 2 * LANE
    bytes_a = 2 * P.size * 2 + rows_a_pad * LANE * 6 + w_cat.size * 2
    skip_p, act_p = pl.pallas_call(
        functools.partial(_block_call_a_kernel, tile_rows=tile_a,
                          rows_valid=rows_a),
        out_shape=(jax.ShapeDtypeStruct((rows_a_pad, LANE), jnp.float32),
                   jax.ShapeDtypeStruct((rows_a_pad, LANE), jnp.bfloat16)),
        grid_spec=pltpu.PrefetchScalarGridSpec(
            num_scalar_prefetch=0, grid=(2, nt_a),
            in_specs=[pl.BlockSpec((tile_a, kdim), lambda p, t: (t, 0)),
                      pl.BlockSpec((kdim, 2 * LANE), lambda p, t: (0, 0)),
                      pl.BlockSpec((1, 2 * LANE), lambda p, t: (0, 0)),
                      pl.BlockSpec((1, LANE), lambda p, t: (0, 0)),
                      pl.BlockSpec((1, LANE), lambda p, t: (0, 0))],
            out_specs=[pl.BlockSpec((tile_a, LANE), lambda p, t: (t, 0)),
                       pl.BlockSpec((tile_a, LANE), lambda p, t: (t, 0))],
            scratch_shapes=[pltpu.VMEM((1, LANE), jnp.float32),
                            pltpu.VMEM((1, LANE), jnp.float32)]),
        compiler_params=pltpu.CompilerParams(
            dimension_semantics=("arbitrary", "arbitrary"),
            vmem_limit_bytes=_VMEM_LIMIT_BYTES),
        cost_estimate=pl.CostEstimate(flops=int(flops_a),
                                      transcendentals=int(rows_a_pad * LANE),
                                      bytes_accessed=int(bytes_a)),
    )(P, w_cat, b_cat, g1, beta1)

    # --------- call B: latent_conv2 + residual + two-pass BN + ELU ----------
    act1 = act_p[:rows_a, :cm]                          # bf16, real channels
    skip = skip_p[:rows_a, :]                           # f32, lane-padded cs

    hp = Ho + 2 * pad
    wpa = _round_up(Wo + 2 * pad, 8)                    # 8-aligned padded width
    guard = pad * wpa                                   # multiple of 8
    rp = N * hp * wpa

    # dj (width) taps packed into lanes; di (row) shifts stay for the kernel.
    a_wide = jnp.zeros((N, hp, wpa + 2 * pad, cm), jnp.bfloat16)
    a_wide = a_wide.at[:, pad:pad + Ho, 2 * pad:2 * pad + Wo, :].set(
        act1.reshape(N, Ho, Wo, cm))
    a_pack = jnp.concatenate([a_wide[:, :, j:j + wpa, :] for j in range(k)],
                             axis=-1).reshape(rp, k * cm)

    tile_b = _choose_tile_rows(rp, row_bytes=8 * LANE + 4 + 2 * k * cm)
    rp_pad = _round_up(rp, tile_b)
    nt_b = rp_pad // tile_b
    total_ext = guard + rp_pad + guard
    a_ext = jnp.zeros((total_ext, k * cm), jnp.bfloat16)
    a_ext = a_ext.at[guard:guard + rp, :].set(a_pack)

    skip_grid = jnp.zeros((N, hp, wpa, LANE), jnp.float32)
    skip_grid = skip_grid.at[:, pad:pad + Ho, pad:pad + Wo, :].set(
        skip.reshape(N, Ho, Wo, LANE))
    skip_flat = jnp.pad(skip_grid.reshape(rp, LANE), ((0, rp_pad - rp), (0, 0)))

    mask_grid = jnp.zeros((N, hp, wpa, 1), jnp.float32)
    mask_grid = mask_grid.at[:, pad:pad + Ho, pad:pad + Wo, :].set(1.0)
    mask_flat = jnp.pad(mask_grid.reshape(rp, 1), ((0, rp_pad - rp), (0, 0)))

    w2 = _pad_cols(bp["l2_w"].reshape(k, k * cm, cs), LANE).astype(jnp.bfloat16)
    b2 = _pad_cols(bp["l2_b"].reshape(1, cs), LANE)
    g2 = _pad_cols(bp["bn2_g"].reshape(1, cs), LANE, value=1.0)
    beta2 = _pad_cols(bp["bn2_b"].reshape(1, cs), LANE)

    flops_b = 2 * 2 * rp_pad * k * (k * cm) * LANE
    bytes_b = 2 * (a_ext.size * 2 + skip_flat.size * 4) + rp_pad * LANE * 4
    out_b = pl.pallas_call(
        functools.partial(_block_call_b_kernel, k=k, wpa=wpa, pad=pad,
                          guard=guard, tile_rows=tile_b,
                          inv_n=1.0 / (N * Ho * Wo)),
        out_shape=jax.ShapeDtypeStruct((rp_pad, LANE), jnp.float32),
        grid_spec=pltpu.PrefetchScalarGridSpec(
            num_scalar_prefetch=0, grid=(2, nt_b),
            in_specs=[pl.BlockSpec((total_ext, k * cm), lambda p, t: (0, 0)),
                      pl.BlockSpec((k, k * cm, LANE), lambda p, t: (0, 0, 0)),
                      pl.BlockSpec((1, LANE), lambda p, t: (0, 0)),
                      pl.BlockSpec((tile_b, LANE), lambda p, t: (t, 0)),
                      pl.BlockSpec((tile_b, 1), lambda p, t: (t, 0)),
                      pl.BlockSpec((1, LANE), lambda p, t: (0, 0)),
                      pl.BlockSpec((1, LANE), lambda p, t: (0, 0))],
            out_specs=pl.BlockSpec((tile_b, LANE), lambda p, t: (t, 0)),
            scratch_shapes=[pltpu.VMEM((1, LANE), jnp.float32),
                            pltpu.VMEM((1, LANE), jnp.float32)]),
        compiler_params=pltpu.CompilerParams(
            dimension_semantics=("arbitrary", "arbitrary"),
            vmem_limit_bytes=_VMEM_LIMIT_BYTES),
        cost_estimate=pl.CostEstimate(flops=int(flops_b),
                                      transcendentals=int(rp_pad * LANE),
                                      bytes_accessed=int(bytes_b)),
    )(a_ext, w2, b2, skip_flat, mask_flat, g2, beta2)

    # Drop padded rows / halo / padded channels -> (N, Ho, Wo, cs) NHWC output.
    out = out_b[:rp].reshape(N, hp, wpa, LANE)[:, pad:pad + Ho, pad:pad + Wo, :cs]
    return out


def _final_gemm(x_flat, w, b, out_cols):
    N, K = x_flat.shape
    outp = _round_up(out_cols, LANE)
    w_p = _pad_cols(w, outp).astype(jnp.bfloat16)
    b_p = _pad_cols(b.reshape(1, -1), outp)
    out = pl.pallas_call(
        _gemm_bias_kernel,
        out_shape=jax.ShapeDtypeStruct((N, outp), jnp.float32),
        in_specs=[pl.BlockSpec((N, K), lambda *_: (0, 0)),
                  pl.BlockSpec((K, outp), lambda *_: (0, 0)),
                  pl.BlockSpec((1, outp), lambda *_: (0, 0))],
        out_specs=pl.BlockSpec((N, outp), lambda *_: (0, 0)),
        compiler_params=pltpu.CompilerParams(
            vmem_limit_bytes=_VMEM_LIMIT_BYTES),
    )(x_flat.astype(jnp.bfloat16), w_p, b_p)
    return out[:, :out_cols]


# --------------------------- VAE forward (Pallas) ---------------------------

def vae_forward_pallas(x_nchw, params, *, kernel_size, final_conv_image_size,
                       latent_size):
    """VAE.forward(x) == Encoder.forward(x) -> (latent_mean, latent_log_std)."""
    x = jnp.transpose(x_nchw, (0, 2, 3, 1)).astype(jnp.float32)   # NCHW -> NHWC
    for bp in params["blocks"]:
        x = _block_forward(x, bp, kernel_size)

    N, H, W, C = x.shape
    assert H == final_conv_image_size and W == final_conv_image_size
    out = _final_gemm(x.reshape(N, H * W * C),
                      params["out_w"].reshape(H * W * C, 2 * latent_size),
                      params["out_b"], 2 * latent_size)
    return out[:, :latent_size], out[:, latent_size:]


# ---------------------------- parameter setup ------------------------------

def _conv_init(key, kh, kw, cin, cout):
    k1, k2 = jax.random.split(key)
    fan_in = kh * kw * cin
    w = jax.random.normal(k1, (kh, kw, cin, cout), jnp.float32) / np.sqrt(fan_in)
    b = 0.05 * jax.random.normal(k2, (cout,), jnp.float32)
    return w, b


def _bn_init(key, c):
    k1, k2 = jax.random.split(key)
    gamma = 1.0 + 0.1 * jax.random.normal(k1, (c,), jnp.float32)
    beta = 0.1 * jax.random.normal(k2, (c,), jnp.float32)
    return gamma, beta


def build_vae_encoder_params(key, input_size, base_num_features, input_channels,
                             kernel_size, final_conv_image_size, latent_size):
    """Mirrors Encoder.__init__'s block construction loop (arrays only)."""
    size = input_size[0]
    assert input_size[0] == input_size[1]
    num_channels = input_channels
    blocks = []
    while size > final_conv_image_size:
        # TODO(synk): the odd-size adapter Conv2d branch is never exercised at
        # these power-of-two shapes; only DownSamplingResidualBlocks are built.
        assert size % 2 == 0
        out_channels = (num_channels * 2 if num_channels > input_channels
                        else base_num_features)
        key, k_skip, k_l1, k_l2, k_bn1, k_bn2 = jax.random.split(key, 6)
        skip_w, skip_b = _conv_init(k_skip, kernel_size, kernel_size,
                                    num_channels, out_channels)
        l1_w, l1_b = _conv_init(k_l1, kernel_size, kernel_size,
                                num_channels, out_channels // 2)
        l2_w, l2_b = _conv_init(k_l2, kernel_size, kernel_size,
                                out_channels // 2, out_channels)
        bn1_g, bn1_b = _bn_init(k_bn1, out_channels // 2)
        bn2_g, bn2_b = _bn_init(k_bn2, out_channels)
        blocks.append(dict(skip_w=skip_w, skip_b=skip_b, l1_w=l1_w, l1_b=l1_b,
                           l2_w=l2_w, l2_b=l2_b, bn1_g=bn1_g, bn1_b=bn1_b,
                           bn2_g=bn2_g, bn2_b=bn2_b))
        size //= 2
        num_channels = out_channels
    key, k_out = jax.random.split(key)
    out_w, out_b = _conv_init(k_out, final_conv_image_size,
                              final_conv_image_size, num_channels,
                              2 * latent_size)
    return dict(blocks=blocks, out_w=out_w, out_b=out_b)


# ----------------------- pure-JAX reference (checking) ----------------------

def _conv_ref(x, w, b, stride, pad, mxu_dtype):
    y = jax.lax.conv_general_dilated(
        x.astype(mxu_dtype), w.astype(mxu_dtype), (stride, stride),
        [(pad, pad), (pad, pad)],
        dimension_numbers=("NHWC", "HWIO", "NHWC"),
        preferred_element_type=jnp.float32)
    return y + b


def _bn_ref(x, g, beta):
    mean = x.mean(axis=(0, 1, 2), keepdims=True)
    var = ((x - mean) ** 2).mean(axis=(0, 1, 2), keepdims=True)
    return (x - mean) * jax.lax.rsqrt(var + BN_EPS) * g + beta


def vae_forward_ref(x_nchw, params, *, kernel_size, latent_size, mxu_dtype):
    pad = kernel_size // 2
    x = jnp.transpose(x_nchw, (0, 2, 3, 1)).astype(jnp.float32)
    for bp in params["blocks"]:
        skip = _conv_ref(x, bp["skip_w"], bp["skip_b"], 2, pad, mxu_dtype)
        y = _elu(_bn_ref(_conv_ref(x, bp["l1_w"], bp["l1_b"], 2, pad, mxu_dtype),
                         bp["bn1_g"], bp["bn1_b"]))
        y = _conv_ref(y, bp["l2_w"], bp["l2_b"], 1, pad, mxu_dtype)
        x = _elu(_bn_ref(skip + y, bp["bn2_g"], bp["bn2_b"]))
    out = _conv_ref(x, params["out_w"], params["out_b"], 1, 0, mxu_dtype)
    out = out.reshape(out.shape[0], -1)
    return out[:, :latent_size], out[:, latent_size:]


# ---------------------------------- main ------------------------------------

if __name__ == "__main__":
    input_size = (16, 16)
    kernel_size = 3
    input_channels = 4
    base_num_features = 8
    final_conv_image_size = 4
    latent_size = 8
    batch = 2

    key = jax.random.PRNGKey(0)
    key, k_params, k_x = jax.random.split(key, 3)
    params = build_vae_encoder_params(
        k_params, input_size, base_num_features, input_channels,
        kernel_size, final_conv_image_size, latent_size)
    x = jax.random.normal(k_x, (batch, input_channels, *input_size), jnp.float32)

    fwd = jax.jit(functools.partial(
        vae_forward_pallas, kernel_size=kernel_size,
        final_conv_image_size=final_conv_image_size, latent_size=latent_size))
    mean, log_std = fwd(x, params)
    mean = jax.block_until_ready(mean)
    log_std = jax.block_until_ready(log_std)
    assert mean.shape == (batch, latent_size)
    assert log_std.shape == (batch, latent_size)

    # Check 1 (tight): reference with the same bf16 MXU operand casts.
    m_bf, s_bf = vae_forward_ref(x, params, kernel_size=kernel_size,
                                 latent_size=latent_size, mxu_dtype=jnp.bfloat16)
    # Check 2 (loose): pure-f32 reference bounds the intentional bf16 tradeoff.
    m_f, s_f = vae_forward_ref(x, params, kernel_size=kernel_size,
                               latent_size=latent_size, mxu_dtype=jnp.float32)
    ok = (np.allclose(np.asarray(mean), np.asarray(m_bf), rtol=1e-2, atol=1e-2)
          and np.allclose(np.asarray(log_std), np.asarray(s_bf), rtol=1e-2, atol=1e-2)
          and np.allclose(np.asarray(mean), np.asarray(m_f), rtol=1e-1, atol=1e-1)
          and np.allclose(np.asarray(log_std), np.asarray(s_f), rtol=1e-1, atol=1e-1))
    if not ok:
        raise SystemExit("mismatch vs reference")
    print("KERNEL_OK")
</pallas_src>

<mosaic_0001>
module attributes {stable_mosaic.version = 11 : i64} {
  func.func @_block_call_a_kernel(%arg0: i32, %arg1: i32, %arg2: memref<128x36xbf16, #tpu.memory_space<vmem>>, %arg3: memref<36x256xbf16, #tpu.memory_space<vmem>>, %arg4: memref<1x256xf32, #tpu.memory_space<vmem>>, %arg5: memref<1x128xf32, #tpu.memory_space<vmem>>, %arg6: memref<1x128xf32, #tpu.memory_space<vmem>>, %arg7: memref<128x128xf32, #tpu.memory_space<vmem>>, %arg8: memref<128x128xbf16, #tpu.memory_space<vmem>>, %arg9: memref<1x128xf32, #tpu.memory_space<vmem>>, %arg10: memref<1x128xf32, #tpu.memory_space<vmem>>) attributes {dimension_semantics = [#tpu.dimension_semantics<arbitrary>, #tpu.dimension_semantics<arbitrary>], iteration_bounds = array<i64: 2, 1>, scalar_prefetch = 0 : i64, scratch_operands = 2 : i64, tpu.core_type = #tpu.core_type<tc>, window_params = [{transform_indices = @transform_0, window_bounds = array<i64: 128, 36>}, {pipeline_mode = #tpu.pipeline_mode<synchronous>, transform_indices = @transform_1, window_bounds = array<i64: 36, 256>}, {pipeline_mode = #tpu.pipeline_mode<synchronous>, transform_indices = @transform_2, window_bounds = array<i64: 1, 256>}, {pipeline_mode = #tpu.pipeline_mode<synchronous>, transform_indices = @transform_3, window_bounds = array<i64: 1, 128>}, {pipeline_mode = #tpu.pipeline_mode<synchronous>, transform_indices = @transform_4, window_bounds = array<i64: 1, 128>}, {transform_indices = @transform_5, window_bounds = array<i64: 128, 128>}, {transform_indices = @transform_6, window_bounds = array<i64: 128, 128>}]} {
    %c128_i32 = arith.constant 128 : i32
    %0 = arith.muli %arg1, %c128_i32 : i32
    %1 = tpu.iota {dimensions = array<i32: 0>} : vector<128x1xi32>
    %2 = vector.broadcast %0 : i32 to vector<128x1xi32>
    %3 = arith.addi %1, %2 : vector<128x1xi32>
    %c128_i32_0 = arith.constant 128 : i32
    %4 = vector.broadcast %c128_i32_0 : i32 to vector<128x1xi32>
    %5 = arith.cmpi slt, %3, %4 : vector<128x1xi32>
    %c0_i32 = arith.constant 0 : i32
    %6 = arith.cmpi eq, %arg0, %c0_i32 : i32
    %7 = arith.extui %6 : i1 to i32
    %c0_i32_1 = arith.constant 0 : i32
    %8 = arith.cmpi ne, %7, %c0_i32_1 : i32
    scf.if %8 {
      %c0_i32_3 = arith.constant 0 : i32
      %12 = arith.cmpi eq, %arg1, %c0_i32_3 : i32
      %13 = arith.extui %12 : i1 to i32
      %c0_i32_4 = arith.constant 0 : i32
      %14 = arith.cmpi ne, %13, %c0_i32_4 : i32
      scf.if %14 {
        %cst_20 = arith.constant 0.000000e+00 : f32
        %36 = vector.broadcast %cst_20 : f32 to vector<1x128xf32>
        %c0_21 = arith.constant 0 : index
        %c0_22 = arith.constant 0 : index
        %37 = vector.load %arg9[%c0_21, %c0_22] : memref<1x128xf32, #tpu.memory_space<vmem>>, vector<1x128xf32>
        tpu.vector_store %arg9[%c0_21, %c0_22], %36 {strides = array<i32>} : memref<1x128xf32, #tpu.memory_space<vmem>>, vector<1x128xf32>,
        %cst_23 = arith.constant 0.000000e+00 : f32
        %38 = vector.broadcast %cst_23 : f32 to vector<1x128xf32>
        %c0_24 = arith.constant 0 : index
        %c0_25 = arith.constant 0 : index
        %39 = vector.load %arg10[%c0_24, %c0_25] : memref<1x128xf32, #tpu.memory_space<vmem>>, vector<1x128xf32>
        tpu.vector_store %arg10[%c0_24, %c0_25], %38 {strides = array<i32>} : memref<1x128xf32, #tpu.memory_space<vmem>>, vector<1x128xf32>,
      } else {
      }
      %c0 = arith.constant 0 : index
      %c0_5 = arith.constant 0 : index
      %15 = vector.load %arg2[%c0, %c0_5] : memref<128x36xbf16, #tpu.memory_space<vmem>>, vector<128x36xbf16>
      %c0_6 = arith.constant 0 : index
      %c128 = arith.constant 128 : index
      %16 = vector.load %arg3[%c0_6, %c128] : memref<36x256xbf16, #tpu.memory_space<vmem>>, vector<36x128xbf16>
      %cst = arith.constant dense<0.000000e+00> : vector<128x128xf32>
      %17 = tpu.matmul %15, %16, %cst {dimension_numbers = #tpu.dot_dimension_numbers<[1], [0], [0], [1], [0, 0, 1, 1], [], []>} : vector<128x36xbf16>, vector<36x128xbf16>, vector<128x128xf32> -> vector<128x128xf32>
      %c0_7 = arith.constant 0 : index
      %c128_8 = arith.constant 128 : index
      %18 = vector.load %arg4[%c0_7, %c128_8] : memref<1x256xf32, #tpu.memory_space<vmem>>, vector<1x128xf32>
      %19 = vector.broadcast %18 : vector<1x128xf32> to vector<128x128xf32>
      %20 = arith.addf %17, %19 : vector<128x128xf32>
      %cst_9 = arith.constant 0.000000e+00 : f32
      %21 = vector.shape_cast %5 : vector<128x1xi1> to vector<128x1xi1>
      %22 = vector.broadcast %21 : vector<128x1xi1> to vector<128x128xi1>
      %23 = vector.broadcast %cst_9 : f32 to vector<128x128xf32>
      %24 = arith.select %22, %20, %23 : vector<128x128xi1>, vector<128x128xf32>
      %c0_10 = arith.constant 0 : index
      %c0_11 = arith.constant 0 : index
      %25 = vector.load %arg9[%c0_10, %c0_11] : memref<1x128xf32, #tpu.memory_space<vmem>>, vector<1x128xf32>
      %cst_12 = arith.constant dense<0.000000e+00> : vector<128xf32>
      %26 = vector.multi_reduction <add>, %24, %cst_12 [0] : vector<128x128xf32> to vector<128xf32>
      %27 = vector.shape_cast %26 : vector<128xf32> to vector<1x128xf32>
      %28 = arith.addf %25, %27 : vector<1x128xf32>
      %c0_13 = arith.constant 0 : index
      %c0_14 = arith.constant 0 : index
      %29 = vector.load %arg9[%c0_13, %c0_14] : memref<1x128xf32, #tpu.memory_space<vmem>>, vector<1x128xf32>
      tpu.vector_store %arg9[%c0_13, %c0_14], %28 {strides = array<i32>} : memref<1x128xf32, #tpu.memory_space<vmem>>, vector<1x128xf32>,
      %c0_15 = arith.constant 0 : index
      %c0_16 = arith.constant 0 : index
      %30 = vector.load %arg10[%c0_15, %c0_16] : memref<1x128xf32, #tpu.memory_space<vmem>>, vector<1x128xf32>
      %31 = arith.mulf %24, %24 : vector<128x128xf32>
      %cst_17 = arith.constant dense<0.000000e+00> : vector<128xf32>
      %32 = vector.multi_reduction <add>, %31, %cst_17 [0] : vector<128x128xf32> to vector<128xf32>
      %33 = vector.shape_cast %32 : vector<128xf32> to vector<1x128xf32>
      %34 = arith.addf %30, %33 : vector<1x128xf32>
      %c0_18 = arith.constant 0 : index
      %c0_19 = arith.constant 0 : index
      %35 = vector.load %arg10[%c0_18, %c0_19] : memref<1x128xf32, #tpu.memory_space<vmem>>, vector<1x128xf32>
      tpu.vector_store %arg10[%c0_18, %c0_19], %34 {strides = array<i32>} : memref<1x128xf32, #tpu.memory_space<vmem>>, vector<1x128xf32>,
    } else {
    }
    %c1_i32 = arith.constant 1 : i32
    %9 = arith.cmpi eq, %arg0, %c1_i32 : i32
    %10 = arith.extui %9 : i1 to i32
    %c0_i32_2 = arith.constant 0 : i32
    %11 = arith.cmpi ne, %10, %c0_i32_2 : i32
    scf.if %11 {
      %c0 = arith.constant 0 : index
      %c0_3 = arith.constant 0 : index
      %12 = vector.load %arg2[%c0, %c0_3] : memref<128x36xbf16, #tpu.memory_space<vmem>>, vector<128x36xbf16>
      %c0_4 = arith.constant 0 : index
      %c0_5 = arith.constant 0 : index
      %13 = vector.load %arg3[%c0_4, %c0_5] : memref<36x256xbf16, #tpu.memory_space<vmem>>, vector<36x256xbf16>
      %cst = arith.constant dense<0.000000e+00> : vector<128x256xf32>
      %14 = tpu.matmul %12, %13, %cst {dimension_numbers = #tpu.dot_dimension_numbers<[1], [0], [0], [1], [0, 0, 1, 1], [], []>} : vector<128x36xbf16>, vector<36x256xbf16>, vector<128x256xf32> -> vector<128x256xf32>
      %c0_6 = arith.constant 0 : index
      %c0_7 = arith.constant 0 : index
      %15 = vector.load %arg4[%c0_6, %c0_7] : memref<1x256xf32, #tpu.memory_space<vmem>>, vector<1x256xf32>
      %16 = vector.broadcast %15 : vector<1x256xf32> to vector<128x256xf32>
      %17 = arith.addf %14, %16 : vector<128x256xf32>
      %18 = vector.extract_strided_slice %17 {offsets = [0, 0], sizes = [128, 128], strides = [1, 1]} : vector<128x256xf32> to vector<128x128xf32>
      %c0_8 = arith.constant 0 : index
      %c0_9 = arith.constant 0 : index
      %19 = vector.load %arg7[%c0_8, %c0_9] : memref<128x128xf32, #tpu.memory_space<vmem>>, vector<128x128xf32>
      tpu.vector_store %arg7[%c0_8, %c0_9], %18 {strides = array<i32>} : memref<128x128xf32, #tpu.memory_space<vmem>>, vector<128x128xf32>,
      %c0_10 = arith.constant 0 : index
      %c0_11 = arith.constant 0 : index
      %20 = vector.load %arg9[%c0_10, %c0_11] : memref<1x128xf32, #tpu.memory_space<vmem>>, vector<1x128xf32>
      %cst_12 = arith.constant 7.812500e-03 : f32
      %21 = vector.broadcast %cst_12 : f32 to vector<1x128xf32>
      %22 = arith.mulf %20, %21 : vector<1x128xf32>
      %c0_13 = arith.constant 0 : index
      %c0_14 = arith.constant 0 : index
      %23 = vector.load %arg10[%c0_13, %c0_14] : memref<1x128xf32, #tpu.memory_space<vmem>>, vector<1x128xf32>
      %cst_15 = arith.constant 7.812500e-03 : f32
      %24 = vector.broadcast %cst_15 : f32 to vector<1x128xf32>
      %25 = arith.mulf %23, %24 : vector<1x128xf32>
      %26 = arith.mulf %22, %22 : vector<1x128xf32>
      %27 = arith.subf %25, %26 : vector<1x128xf32>
      %cst_16 = arith.constant 0.000000e+00 : f32
      %28 = vector.broadcast %cst_16 : f32 to vector<1x128xf32>
      %29 = arith.maximumf %27, %28 : vector<1x128xf32>
      %30 = vector.extract_strided_slice %17 {offsets = [0, 128], sizes = [128, 128], strides = [1, 1]} : vector<128x256xf32> to vector<128x128xf32>
      %31 = vector.broadcast %22 : vector<1x128xf32> to vector<128x128xf32>
      %32 = arith.subf %30, %31 : vector<128x128xf32>
      %cst_17 = arith.constant 9.99999974E-6 : f32
      %33 = vector.broadcast %cst_17 : f32 to vector<1x128xf32>
      %34 = arith.addf %29, %33 : vector<1x128xf32>
      %35 = math.rsqrt %34 : vector<1x128xf32>
      %36 = vector.broadcast %35 : vector<1x128xf32> to vector<128x128xf32>
      %37 = arith.mulf %32, %36 : vector<128x128xf32>
      %c0_18 = arith.constant 0 : index
      %c0_19 = arith.constant 0 : index
      %38 = vector.load %arg5[%c0_18, %c0_19] : memref<1x128xf32, #tpu.memory_space<vmem>>, vector<1x128xf32>
      %39 = vector.broadcast %38 : vector<1x128xf32> to vector<128x128xf32>
      %40 = arith.mulf %37, %39 : vector<128x128xf32>
      %c0_20 = arith.constant 0 : index
      %c0_21 = arith.constant 0 : index
      %41 = vector.load %arg6[%c0_20, %c0_21] : memref<1x128xf32, #tpu.memory_space<vmem>>, vector<1x128xf32>
      %42 = vector.broadcast %41 : vector<1x128xf32> to vector<128x128xf32>
      %43 = arith.addf %40, %42 : vector<128x128xf32>
      %cst_22 = arith.constant 0.000000e+00 : f32
      %44 = vector.broadcast %cst_22 : f32 to vector<128x128xf32>
      %45 = arith.cmpf ogt, %43, %44 : vector<128x128xf32>
      %cst_23 = arith.constant 0.000000e+00 : f32
      %46 = vector.broadcast %cst_23 : f32 to vector<128x128xf32>
      %47 = arith.minimumf %43, %46 : vector<128x128xf32>
      %48 = math.exp %47 : vector<128x128xf32>
      %cst_24 = arith.constant 1.000000e+00 : f32
      %49 = vector.broadcast %cst_24 : f32 to vector<128x128xf32>
      %50 = arith.subf %48, %49 : vector<128x128xf32>
      %51 = arith.select %45, %43, %50 : vector<128x128xi1>, vector<128x128xf32>
      %52 = arith.truncf %51 : vector<128x128xf32> to vector<128x128xbf16>
      %c0_25 = arith.constant 0 : index
      %c0_26 = arith.constant 0 : index
      %53 = vector.load %arg8[%c0_25, %c0_26] : memref<128x128xbf16, #tpu.memory_space<vmem>>, vector<128x128xbf16>
      tpu.vector_store %arg8[%c0_25, %c0_26], %52 {strides = array<i32>} : memref<128x128xbf16, #tpu.memory_space<vmem>>, vector<128x128xbf16>,
    } else {
    }
    return
  }
  func.func @transform_0(%arg0: i32, %arg1: i32) -> (i32, i32) {
    %c0_i32 = arith.constant 0 : i32
    %c0_i32_0 = arith.constant 0 : i32
    return %arg1, %c0_i32 : i32, i32
  }
  func.func @transform_1(%arg0: i32, %arg1: i32) -> (i32, i32) {
    %c0_i32 = arith.constant 0 : i32
    %c0_i32_0 = arith.constant 0 : i32
    %c0_i32_1 = arith.constant 0 : i32
    return %c0_i32, %c0_i32_0 : i32, i32
  }
  func.func @transform_2(%arg0: i32, %arg1: i32) -> (i32, i32) {
    %c0_i32 = arith.constant 0 : i32
    %c0_i32_0 = arith.constant 0 : i32
    %c0_i32_1 = arith.constant 0 : i32
    return %c0_i32, %c0_i32_0 : i32, i32
  }
  func.func @transform_3(%arg0: i32, %arg1: i32) -> (i32, i32) {
    %c0_i32 = arith.constant 0 : i32
    %c0_i32_0 = arith.constant 0 : i32
    %c0_i32_1 = arith.constant 0 : i32
    return %c0_i32, %c0_i32_0 : i32, i32
  }
  func.func @transform_4(%arg0: i32, %arg1: i32) -> (i32, i32) {
    %c0_i32 = arith.constant 0 : i32
    %c0_i32_0 = arith.constant 0 : i32
    %c0_i32_1 = arith.constant 0 : i32
    return %c0_i32, %c0_i32_0 : i32, i32
  }
  func.func @transform_5(%arg0: i32, %arg1: i32) -> (i32, i32) {
    %c0_i32 = arith.constant 0 : i32
    %c0_i32_0 = arith.constant 0 : i32
    return %arg1, %c0_i32 : i32, i32
  }
  func.func @transform_6(%arg0: i32, %arg1: i32) -> (i32, i32) {
    %c0_i32 = arith.constant 0 : i32
    %c0_i32_0 = arith.constant 0 : i32
    return %arg1, %c0_i32 : i32, i32
  }
}

module attributes {stable_mosaic.version = 11 : i64} {
  func.func @_block_call_b_kernel(%arg0: i32, %arg1: i32, %arg2: memref<352x12xbf16, #tpu.memory_space<vmem>>, %arg3: memref<3x12x128xbf16, #tpu.memory_space<vmem>>, %arg4: memref<1x128xf32, #tpu.memory_space<vmem>>, %arg5: memref<320x128xf32, #tpu.memory_space<vmem>>, %arg6: memref<320x1xf32, #tpu.memory_space<vmem>>, %arg7: memref<1x128xf32, #tpu.memory_space<vmem>>, %arg8: memref<1x128xf32, #tpu.memory_space<vmem>>, %arg9: memref<320x128xf32, #tpu.memory_space<vmem>>, %arg10: memref<1x128xf32, #tpu.memory_space<vmem>>, %arg11: memref<1x128xf32, #tpu.memory_space<vmem>>) attributes {dimension_semantics = [#tpu.dimension_semantics<arbitrary>, #tpu.dimension_semantics<arbitrary>], iteration_bounds = array<i64: 2, 1>, scalar_prefetch = 0 : i64, scratch_operands = 2 : i64, tpu.core_type = #tpu.core_type<tc>, window_params = [{pipeline_mode = #tpu.pipeline_mode<synchronous>, transform_indices = @transform_0, window_bounds = array<i64: 352, 12>}, {pipeline_mode = #tpu.pipeline_mode<synchronous>, transform_indices = @transform_1, window_bounds = array<i64: 3, 12, 128>}, {pipeline_mode = #tpu.pipeline_mode<synchronous>, transform_indices = @transform_2, window_bounds = array<i64: 1, 128>}, {transform_indices = @transform_3, window_bounds = array<i64: 320, 128>}, {transform_indices = @transform_4, window_bounds = array<i64: 320, 1>}, {pipeline_mode = #tpu.pipeline_mode<synchronous>, transform_indices = @transform_5, window_bounds = array<i64: 1, 128>}, {pipeline_mode = #tpu.pipeline_mode<synchronous>, transform_indices = @transform_6, window_bounds = array<i64: 1, 128>}, {transform_indices = @transform_7, window_bounds = array<i64: 320, 128>}]} {
    %c320_i32 = arith.constant 320 : i32
    %0 = arith.muli %arg1, %c320_i32 : i32
    %c16_i32 = arith.constant 16 : i32
    %1 = arith.addi %0, %c16_i32 : i32
    %c0 = arith.constant 0 : index
    %c0_0 = arith.constant 0 : index
    %2 = vector.load %arg5[%c0, %c0_0] : memref<320x128xf32, #tpu.memory_space<vmem>>, vector<320x128xf32>
    %c0_1 = arith.constant 0 : index
    %c0_2 = arith.constant 0 : index
    %3 = vector.load %arg4[%c0_1, %c0_2] : memref<1x128xf32, #tpu.memory_space<vmem>>, vector<1x128xf32>
    %4 = vector.broadcast %3 : vector<1x128xf32> to vector<320x128xf32>
    %5 = arith.addf %2, %4 : vector<320x128xf32>
    %c-16_i32 = arith.constant -16 : i32
    %6 = arith.addi %1, %c-16_i32 : i32
    %7 = tpu.assume_multiple %6, 8 : i32
    %8 = arith.index_cast %7 : i32 to index
    %c0_3 = arith.constant 0 : index
    %9 = vector.load %arg2[%8, %c0_3] : memref<352x12xbf16, #tpu.memory_space<vmem>>, vector<320x12xbf16>
    %c0_4 = arith.constant 0 : index
    %c0_5 = arith.constant 0 : index
    %c0_6 = arith.constant 0 : index
    %10 = vector.load %arg3[%c0_4, %c0_5, %c0_6] : memref<3x12x128xbf16, #tpu.memory_space<vmem>>, vector<1x12x128xbf16>
    %11 = vector.shape_cast %10 : vector<1x12x128xbf16> to vector<12x128xbf16>
    %cst = arith.constant dense<0.000000e+00> : vector<320x128xf32>
    %12 = tpu.matmul %9, %11, %cst {dimension_numbers = #tpu.dot_dimension_numbers<[1], [0], [0], [1], [0, 0, 1, 1], [], []>} : vector<320x12xbf16>, vector<12x128xbf16>, vector<320x128xf32> -> vector<320x128xf32>
    %13 = arith.addf %5, %12 : vector<320x128xf32>
    %c0_i32 = arith.constant 0 : i32
    %14 = arith.addi %1, %c0_i32 : i32
    %15 = tpu.assume_multiple %14, 8 : i32
    %16 = arith.index_cast %15 : i32 to index
    %c0_7 = arith.constant 0 : index
    %17 = vector.load %arg2[%16, %c0_7] : memref<352x12xbf16, #tpu.memory_space<vmem>>, vector<320x12xbf16>
    %c1 = arith.constant 1 : index
    %c0_8 = arith.constant 0 : index
    %c0_9 = arith.constant 0 : index
    %18 = vector.load %arg3[%c1, %c0_8, %c0_9] : memref<3x12x128xbf16, #tpu.memory_space<vmem>>, vector<1x12x128xbf16>
    %19 = vector.shape_cast %18 : vector<1x12x128xbf16> to vector<12x128xbf16>
    %cst_10 = arith.constant dense<0.000000e+00> : vector<320x128xf32>
    %20 = tpu.matmul %17, %19, %cst_10 {dimension_numbers = #tpu.dot_dimension_numbers<[1], [0], [0], [1], [0, 0, 1, 1], [], []>} : vector<320x12xbf16>, vector<12x128xbf16>, vector<320x128xf32> -> vector<320x128xf32>
    %21 = arith.addf %13, %20 : vector<320x128xf32>
    %c16_i32_11 = arith.constant 16 : i32
    %22 = arith.addi %1, %c16_i32_11 : i32
    %23 = tpu.assume_multiple %22, 8 : i32
    %24 = arith.index_cast %23 : i32 to index
    %c0_12 = arith.constant 0 : index
    %25 = vector.load %arg2[%24, %c0_12] : memref<352x12xbf16, #tpu.memory_space<vmem>>, vector<320x12xbf16>
    %c2 = arith.constant 2 : index
    %c0_13 = arith.constant 0 : index
    %c0_14 = arith.constant 0 : index
    %26 = vector.load %arg3[%c2, %c0_13, %c0_14] : memref<3x12x128xbf16, #tpu.memory_space<vmem>>, vector<1x12x128xbf16>
    %27 = vector.shape_cast %26 : vector<1x12x128xbf16> to vector<12x128xbf16>
    %cst_15 = arith.constant dense<0.000000e+00> : vector<320x128xf32>
    %28 = tpu.matmul %25, %27, %cst_15 {dimension_numbers = #tpu.dot_dimension_numbers<[1], [0], [0], [1], [0, 0, 1, 1], [], []>} : vector<320x12xbf16>, vector<12x128xbf16>, vector<320x128xf32> -> vector<320x128xf32>
    %29 = arith.addf %21, %28 : vector<320x128xf32>
    %c0_i32_16 = arith.constant 0 : i32
    %30 = arith.cmpi eq, %arg0, %c0_i32_16 : i32
    %31 = arith.extui %30 : i1 to i32
    %c0_i32_17 = arith.constant 0 : i32
    %32 = arith.cmpi ne, %31, %c0_i32_17 : i32
    scf.if %32 {
      %c0_i32_19 = arith.constant 0 : i32
      %36 = arith.cmpi eq, %arg1, %c0_i32_19 : i32
      %37 = arith.extui %36 : i1 to i32
      %c0_i32_20 = arith.constant 0 : i32
      %38 = arith.cmpi ne, %37, %c0_i32_20 : i32
      scf.if %38 {
        %cst_35 = arith.constant 0.000000e+00 : f32
        %57 = vector.broadcast %cst_35 : f32 to vector<1x128xf32>
        %c0_36 = arith.constant 0 : index
        %c0_37 = arith.constant 0 : index
        %58 = vector.load %arg10[%c0_36, %c0_37] : memref<1x128xf32, #tpu.memory_space<vmem>>, vector<1x128xf32>
        tpu.vector_store %arg10[%c0_36, %c0_37], %57 {strides = array<i32>} : memref<1x128xf32, #tpu.memory_space<vmem>>, vector<1x128xf32>,
        %cst_38 = arith.constant 0.000000e+00 : f32
        %59 = vector.broadcast %cst_38 : f32 to vector<1x128xf32>
        %c0_39 = arith.constant 0 : index
        %c0_40 = arith.constant 0 : index
        %60 = vector.load %arg11[%c0_39, %c0_40] : memref<1x128xf32, #tpu.memory_space<vmem>>, vector<1x128xf32>
        tpu.vector_store %arg11[%c0_39, %c0_40], %59 {strides = array<i32>} : memref<1x128xf32, #tpu.memory_space<vmem>>, vector<1x128xf32>,
      } else {
      }
      %c0_21 = arith.constant 0 : index
      %c0_22 = arith.constant 0 : index
      %39 = vector.load %arg6[%c0_21, %c0_22] : memref<320x1xf32, #tpu.memory_space<vmem>>, vector<320x1xf32>
      %cst_23 = arith.constant 0.000000e+00 : f32
      %40 = vector.broadcast %cst_23 : f32 to vector<320x1xf32>
      %41 = arith.cmpf ogt, %39, %40 : vector<320x1xf32>
      %cst_24 = arith.constant 0.000000e+00 : f32
      %42 = vector.shape_cast %41 : vector<320x1xi1> to vector<320x1xi1>
      %43 = vector.broadcast %42 : vector<320x1xi1> to vector<320x128xi1>
      %44 = vector.broadcast %cst_24 : f32 to vector<320x128xf32>
      %45 = arith.select %43, %29, %44 : vector<320x128xi1>, vector<320x128xf32>
      %c0_25 = arith.constant 0 : index
      %c0_26 = arith.constant 0 : index
      %46 = vector.load %arg10[%c0_25, %c0_26] : memref<1x128xf32, #tpu.memory_space<vmem>>, vector<1x128xf32>
      %cst_27 = arith.constant dense<0.000000e+00> : vector<128xf32>
      %47 = vector.multi_reduction <add>, %45, %cst_27 [0] : vector<320x128xf32> to vector<128xf32>
      %48 = vector.shape_cast %47 : vector<128xf32> to vector<1x128xf32>
      %49 = arith.addf %46, %48 : vector<1x128xf32>
      %c0_28 = arith.constant 0 : index
      %c0_29 = arith.constant 0 : index
      %50 = vector.load %arg10[%c0_28, %c0_29] : memref<1x128xf32, #tpu.memory_space<vmem>>, vector<1x128xf32>
      tpu.vector_store %arg10[%c0_28, %c0_29], %49 {strides = array<i32>} : memref<1x128xf32, #tpu.memory_space<vmem>>, vector<1x128xf32>,
      %c0_30 = arith.constant 0 : index
      %c0_31 = arith.constant 0 : index
      %51 = vector.load %arg11[%c0_30, %c0_31] : memref<1x128xf32, #tpu.memory_space<vmem>>, vector<1x128xf32>
      %52 = arith.mulf %45, %45 : vector<320x128xf32>
      %cst_32 = arith.constant dense<0.000000e+00> : vector<128xf32>
      %53 = vector.multi_reduction <add>, %52, %cst_32 [0] : vector<320x128xf32> to vector<128xf32>
      %54 = vector.shape_cast %53 : vector<128xf32> to vector<1x128xf32>
      %55 = arith.addf %51, %54 : vector<1x128xf32>
      %c0_33 = arith.constant 0 : index
      %c0_34 = arith.constant 0 : index
      %56 = vector.load %arg11[%c0_33, %c0_34] : memref<1x128xf32, #tpu.memory_space<vmem>>, vector<1x128xf32>
      tpu.vector_store %arg11[%c0_33, %c0_34], %55 {strides = array<i32>} : memref<1x128xf32, #tpu.memory_space<vmem>>, vector<1x128xf32>,
    } else {
    }
    %c1_i32 = arith.constant 1 : i32
    %33 = arith.cmpi eq, %arg0, %c1_i32 : i32
    %34 = arith.extui %33 : i1 to i32
    %c0_i32_18 = arith.constant 0 : i32
    %35 = arith.cmpi ne, %34, %c0_i32_18 : i32
    scf.if %35 {
      %c0_19 = arith.constant 0 : index
      %c0_20 = arith.constant 0 : index
      %36 = vector.load %arg10[%c0_19, %c0_20] : memref<1x128xf32, #tpu.memory_space<vmem>>, vector<1x128xf32>
      %cst_21 = arith.constant 7.812500e-03 : f32
      %37 = vector.broadcast %cst_21 : f32 to vector<1x128xf32>
      %38 = arith.mulf %36, %37 : vector<1x128xf32>
      %c0_22 = arith.constant 0 : index
      %c0_23 = arith.constant 0 : index
      %39 = vector.load %arg11[%c0_22, %c0_23] : memref<1x128xf32, #tpu.memory_space<vmem>>, vector<1x128xf32>
      %cst_24 = arith.constant 7.812500e-03 : f32
      %40 = vector.broadcast %cst_24 : f32 to vector<1x128xf32>
      %41 = arith.mulf %39, %40 : vector<1x128xf32>
      %42 = arith.mulf %38, %38 : vector<1x128xf32>
      %43 = arith.subf %41, %42 : vector<1x128xf32>
      %cst_25 = arith.constant 0.000000e+00 : f32
      %44 = vector.broadcast %cst_25 : f32 to vector<1x128xf32>
      %45 = arith.maximumf %43, %44 : vector<1x128xf32>
      %46 = vector.broadcast %38 : vector<1x128xf32> to vector<320x128xf32>
      %47 = arith.subf %29, %46 : vector<320x128xf32>
      %cst_26 = arith.constant 9.99999974E-6 : f32
      %48 = vector.broadcast %cst_26 : f32 to vector<1x128xf32>
      %49 = arith.addf %45, %48 : vector<1x128xf32>
      %50 = math.rsqrt %49 : vector<1x128xf32>
      %51 = vector.broadcast %50 : vector<1x128xf32> to vector<320x128xf32>
      %52 = arith.mulf %47, %51 : vector<320x128xf32>
      %c0_27 = arith.constant 0 : index
      %c0_28 = arith.constant 0 : index
      %53 = vector.load %arg7[%c0_27, %c0_28] : memref<1x128xf32, #tpu.memory_space<vmem>>, vector<1x128xf32>
      %54 = vector.broadcast %53 : vector<1x128xf32> to vector<320x128xf32>
      %55 = arith.mulf %52, %54 : vector<320x128xf32>
      %c0_29 = arith.constant 0 : index
      %c0_30 = arith.constant 0 : index
      %56 = vector.load %arg8[%c0_29, %c0_30] : memref<1x128xf32, #tpu.memory_space<vmem>>, vector<1x128xf32>
      %57 = vector.broadcast %56 : vector<1x128xf32> to vector<320x128xf32>
      %58 = arith.addf %55, %57 : vector<320x128xf32>
      %cst_31 = arith.constant 0.000000e+00 : f32
      %59 = vector.broadcast %cst_31 : f32 to vector<320x128xf32>
      %60 = arith.cmpf ogt, %58, %59 : vector<320x128xf32>
      %cst_32 = arith.constant 0.000000e+00 : f32
      %61 = vector.broadcast %cst_32 : f32 to vector<320x128xf32>
      %62 = arith.minimumf %58, %61 : vector<320x128xf32>
      %63 = math.exp %62 : vector<320x128xf32>
      %cst_33 = arith.constant 1.000000e+00 : f32
      %64 = vector.broadcast %cst_33 : f32 to vector<320x128xf32>
      %65 = arith.subf %63, %64 : vector<320x128xf32>
      %66 = arith.select %60, %58, %65 : vector<320x128xi1>, vector<320x128xf32>
      %c0_34 = arith.constant 0 : index
      %c0_35 = arith.constant 0 : index
      %67 = vector.load %arg9[%c0_34, %c0_35] : memref<320x128xf32, #tpu.memory_space<vmem>>, vector<320x128xf32>
      tpu.vector_store %arg9[%c0_34, %c0_35], %66 {strides = array<i32>} : memref<320x128xf32, #tpu.memory_space<vmem>>, vector<320x128xf32>,
    } else {
    }
    return
  }
  func.func @transform_0(%arg0: i32, %arg1: i32) -> (i32, i32) {
    %c0_i32 = arith.constant 0 : i32
    %c0_i32_0 = arith.constant 0 : i32
    %c0_i32_1 = arith.constant 0 : i32
    return %c0_i32, %c0_i32_0 : i32, i32
  }
  func.func @transform_1(%arg0: i32, %arg1: i32) -> (i32, i32, i32) {
    %c0_i32 = arith.constant 0 : i32
    %c0_i32_0 = arith.constant 0 : i32
    %c0_i32_1 = arith.constant 0 : i32
    %c0_i32_2 = arith.constant 0 : i32
    return %c0_i32, %c0_i32_0, %c0_i32_1 : i32, i32, i32
  }
  func.func @transform_2(%arg0: i32, %arg1: i32) -> (i32, i32) {
    %c0_i32 = arith.constant 0 : i32
    %c0_i32_0 = arith.constant 0 : i32
    %c0_i32_1 = arith.constant 0 : i32
    return %c0_i32, %c0_i32_0 : i32, i32
  }
  func.func @transform_3(%arg0: i32, %arg1: i32) -> (i32, i32) {
    %c0_i32 = arith.constant 0 : i32
    %c0_i32_0 = arith.constant 0 : i32
    return %arg1, %c0_i32 : i32, i32
  }
  func.func @transform_4(%arg0: i32, %arg1: i32) -> (i32, i32) {
    %c0_i32 = arith.constant 0 : i32
    %c0_i32_0 = arith.constant 0 : i32
    return %arg1, %c0_i32 : i32, i32
  }
  func.func @transform_5(%arg0: i32, %arg1: i32) -> (i32, i32) {
    %c0_i32 = arith.constant 0 : i32
    %c0_i32_0 = arith.constant 0 : i32
    %c0_i32_1 = arith.constant 0 : i32
    return %c0_i32, %c0_i32_0 : i32, i32
  }
  func.func @transform_6(%arg0: i32, %arg1: i32) -> (i32, i32) {
    %c0_i32 = arith.constant 0 : i32
    %c0_i32_0 = arith.constant 0 : i32
    %c0_i32_1 = arith.constant 0 : i32
    return %c0_i32, %c0_i32_0 : i32, i32
  }
  func.func @transform_7(%arg0: i32, %arg1: i32) -> (i32, i32) {
    %c0_i32 = arith.constant 0 : i32
    %c0_i32_0 = arith.constant 0 : i32
    return %arg1, %c0_i32 : i32, i32
  }
}

module attributes {stable_mosaic.version = 11 : i64} {
  func.func @_block_call_a_kernel(%arg0: i32, %arg1: i32, %arg2: memref<32x72xbf16, #tpu.memory_space<vmem>>, %arg3: memref<72x256xbf16, #tpu.memory_space<vmem>>, %arg4: memref<1x256xf32, #tpu.memory_space<vmem>>, %arg5: memref<1x128xf32, #tpu.memory_space<vmem>>, %arg6: memref<1x128xf32, #tpu.memory_space<vmem>>, %arg7: memref<32x128xf32, #tpu.memory_space<vmem>>, %arg8: memref<32x128xbf16, #tpu.memory_space<vmem>>, %arg9: memref<1x128xf32, #tpu.memory_space<vmem>>, %arg10: memref<1x128xf32, #tpu.memory_space<vmem>>) attributes {dimension_semantics = [#tpu.dimension_semantics<arbitrary>, #tpu.dimension_semantics<arbitrary>], iteration_bounds = array<i64: 2, 1>, scalar_prefetch = 0 : i64, scratch_operands = 2 : i64, tpu.core_type = #tpu.core_type<tc>, window_params = [{transform_indices = @transform_0, window_bounds = array<i64: 32, 72>}, {pipeline_mode = #tpu.pipeline_mode<synchronous>, transform_indices = @transform_1, window_bounds = array<i64: 72, 256>}, {pipeline_mode = #tpu.pipeline_mode<synchronous>, transform_indices = @transform_2, window_bounds = array<i64: 1, 256>}, {pipeline_mode = #tpu.pipeline_mode<synchronous>, transform_indices = @transform_3, window_bounds = array<i64: 1, 128>}, {pipeline_mode = #tpu.pipeline_mode<synchronous>, transform_indices = @transform_4, window_bounds = array<i64: 1, 128>}, {transform_indices = @transform_5, window_bounds = array<i64: 32, 128>}, {transform_indices = @transform_6, window_bounds = array<i64: 32, 128>}]} {
    %c32_i32 = arith.constant 32 : i32
    %0 = arith.muli %arg1, %c32_i32 : i32
    %1 = tpu.iota {dimensions = array<i32: 0>} : vector<32x1xi32>
    %2 = vector.broadcast %0 : i32 to vector<32x1xi32>
    %3 = arith.addi %1, %2 : vector<32x1xi32>
    %c32_i32_0 = arith.constant 32 : i32
    %4 = vector.broadcast %c32_i32_0 : i32 to vector<32x1xi32>
    %5 = arith.cmpi slt, %3, %4 : vector<32x1xi32>
    %c0_i32 = arith.constant 0 : i32
    %6 = arith.cmpi eq, %arg0, %c0_i32 : i32
    %7 = arith.extui %6 : i1 to i32
    %c0_i32_1 = arith.constant 0 : i32
    %8 = arith.cmpi ne, %7, %c0_i32_1 : i32
    scf.if %8 {
      %c0_i32_3 = arith.constant 0 : i32
      %12 = arith.cmpi eq, %arg1, %c0_i32_3 : i32
      %13 = arith.extui %12 : i1 to i32
      %c0_i32_4 = arith.constant 0 : i32
      %14 = arith.cmpi ne, %13, %c0_i32_4 : i32
      scf.if %14 {
        %cst_20 = arith.constant 0.000000e+00 : f32
        %36 = vector.broadcast %cst_20 : f32 to vector<1x128xf32>
        %c0_21 = arith.constant 0 : index
        %c0_22 = arith.constant 0 : index
        %37 = vector.load %arg9[%c0_21, %c0_22] : memref<1x128xf32, #tpu.memory_space<vmem>>, vector<1x128xf32>
        tpu.vector_store %arg9[%c0_21, %c0_22], %36 {strides = array<i32>} : memref<1x128xf32, #tpu.memory_space<vmem>>, vector<1x128xf32>,
        %cst_23 = arith.constant 0.000000e+00 : f32
        %38 = vector.broadcast %cst_23 : f32 to vector<1x128xf32>
        %c0_24 = arith.constant 0 : index
        %c0_25 = arith.constant 0 : index
        %39 = vector.load %arg10[%c0_24, %c0_25] : memref<1x128xf32, #tpu.memory_space<vmem>>, vector<1x128xf32>
        tpu.vector_store %arg10[%c0_24, %c0_25], %38 {strides = array<i32>} : memref<1x128xf32, #tpu.memory_space<vmem>>, vector<1x128xf32>,
      } else {
      }
      %c0 = arith.constant 0 : index
      %c0_5 = arith.constant 0 : index
      %15 = vector.load %arg2[%c0, %c0_5] : memref<32x72xbf16, #tpu.memory_space<vmem>>, vector<32x72xbf16>
      %c0_6 = arith.constant 0 : index
      %c128 = arith.constant 128 : index
      %16 = vector.load %arg3[%c0_6, %c128] : memref<72x256xbf16, #tpu.memory_space<vmem>>, vector<72x128xbf16>
      %cst = arith.constant dense<0.000000e+00> : vector<32x128xf32>
      %17 = tpu.matmul %15, %16, %cst {dimension_numbers = #tpu.dot_dimension_numbers<[1], [0], [0], [1], [0, 0, 1, 1], [], []>} : vector<32x72xbf16>, vector<72x128xbf16>, vector<32x128xf32> -> vector<32x128xf32>
      %c0_7 = arith.constant 0 : index
      %c128_8 = arith.constant 128 : index
      %18 = vector.load %arg4[%c0_7, %c128_8] : memref<1x256xf32, #tpu.memory_space<vmem>>, vector<1x128xf32>
      %19 = vector.broadcast %18 : vector<1x128xf32> to vector<32x128xf32>
      %20 = arith.addf %17, %19 : vector<32x128xf32>
      %cst_9 = arith.constant 0.000000e+00 : f32
      %21 = vector.shape_cast %5 : vector<32x1xi1> to vector<32x1xi1>
      %22 = vector.broadcast %21 : vector<32x1xi1> to vector<32x128xi1>
      %23 = vector.broadcast %cst_9 : f32 to vector<32x128xf32>
      %24 = arith.select %22, %20, %23 : vector<32x128xi1>, vector<32x128xf32>
      %c0_10 = arith.constant 0 : index
      %c0_11 = arith.constant 0 : index
      %25 = vector.load %arg9[%c0_10, %c0_11] : memref<1x128xf32, #tpu.memory_space<vmem>>, vector<1x128xf32>
      %cst_12 = arith.constant dense<0.000000e+00> : vector<128xf32>
      %26 = vector.multi_reduction <add>, %24, %cst_12 [0] : vector<32x128xf32> to vector<128xf32>
      %27 = vector.shape_cast %26 : vector<128xf32> to vector<1x128xf32>
      %28 = arith.addf %25, %27 : vector<1x128xf32>
      %c0_13 = arith.constant 0 : index
      %c0_14 = arith.constant 0 : index
      %29 = vector.load %arg9[%c0_13, %c0_14] : memref<1x128xf32, #tpu.memory_space<vmem>>, vector<1x128xf32>
      tpu.vector_store %arg9[%c0_13, %c0_14], %28 {strides = array<i32>} : memref<1x128xf32, #tpu.memory_space<vmem>>, vector<1x128xf32>,
      %c0_15 = arith.constant 0 : index
      %c0_16 = arith.constant 0 : index
      %30 = vector.load %arg10[%c0_15, %c0_16] : memref<1x128xf32, #tpu.memory_space<vmem>>, vector<1x128xf32>
      %31 = arith.mulf %24, %24 : vector<32x128xf32>
      %cst_17 = arith.constant dense<0.000000e+00> : vector<128xf32>
      %32 = vector.multi_reduction <add>, %31, %cst_17 [0] : vector<32x128xf32> to vector<128xf32>
      %33 = vector.shape_cast %32 : vector<128xf32> to vector<1x128xf32>
      %34 = arith.addf %30, %33 : vector<1x128xf32>
      %c0_18 = arith.constant 0 : index
      %c0_19 = arith.constant 0 : index
      %35 = vector.load %arg10[%c0_18, %c0_19] : memref<1x128xf32, #tpu.memory_space<vmem>>, vector<1x128xf32>
      tpu.vector_store %arg10[%c0_18, %c0_19], %34 {strides = array<i32>} : memref<1x128xf32, #tpu.memory_space<vmem>>, vector<1x128xf32>,
    } else {
    }
    %c1_i32 = arith.constant 1 : i32
    %9 = arith.cmpi eq, %arg0, %c1_i32 : i32
    %10 = arith.extui %9 : i1 to i32
    %c0_i32_2 = arith.constant 0 : i32
    %11 = arith.cmpi ne, %10, %c0_i32_2 : i32
    scf.if %11 {
      %c0 = arith.constant 0 : index
      %c0_3 = arith.constant 0 : index
      %12 = vector.load %arg2[%c0, %c0_3] : memref<32x72xbf16, #tpu.memory_space<vmem>>, vector<32x72xbf16>
      %c0_4 = arith.constant 0 : index
      %c0_5 = arith.constant 0 : index
      %13 = vector.load %arg3[%c0_4, %c0_5] : memref<72x256xbf16, #tpu.memory_space<vmem>>, vector<72x256xbf16>
      %cst = arith.constant dense<0.000000e+00> : vector<32x256xf32>
      %14 = tpu.matmul %12, %13, %cst {dimension_numbers = #tpu.dot_dimension_numbers<[1], [0], [0], [1], [0, 0, 1, 1], [], []>} : vector<32x72xbf16>, vector<72x256xbf16>, vector<32x256xf32> -> vector<32x256xf32>
      %c0_6 = arith.constant 0 : index
      %c0_7 = arith.constant 0 : index
      %15 = vector.load %arg4[%c0_6, %c0_7] : memref<1x256xf32, #tpu.memory_space<vmem>>, vector<1x256xf32>
      %16 = vector.broadcast %15 : vector<1x256xf32> to vector<32x256xf32>
      %17 = arith.addf %14, %16 : vector<32x256xf32>
      %18 = vector.extract_strided_slice %17 {offsets = [0, 0], sizes = [32, 128], strides = [1, 1]} : vector<32x256xf32> to vector<32x128xf32>
      %c0_8 = arith.constant 0 : index
      %c0_9 = arith.constant 0 : index
      %19 = vector.load %arg7[%c0_8, %c0_9] : memref<32x128xf32, #tpu.memory_space<vmem>>, vector<32x128xf32>
      tpu.vector_store %arg7[%c0_8, %c0_9], %18 {strides = array<i32>} : memref<32x128xf32, #tpu.memory_space<vmem>>, vector<32x128xf32>,
      %c0_10 = arith.constant 0 : index
      %c0_11 = arith.constant 0 : index
      %20 = vector.load %arg9[%c0_10, %c0_11] : memref<1x128xf32, #tpu.memory_space<vmem>>, vector<1x128xf32>
      %cst_12 = arith.constant 3.125000e-02 : f32
      %21 = vector.broadcast %cst_12 : f32 to vector<1x128xf32>
      %22 = arith.mulf %20, %21 : vector<1x128xf32>
      %c0_13 = arith.constant 0 : index
      %c0_14 = arith.constant 0 : index
      %23 = vector.load %arg10[%c0_13, %c0_14] : memref<1x128xf32, #tpu.memory_space<vmem>>, vector<1x128xf32>
      %cst_15 = arith.constant 3.125000e-02 : f32
      %24 = vector.broadcast %cst_15 : f32 to vector<1x128xf32>
      %25 = arith.mulf %23, %24 : vector<1x128xf32>
      %26 = arith.mulf %22, %22 : vector<1x128xf32>
      %27 = arith.subf %25, %26 : vector<1x128xf32>
      %cst_16 = arith.constant 0.000000e+00 : f32
      %28 = vector.broadcast %cst_16 : f32 to vector<1x128xf32>
      %29 = arith.maximumf %27, %28 : vector<1x128xf32>
      %30 = vector.extract_strided_slice %17 {offsets = [0, 128], sizes = [32, 128], strides = [1, 1]} : vector<32x256xf32> to vector<32x128xf32>
      %31 = vector.broadcast %22 : vector<1x128xf32> to vector<32x128xf32>
      %32 = arith.subf %30, %31 : vector<32x128xf32>
      %cst_17 = arith.constant 9.99999974E-6 : f32
      %33 = vector.broadcast %cst_17 : f32 to vector<1x128xf32>
      %34 = arith.addf %29, %33 : vector<1x128xf32>
      %35 = math.rsqrt %34 : vector<1x128xf32>
      %36 = vector.broadcast %35 : vector<1x128xf32> to vector<32x128xf32>
      %37 = arith.mulf %32, %36 : vector<32x128xf32>
      %c0_18 = arith.constant 0 : index
      %c0_19 = arith.constant 0 : index
      %38 = vector.load %arg5[%c0_18, %c0_19] : memref<1x128xf32, #tpu.memory_space<vmem>>, vector<1x128xf32>
      %39 = vector.broadcast %38 : vector<1x128xf32> to vector<32x128xf32>
      %40 = arith.mulf %37, %39 : vector<32x128xf32>
      %c0_20 = arith.constant 0 : index
      %c0_21 = arith.constant 0 : index
      %41 = vector.load %arg6[%c0_20, %c0_21] : memref<1x128xf32, #tpu.memory_space<vmem>>, vector<1x128xf32>
      %42 = vector.broadcast %41 : vector<1x128xf32> to vector<32x128xf32>
      %43 = arith.addf %40, %42 : vector<32x128xf32>
      %cst_22 = arith.constant 0.000000e+00 : f32
      %44 = vector.broadcast %cst_22 : f32 to vector<32x128xf32>
      %45 = arith.cmpf ogt, %43, %44 : vector<32x128xf32>
      %cst_23 = arith.constant 0.000000e+00 : f32
      %46 = vector.broadcast %cst_23 : f32 to vector<32x128xf32>
      %47 = arith.minimumf %43, %46 : vector<32x128xf32>
      %48 = math.exp %47 : vector<32x128xf32>
      %cst_24 = arith.constant 1.000000e+00 : f32
      %49 = vector.broadcast %cst_24 : f32 to vector<32x128xf32>
      %50 = arith.subf %48, %49 : vector<32x128xf32>
      %51 = arith.select %45, %43, %50 : vector<32x128xi1>, vector<32x128xf32>
      %52 = arith.truncf %51 : vector<32x128xf32> to vector<32x128xbf16>
      %c0_25 = arith.constant 0 : index
      %c0_26 = arith.constant 0 : index
      %53 = vector.load %arg8[%c0_25, %c0_26] : memref<32x128xbf16, #tpu.memory_space<vmem>>, vector<32x128xbf16>
      tpu.vector_store %arg8[%c0_25, %c0_26], %52 {strides = array<i32>} : memref<32x128xbf16, #tpu.memory_space<vmem>>, vector<32x128xbf16>,
    } else {
    }
    return
  }
  func.func @transform_0(%arg0: i32, %arg1: i32) -> (i32, i32) {
    %c0_i32 = arith.constant 0 : i32
    %c0_i32_0 = arith.constant 0 : i32
    return %arg1, %c0_i32 : i32, i32
  }
  func.func @transform_1(%arg0: i32, %arg1: i32) -> (i32, i32) {
    %c0_i32 = arith.constant 0 : i32
    %c0_i32_0 = arith.constant 0 : i32
    %c0_i32_1 = arith.constant 0 : i32
    return %c0_i32, %c0_i32_0 : i32, i32
  }
  func.func @transform_2(%arg0: i32, %arg1: i32) -> (i32, i32) {
    %c0_i32 = arith.constant 0 : i32
    %c0_i32_0 = arith.constant 0 : i32
    %c0_i32_1 = arith.constant 0 : i32
    return %c0_i32, %c0_i32_0 : i32, i32
  }
  func.func @transform_3(%arg0: i32, %arg1: i32) -> (i32, i32) {
    %c0_i32 = arith.constant 0 : i32
    %c0_i32_0 = arith.constant 0 : i32
    %c0_i32_1 = arith.constant 0 : i32
    return %c0_i32, %c0_i32_0 : i32, i32
  }
  func.func @transform_4(%arg0: i32, %arg1: i32) -> (i32, i32) {
    %c0_i32 = arith.constant 0 : i32
    %c0_i32_0 = arith.constant 0 : i32
    %c0_i32_1 = arith.constant 0 : i32
    return %c0_i32, %c0_i32_0 : i32, i32
  }
  func.func @transform_5(%arg0: i32, %arg1: i32) -> (i32, i32) {
    %c0_i32 = arith.constant 0 : i32
    %c0_i32_0 = arith.constant 0 : i32
    return %arg1, %c0_i32 : i32, i32
  }
  func.func @transform_6(%arg0: i32, %arg1: i32) -> (i32, i32) {
    %c0_i32 = arith.constant 0 : i32
    %c0_i32_0 = arith.constant 0 : i32
    return %arg1, %c0_i32 : i32, i32
  }
}

module attributes {stable_mosaic.version = 11 : i64} {
  func.func @_block_call_b_kernel(%arg0: i32, %arg1: i32, %arg2: memref<112x24xbf16, #tpu.memory_space<vmem>>, %arg3: memref<3x24x128xbf16, #tpu.memory_space<vmem>>, %arg4: memref<1x128xf32, #tpu.memory_space<vmem>>, %arg5: memref<96x128xf32, #tpu.memory_space<vmem>>, %arg6: memref<96x1xf32, #tpu.memory_space<vmem>>, %arg7: memref<1x128xf32, #tpu.memory_space<vmem>>, %arg8: memref<1x128xf32, #tpu.memory_space<vmem>>, %arg9: memref<96x128xf32, #tpu.memory_space<vmem>>, %arg10: memref<1x128xf32, #tpu.memory_space<vmem>>, %arg11: memref<1x128xf32, #tpu.memory_space<vmem>>) attributes {dimension_semantics = [#tpu.dimension_semantics<arbitrary>, #tpu.dimension_semantics<arbitrary>], iteration_bounds = array<i64: 2, 1>, scalar_prefetch = 0 : i64, scratch_operands = 2 : i64, tpu.core_type = #tpu.core_type<tc>, window_params = [{pipeline_mode = #tpu.pipeline_mode<synchronous>, transform_indices = @transform_0, window_bounds = array<i64: 112, 24>}, {pipeline_mode = #tpu.pipeline_mode<synchronous>, transform_indices = @transform_1, window_bounds = array<i64: 3, 24, 128>}, {pipeline_mode = #tpu.pipeline_mode<synchronous>, transform_indices = @transform_2, window_bounds = array<i64: 1, 128>}, {transform_indices = @transform_3, window_bounds = array<i64: 96, 128>}, {transform_indices = @transform_4, window_bounds = array<i64: 96, 1>}, {pipeline_mode = #tpu.pipeline_mode<synchronous>, transform_indices = @transform_5, window_bounds = array<i64: 1, 128>}, {pipeline_mode = #tpu.pipeline_mode<synchronous>, transform_indices = @transform_6, window_bounds = array<i64: 1, 128>}, {transform_indices = @transform_7, window_bounds = array<i64: 96, 128>}]} {
    %c96_i32 = arith.constant 96 : i32
    %0 = arith.muli %arg1, %c96_i32 : i32
    %c8_i32 = arith.constant 8 : i32
    %1 = arith.addi %0, %c8_i32 : i32
    %c0 = arith.constant 0 : index
    %c0_0 = arith.constant 0 : index
    %2 = vector.load %arg5[%c0, %c0_0] : memref<96x128xf32, #tpu.memory_space<vmem>>, vector<96x128xf32>
    %c0_1 = arith.constant 0 : index
    %c0_2 = arith.constant 0 : index
    %3 = vector.load %arg4[%c0_1, %c0_2] : memref<1x128xf32, #tpu.memory_space<vmem>>, vector<1x128xf32>
    %4 = vector.broadcast %3 : vector<1x128xf32> to vector<96x128xf32>
    %5 = arith.addf %2, %4 : vector<96x128xf32>
    %c-8_i32 = arith.constant -8 : i32
    %6 = arith.addi %1, %c-8_i32 : i32
    %7 = tpu.assume_multiple %6, 8 : i32
    %8 = arith.index_cast %7 : i32 to index
    %c0_3 = arith.constant 0 : index
    %9 = vector.load %arg2[%8, %c0_3] : memref<112x24xbf16, #tpu.memory_space<vmem>>, vector<96x24xbf16>
    %c0_4 = arith.constant 0 : index
    %c0_5 = arith.constant 0 : index
    %c0_6 = arith.constant 0 : index
    %10 = vector.load %arg3[%c0_4, %c0_5, %c0_6] : memref<3x24x128xbf16, #tpu.memory_space<vmem>>, vector<1x24x128xbf16>
    %11 = vector.shape_cast %10 : vector<1x24x128xbf16> to vector<24x128xbf16>
    %cst = arith.constant dense<0.000000e+00> : vector<96x128xf32>
    %12 = tpu.matmul %9, %11, %cst {dimension_numbers = #tpu.dot_dimension_numbers<[1], [0], [0], [1], [0, 0, 1, 1], [], []>} : vector<96x24xbf16>, vector<24x128xbf16>, vector<96x128xf32> -> vector<96x128xf32>
    %13 = arith.addf %5, %12 : vector<96x128xf32>
    %c0_i32 = arith.constant 0 : i32
    %14 = arith.addi %1, %c0_i32 : i32
    %15 = tpu.assume_multiple %14, 8 : i32
    %16 = arith.index_cast %15 : i32 to index
    %c0_7 = arith.constant 0 : index
    %17 = vector.load %arg2[%16, %c0_7] : memref<112x24xbf16, #tpu.memory_space<vmem>>, vector<96x24xbf16>
    %c1 = arith.constant 1 : index
    %c0_8 = arith.constant 0 : index
    %c0_9 = arith.constant 0 : index
    %18 = vector.load %arg3[%c1, %c0_8, %c0_9] : memref<3x24x128xbf16, #tpu.memory_space<vmem>>, vector<1x24x128xbf16>
    %19 = vector.shape_cast %18 : vector<1x24x128xbf16> to vector<24x128xbf16>
    %cst_10 = arith.constant dense<0.000000e+00> : vector<96x128xf32>
    %20 = tpu.matmul %17, %19, %cst_10 {dimension_numbers = #tpu.dot_dimension_numbers<[1], [0], [0], [1], [0, 0, 1, 1], [], []>} : vector<96x24xbf16>, vector<24x128xbf16>, vector<96x128xf32> -> vector<96x128xf32>
    %21 = arith.addf %13, %20 : vector<96x128xf32>
    %c8_i32_11 = arith.constant 8 : i32
    %22 = arith.addi %1, %c8_i32_11 : i32
    %23 = tpu.assume_multiple %22, 8 : i32
    %24 = arith.index_cast %23 : i32 to index
    %c0_12 = arith.constant 0 : index
    %25 = vector.load %arg2[%24, %c0_12] : memref<112x24xbf16, #tpu.memory_space<vmem>>, vector<96x24xbf16>
    %c2 = arith.constant 2 : index
    %c0_13 = arith.constant 0 : index
    %c0_14 = arith.constant 0 : index
    %26 = vector.load %arg3[%c2, %c0_13, %c0_14] : memref<3x24x128xbf16, #tpu.memory_space<vmem>>, vector<1x24x128xbf16>
    %27 = vector.shape_cast %26 : vector<1x24x128xbf16> to vector<24x128xbf16>
    %cst_15 = arith.constant dense<0.000000e+00> : vector<96x128xf32>
    %28 = tpu.matmul %25, %27, %cst_15 {dimension_numbers = #tpu.dot_dimension_numbers<[1], [0], [0], [1], [0, 0, 1, 1], [], []>} : vector<96x24xbf16>, vector<24x128xbf16>, vector<96x128xf32> -> vector<96x128xf32>
    %29 = arith.addf %21, %28 : vector<96x128xf32>
    %c0_i32_16 = arith.constant 0 : i32
    %30 = arith.cmpi eq, %arg0, %c0_i32_16 : i32
    %31 = arith.extui %30 : i1 to i32
    %c0_i32_17 = arith.constant 0 : i32
    %32 = arith.cmpi ne, %31, %c0_i32_17 : i32
    scf.if %32 {
      %c0_i32_19 = arith.constant 0 : i32
      %36 = arith.cmpi eq, %arg1, %c0_i32_19 : i32
      %37 = arith.extui %36 : i1 to i32
      %c0_i32_20 = arith.constant 0 : i32
      %38 = arith.cmpi ne, %37, %c0_i32_20 : i32
      scf.if %38 {
        %cst_35 = arith.constant 0.000000e+00 : f32
        %57 = vector.broadcast %cst_35 : f32 to vector<1x128xf32>
        %c0_36 = arith.constant 0 : index
        %c0_37 = arith.constant 0 : index
        %58 = vector.load %arg10[%c0_36, %c0_37] : memref<1x128xf32, #tpu.memory_space<vmem>>, vector<1x128xf32>
        tpu.vector_store %arg10[%c0_36, %c0_37], %57 {strides = array<i32>} : memref<1x128xf32, #tpu.memory_space<vmem>>, vector<1x128xf32>,
        %cst_38 = arith.constant 0.000000e+00 : f32
        %59 = vector.broadcast %cst_38 : f32 to vector<1x128xf32>
        %c0_39 = arith.constant 0 : index
        %c0_40 = arith.constant 0 : index
        %60 = vector.load %arg11[%c0_39, %c0_40] : memref<1x128xf32, #tpu.memory_space<vmem>>, vector<1x128xf32>
        tpu.vector_store %arg11[%c0_39, %c0_40], %59 {strides = array<i32>} : memref<1x128xf32, #tpu.memory_space<vmem>>, vector<1x128xf32>,
      } else {
      }
      %c0_21 = arith.constant 0 : index
      %c0_22 = arith.constant 0 : index
      %39 = vector.load %arg6[%c0_21, %c0_22] : memref<96x1xf32, #tpu.memory_space<vmem>>, vector<96x1xf32>
      %cst_23 = arith.constant 0.000000e+00 : f32
      %40 = vector.broadcast %cst_23 : f32 to vector<96x1xf32>
      %41 = arith.cmpf ogt, %39, %40 : vector<96x1xf32>
      %cst_24 = arith.constant 0.000000e+00 : f32
      %42 = vector.shape_cast %41 : vector<96x1xi1> to vector<96x1xi1>
      %43 = vector.broadcast %42 : vector<96x1xi1> to vector<96x128xi1>
      %44 = vector.broadcast %cst_24 : f32 to vector<96x128xf32>
      %45 = arith.select %43, %29, %44 : vector<96x128xi1>, vector<96x128xf32>
      %c0_25 = arith.constant 0 : index
      %c0_26 = arith.constant 0 : index
      %46 = vector.load %arg10[%c0_25, %c0_26] : memref<1x128xf32, #tpu.memory_space<vmem>>, vector<1x128xf32>
      %cst_27 = arith.constant dense<0.000000e+00> : vector<128xf32>
      %47 = vector.multi_reduction <add>, %45, %cst_27 [0] : vector<96x128xf32> to vector<128xf32>
      %48 = vector.shape_cast %47 : vector<128xf32> to vector<1x128xf32>
      %49 = arith.addf %46, %48 : vector<1x128xf32>
      %c0_28 = arith.constant 0 : index
      %c0_29 = arith.constant 0 : index
      %50 = vector.load %arg10[%c0_28, %c0_29] : memref<1x128xf32, #tpu.memory_space<vmem>>, vector<1x128xf32>
      tpu.vector_store %arg10[%c0_28, %c0_29], %49 {strides = array<i32>} : memref<1x128xf32, #tpu.memory_space<vmem>>, vector<1x128xf32>,
      %c0_30 = arith.constant 0 : index
      %c0_31 = arith.constant 0 : index
      %51 = vector.load %arg11[%c0_30, %c0_31] : memref<1x128xf32, #tpu.memory_space<vmem>>, vector<1x128xf32>
      %52 = arith.mulf %45, %45 : vector<96x128xf32>
      %cst_32 = arith.constant dense<0.000000e+00> : vector<128xf32>
      %53 = vector.multi_reduction <add>, %52, %cst_32 [0] : vector<96x128xf32> to vector<128xf32>
      %54 = vector.shape_cast %53 : vector<128xf32> to vector<1x128xf32>
      %55 = arith.addf %51, %54 : vector<1x128xf32>
      %c0_33 = arith.constant 0 : index
      %c0_34 = arith.constant 0 : index
      %56 = vector.load %arg11[%c0_33, %c0_34] : memref<1x128xf32, #tpu.memory_space<vmem>>, vector<1x128xf32>
      tpu.vector_store %arg11[%c0_33, %c0_34], %55 {strides = array<i32>} : memref<1x128xf32, #tpu.memory_space<vmem>>, vector<1x128xf32>,
    } else {
    }
    %c1_i32 = arith.constant 1 : i32
    %33 = arith.cmpi eq, %arg0, %c1_i32 : i32
    %34 = arith.extui %33 : i1 to i32
    %c0_i32_18 = arith.constant 0 : i32
    %35 = arith.cmpi ne, %34, %c0_i32_18 : i32
    scf.if %35 {
      %c0_19 = arith.constant 0 : index
      %c0_20 = arith.constant 0 : index
      %36 = vector.load %arg10[%c0_19, %c0_20] : memref<1x128xf32, #tpu.memory_space<vmem>>, vector<1x128xf32>
      %cst_21 = arith.constant 3.125000e-02 : f32
      %37 = vector.broadcast %cst_21 : f32 to vector<1x128xf32>
      %38 = arith.mulf %36, %37 : vector<1x128xf32>
      %c0_22 = arith.constant 0 : index
      %c0_23 = arith.constant 0 : index
      %39 = vector.load %arg11[%c0_22, %c0_23] : memref<1x128xf32, #tpu.memory_space<vmem>>, vector<1x128xf32>
      %cst_24 = arith.constant 3.125000e-02 : f32
      %40 = vector.broadcast %cst_24 : f32 to vector<1x128xf32>
      %41 = arith.mulf %39, %40 : vector<1x128xf32>
      %42 = arith.mulf %38, %38 : vector<1x128xf32>
      %43 = arith.subf %41, %42 : vector<1x128xf32>
      %cst_25 = arith.constant 0.000000e+00 : f32
      %44 = vector.broadcast %cst_25 : f32 to vector<1x128xf32>
      %45 = arith.maximumf %43, %44 : vector<1x128xf32>
      %46 = vector.broadcast %38 : vector<1x128xf32> to vector<96x128xf32>
      %47 = arith.subf %29, %46 : vector<96x128xf32>
      %cst_26 = arith.constant 9.99999974E-6 : f32
      %48 = vector.broadcast %cst_26 : f32 to vector<1x128xf32>
      %49 = arith.addf %45, %48 : vector<1x128xf32>
      %50 = math.rsqrt %49 : vector<1x128xf32>
      %51 = vector.broadcast %50 : vector<1x128xf32> to vector<96x128xf32>
      %52 = arith.mulf %47, %51 : vector<96x128xf32>
      %c0_27 = arith.constant 0 : index
      %c0_28 = arith.constant 0 : index
      %53 = vector.load %arg7[%c0_27, %c0_28] : memref<1x128xf32, #tpu.memory_space<vmem>>, vector<1x128xf32>
      %54 = vector.broadcast %53 : vector<1x128xf32> to vector<96x128xf32>
      %55 = arith.mulf %52, %54 : vector<96x128xf32>
      %c0_29 = arith.constant 0 : index
      %c0_30 = arith.constant 0 : index
      %56 = vector.load %arg8[%c0_29, %c0_30] : memref<1x128xf32, #tpu.memory_space<vmem>>, vector<1x128xf32>
      %57 = vector.broadcast %56 : vector<1x128xf32> to vector<96x128xf32>
      %58 = arith.addf %55, %57 : vector<96x128xf32>
      %cst_31 = arith.constant 0.000000e+00 : f32
      %59 = vector.broadcast %cst_31 : f32 to vector<96x128xf32>
      %60 = arith.cmpf ogt, %58, %59 : vector<96x128xf32>
      %cst_32 = arith.constant 0.000000e+00 : f32
      %61 = vector.broadcast %cst_32 : f32 to vector<96x128xf32>
      %62 = arith.minimumf %58, %61 : vector<96x128xf32>
      %63 = math.exp %62 : vector<96x128xf32>
      %cst_33 = arith.constant 1.000000e+00 : f32
      %64 = vector.broadcast %cst_33 : f32 to vector<96x128xf32>
      %65 = arith.subf %63, %64 : vector<96x128xf32>
      %66 = arith.select %60, %58, %65 : vector<96x128xi1>, vector<96x128xf32>
      %c0_34 = arith.constant 0 : index
      %c0_35 = arith.constant 0 : index
      %67 = vector.load %arg9[%c0_34, %c0_35] : memref<96x128xf32, #tpu.memory_space<vmem>>, vector<96x128xf32>
      tpu.vector_store %arg9[%c0_34, %c0_35], %66 {strides = array<i32>} : memref<96x128xf32, #tpu.memory_space<vmem>>, vector<96x128xf32>,
    } else {
    }
    return
  }
  func.func @transform_0(%arg0: i32, %arg1: i32) -> (i32, i32) {
    %c0_i32 = arith.constant 0 : i32
    %c0_i32_0 = arith.constant 0 : i32
    %c0_i32_1 = arith.constant 0 : i32
    return %c0_i32, %c0_i32_0 : i32, i32
  }
  func.func @transform_1(%arg0: i32, %arg1: i32) -> (i32, i32, i32) {
    %c0_i32 = arith.constant 0 : i32
    %c0_i32_0 = arith.constant 0 : i32
    %c0_i32_1 = arith.constant 0 : i32
    %c0_i32_2 = arith.constant 0 : i32
    return %c0_i32, %c0_i32_0, %c0_i32_1 : i32, i32, i32
  }
  func.func @transform_2(%arg0: i32, %arg1: i32) -> (i32, i32) {
    %c0_i32 = arith.constant 0 : i32
    %c0_i32_0 = arith.constant 0 : i32
    %c0_i32_1 = arith.constant 0 : i32
    return %c0_i32, %c0_i32_0 : i32, i32
  }
  func.func @transform_3(%arg0: i32, %arg1: i32) -> (i32, i32) {
    %c0_i32 = arith.constant 0 : i32
    %c0_i32_0 = arith.constant 0 : i32
    return %arg1, %c0_i32 : i32, i32
  }
  func.func @transform_4(%arg0: i32, %arg1: i32) -> (i32, i32) {
    %c0_i32 = arith.constant 0 : i32
    %c0_i32_0 = arith.constant 0 : i32
    return %arg1, %c0_i32 : i32, i32
  }
  func.func @transform_5(%arg0: i32, %arg1: i32) -> (i32, i32) {
    %c0_i32 = arith.constant 0 : i32
    %c0_i32_0 = arith.constant 0 : i32
    %c0_i32_1 = arith.constant 0 : i32
    return %c0_i32, %c0_i32_0 : i32, i32
  }
  func.func @transform_6(%arg0: i32, %arg1: i32) -> (i32, i32) {
    %c0_i32 = arith.constant 0 : i32
    %c0_i32_0 = arith.constant 0 : i32
    %c0_i32_1 = arith.constant 0 : i32
    return %c0_i32, %c0_i32_0 : i32, i32
  }
  func.func @transform_7(%arg0: i32, %arg1: i32) -> (i32, i32) {
    %c0_i32 = arith.constant 0 : i32
    %c0_i32_0 = arith.constant 0 : i32
    return %arg1, %c0_i32 : i32, i32
  }
}

module attributes {stable_mosaic.version = 11 : i64} {
  func.func @_gemm_bias_kernel(%arg0: memref<2x256xbf16, #tpu.memory_space<vmem>>, %arg1: memref<256x128xbf16, #tpu.memory_space<vmem>>, %arg2: memref<1x128xf32, #tpu.memory_space<vmem>>, %arg3: memref<2x128xf32, #tpu.memory_space<vmem>>) attributes {dimension_semantics = [], scalar_prefetch = 0 : i64, scratch_operands = 0 : i64, tpu.core_type = #tpu.core_type<tc>} {
    %c0 = arith.constant 0 : index
    %c0_0 = arith.constant 0 : index
    %0 = vector.load %arg0[%c0, %c0_0] : memref<2x256xbf16, #tpu.memory_space<vmem>>, vector<2x256xbf16>
    %c0_1 = arith.constant 0 : index
    %c0_2 = arith.constant 0 : index
    %1 = vector.load %arg1[%c0_1, %c0_2] : memref<256x128xbf16, #tpu.memory_space<vmem>>, vector<256x128xbf16>
    %cst = arith.constant dense<0.000000e+00> : vector<2x128xf32>
    %2 = tpu.matmul %0, %1, %cst {dimension_numbers = #tpu.dot_dimension_numbers<[1], [0], [0], [1], [0, 0, 1, 1], [], []>} : vector<2x256xbf16>, vector<256x128xbf16>, vector<2x128xf32> -> vector<2x128xf32>
    %c0_3 = arith.constant 0 : index
    %c0_4 = arith.constant 0 : index
    %3 = vector.load %arg2[%c0_3, %c0_4] : memref<1x128xf32, #tpu.memory_space<vmem>>, vector<1x128xf32>
    %4 = vector.broadcast %3 : vector<1x128xf32> to vector<2x128xf32>
    %5 = arith.addf %2, %4 : vector<2x128xf32>
    %c0_5 = arith.constant 0 : index
    %c0_6 = arith.constant 0 : index
    %6 = vector.load %arg3[%c0_5, %c0_6] : memref<2x128xf32, #tpu.memory_space<vmem>>, vector<2x128xf32>
    tpu.vector_store %arg3[%c0_5, %c0_6], %5 {strides = array<i32>} : memref<2x128xf32, #tpu.memory_space<vmem>>, vector<2x128xf32>,
    return
  }
}

</mosaic_0001>

<bundles_post_ra>
// kernel: vae_forward_pallas.5
= control target key start
LH: loop header
LB: loop body
LE: loop exit
PB: predicated region body
PF: predicated region fallthrough
CT: control target
= control target key end

     0   :  { %s1645_s21 = smov 0   ;;  %s1647_s22 = smov 0   ;;  %s2052_s0 = inlined_call_operand.vmem [shape: bf16[128,36], index: 0, kind: input, shape index: {}]   ;;  %s2053_s1 = inlined_call_operand.vmem [shape: bf16[36,256], index: 1, kind: input, shape index: {}]   ;;  %s2054_s2 = inlined_call_operand.vmem [shape: f32[1,256], index: 2, kind: input, shape index: {}]   ;;  %s2055_s3 = inlined_call_operand.vmem [shape: f32[1,128], index: 3, kind: input, shape index: {}]   ;;  %s2056_s4 = inlined_call_operand.vmem [shape: f32[1,128], index: 4, kind: input, shape index: {}]   ;;  %s2057_s5 = inlined_call_operand.vmem [shape: f32[128,128], index: 5, kind: output, shape index: {0}]   ;;  %s2058_s6 = inlined_call_operand.vmem [shape: bf16[128,128], index: 6, kind: output, shape index: {1}]  }
   0x1   :  { %s1649_s23 = smov 0  }
   0x2 LB: > { %s29_s24 = sadd.s32 1, %s1602_s22  ;;  %p1301_p0 = scmp.ge.s32.totalorder %s1606_s23, 1  ;;  %s1606_s23 = sphi %s1649_s23, %s17_s23   ;;  %s1602_s22 = sphi %s1647_s22, %s2060_s22   ;;  %s1598_s21 = sphi %s1645_s21, %s2059_s21  }
   0x3   : > { %p31_p1 = scmp.ge.s32.totalorder %s29_s24, 2  ;;  %p228_p2 = scmp.lt.s32.totalorder %s1606_s23, 3 }
   0x5   : > { %s2062_s24 = smov (%p31_p1, %s29_s24), 0  ;;  %p229_p3 = pnand %p1301_p0, %p228_p2 }
   0x6   : > { %p1302_p4 = scmp.ne.s32.totalorder (!%p229_p3), %s1598_s21, 0 }
   0x7   : > { %232 = sbr.rel (%p229_p3) target bundleno = 589 (0x24d), region = 40 }
   0xe   : > { %336 = sbr.rel (%p1302_p4) target bundleno = 291 (0x123), region = 44  ;;  %v1523_v0 = vld [vmem:[%s2053_s1 + $0x4] ss:$8 sps:$4 sm:$0xff] (!%p1302_p4)   ;;  %v1524_v1 = vld [vmem:[%s2053_s1 + $0x14] ss:$8 sps:$4 sm:$0xff] (!%p1302_p4)   ;;  %vm426_vm0 = vcmask (!%p1302_p4), 293888  }
   0xf   : > { %1461 = vmatprep.subr.bf16.mxu0 (!%p1302_p4), %v1523_v0  ;;  %v1525_v2 = vld [vmem:[%s2053_s1 + $0x24] ss:$0 sps:$4 sm:$0x33] (!%p1302_p4)   ;;  %1483 = vmatprep.subr.bf16.mxu1 (!%p1302_p4), %v1523_v0  ;;  %vm451_vm1 = vcmask (!%p1302_p4), 1041408   ;;  %v1527_v6 = vld [vmem:[%s2052_s0 + $0x8] sm:$0xff] (!%p1302_p4)   ;;  %v1528_v8 = vld [vmem:[%s2052_s0 + $0x10] sm:$0xff] (!%p1302_p4)  }
  0x10   : > { %1462 = vmatpush3.bf16.msra.mxu0 (!%p1302_p4), %v1523_v0  ;;  %v1526_v3 = vld [vmem:[%s2052_s0] sm:$0xff] (!%p1302_p4)   ;;  %1486 = vmatpush3.bf16.msra.mxu1 (!%p1302_p4), %v1523_v0  ;;  %v453_v5 = vsel (!%p1302_p4), %vm451_vm1, %v1525_v2, 0  ;;  %v1531_v7 = vld [vmem:[%s2052_s0 + $0x28] sm:$0xff] (!%p1302_p4)   ;;  %v1532_v9 = vld [vmem:[%s2052_s0 + $0x30] sm:$0xff] (!%p1302_p4)   ;;  %v1608_v12 = vmov (!%p1302_p4), 0.0  }
  0x11   : > { %1463 = vmatprep.subr.bf16.mxu0 (!%p1302_p4), %v1524_v1  ;;  %1484 = vmatprep.subr.bf16.mxu1 (!%p1302_p4), %v1524_v1  ;;  %v1530_v4 = vld [vmem:[%s2052_s0 + $0x20] sm:$0xff] (!%p1302_p4)   ;;  %v1529_v10 = vld [vmem:[%s2052_s0 + $0x18] sm:$0xff] (!%p1302_p4)   ;;  %341 = vst [vmem:[#allocation2] sm:$0x1] (!%p1302_p4), %v1608_v12  ;;  %342 = vst [vmem:[#allocation3] sm:$0x1] (!%p1302_p4), %v1608_v12 }
  0x12   : > { %1467 = vmatprep.mubr.msk.bf16.mxu0 (!%p1302_p4), %vm426_vm0, %v1526_v3  ;;  %1475 = vmatprep.mubr.msk.bf16.mxu1 (!%p1302_p4), %vm426_vm0, %v1530_v4  ;;  %v1533_v11 = vld [vmem:[%s2052_s0 + $0x38] sm:$0xff] (!%p1302_p4)   ;;  %v1710_v13 = vld [vmem:[%s2054_s2 + $0x1] ss:$0 sm:$0xff] (!%p1302_p4) }
  0x14   : > { %1464 = vmatpush3.bf16.msra.mxu0 (!%p1302_p4), %v1524_v1  ;;  %1487 = vmatpush3.bf16.msra.mxu1 (!%p1302_p4), %v1524_v1 }
  0x15   : > { %1495 = vmatprep.subr.msk.bf16.mxu0 %vm451_vm1, %v1525_v2  ;;  %1496 = vmatprep.subr.msk.bf16.mxu1 %vm451_vm1, %v1525_v2 }
  0x18   : > { %1466 = vmatpush3.bf16.msra.mxu0 %v453_v5  ;;  %1488 = vmatpush3.bf16.msra.mxu1 %v453_v5 }
  0x1b   : > { %1468 = vmatmul.mubr.msk.bf16.vlgmr.msra.gmra.mrb[0].mxu0 %vm426_vm0, %v1527_v6  ;;  %1476 = vmatmul.mubr.msk.bf16.vlgmr.msra.gmra.mrb[0].mxu1 %vm426_vm0, %v1531_v7 }
  0x1c   : > { %1471 = vmatprep.mubr.msk.bf16.mxu0 %vm426_vm0, %v1528_v8  ;;  %1479 = vmatprep.mubr.msk.bf16.mxu1 %vm426_vm0, %v1532_v9 }
  0x23   : > { %1472 = vmatmul.mubr.msk.bf16.gmra.mrb[4].mxu0 %vm426_vm0, %v1529_v10  ;;  %1480 = vmatmul.mubr.msk.bf16.gmra.mrb[4].mxu1 %vm426_vm0, %v1533_v11 }
  0xee   : > { %v1469_v14 = vpop.f32.mrb[0].mxu0  ;;  %v1477_v15 = vpop.f32.mrb[0].mxu1 }
  0xef   : > { %v489_v16 = vpop.f32.mrb[1].mxu0  ;;  %v521_v17 = vpop.f32.mrb[1].mxu1  ;;  %v498_v23 = vadd.f32 %v1469_v14, %v1710_v13  ;;  %v530_v62 = vadd.f32 %v1477_v15, %v1710_v13 }
  0xf0   : > { %v490_v18 = vadd.f32 %v1710_v13, %v489_v16  ;;  %v1470_v19 = vpop.f32.mrb[2].mxu0  ;;  %v1478_v20 = vpop.f32.mrb[2].mxu1  ;;  %v522_v49 = vadd.f32 %v1710_v13, %v521_v17 }
  0xf1   : > { %v492_v21 = vpop.f32.mrb[3].mxu0  ;;  %v524_v22 = vpop.f32.mrb[3].mxu1  ;;  %v501_v26 = vadd.f32 %v1470_v19, %v1710_v13  ;;  %v627_v29 = vmul.f32 %v498_v23, %v498_v23  ;;  %v533_v1 = vadd.f32 %v1478_v20, %v1710_v13  ;;  %v635_v6 = vmul.f32 %v530_v62, %v530_v62 }
  0xf2   : > { %v493_v24 = vadd.f32 %v1710_v13, %v492_v21  ;;  %v625_v25 = vmul.f32 %v490_v18, %v490_v18  ;;  %v633_v57 = vmul.f32 %v522_v49, %v522_v49  ;;  %v525_v61 = vadd.f32 %v1710_v13, %v524_v22 }
  0xf3   : > { %v628_v36 = vmul.f32 %v501_v26, %v501_v26  ;;  %v636_v9 = vmul.f32 %v533_v1, %v533_v1 }
  0xf4   : > { %v601_v27 = vadd.f32 %v493_v24, %v490_v18  ;;  %v626_v28 = vmul.f32 %v493_v24, %v493_v24  ;;  %v634_v4 = vmul.f32 %v525_v61, %v525_v61 }
  0xf6   : > { %v602_v30 = vadd.f32 %v601_v27, %v498_v23  ;;  %v641_v31 = vadd.f32 %v626_v28, %v625_v25  ;;  %v1473_v32 = vpop.f32.mrb[4].mxu0  ;;  %v1481_v33 = vpop.f32.mrb[4].mxu1 }
  0xf7   : > { %v505_v34 = vpop.f32.mrb[5].mxu0  ;;  %v537_v35 = vpop.f32.mrb[5].mxu1  ;;  %v514_v42 = vadd.f32 %v1473_v32, %v1710_v13  ;;  %v546_v15 = vadd.f32 %v1481_v33, %v1710_v13 }
  0xf8   : > { %v642_v37 = vadd.f32 %v641_v31, %v627_v29  ;;  %v506_v38 = vadd.f32 %v1710_v13, %v505_v34  ;;  %v603_v39 = vadd.f32 %v602_v30, %v501_v26  ;;  %v1474_v40 = vpop.f32.mrb[6].mxu0  ;;  %v1482_v41 = vpop.f32.mrb[6].mxu1  ;;  %v538_v5 = vadd.f32 %v1710_v13, %v537_v35 }
  0xf9   : > { %v508_v43 = vpop.f32.mrb[7].mxu0  ;;  %v540_v44 = vpop.f32.mrb[7].mxu1  ;;  %v517_v51 = vadd.f32 %v1474_v40, %v1710_v13  ;;  %v631_v54 = vmul.f32 %v514_v42, %v514_v42  ;;  %v549_v19 = vadd.f32 %v1482_v41, %v1710_v13  ;;  %v639_v22 = vmul.f32 %v546_v15, %v546_v15  ;;  %v624_v40 = vld [vmem:[#allocation3] sm:$0x1] }
  0xfa   : > { %v604_v45 = vadd.f32 %v603_v39, %v506_v38  ;;  %v629_v46 = vmul.f32 %v506_v38, %v506_v38  ;;  %v643_v47 = vadd.f32 %v642_v37, %v628_v36  ;;  %v509_v48 = vadd.f32 %v1710_v13, %v508_v43  ;;  %v600_v38 = vld [vmem:[#allocation2] sm:$0x1] }
  0xfb   : > { %v632_v58 = vmul.f32 %v517_v51, %v517_v51  ;;  %v637_v12 = vmul.f32 %v538_v5, %v538_v5  ;;  %v541_v14 = vadd.f32 %v1710_v13, %v540_v44  ;;  %v640_v25 = vmul.f32 %v549_v19, %v549_v19 }
  0xfc   : > { %v644_v50 = vadd.f32 %v643_v47, %v629_v46  ;;  %v605_v52 = vadd.f32 %v604_v45, %v509_v48  ;;  %v630_v53 = vmul.f32 %v509_v48, %v509_v48 }
  0xfd   : > { %v638_v21 = vmul.f32 %v541_v14, %v541_v14 }
  0xfe   : > { %v606_v55 = vadd.f32 %v605_v52, %v514_v42  ;;  %v645_v56 = vadd.f32 %v644_v50, %v630_v53 }
 0x100   : > { %v646_v59 = vadd.f32 %v645_v56, %v631_v54  ;;  %v607_v60 = vadd.f32 %v606_v55, %v517_v51 }
 0x102   : > { %v608_v63 = vadd.f32 %v607_v60, %v522_v49  ;;  %v647_v0 = vadd.f32 %v646_v59, %v632_v58 }
 0x104   : > { %v648_v2 = vadd.f32 %v647_v0, %v633_v57  ;;  %v609_v3 = vadd.f32 %v608_v63, %v525_v61 }
 0x106   : > { %v610_v7 = vadd.f32 %v609_v3, %v530_v62  ;;  %v649_v8 = vadd.f32 %v648_v2, %v634_v4 }
 0x108   : > { %v650_v10 = vadd.f32 %v649_v8, %v635_v6  ;;  %v611_v11 = vadd.f32 %v610_v7, %v533_v1 }
 0x10a   : > { %v612_v16 = vadd.f32 %v611_v11, %v538_v5  ;;  %v651_v17 = vadd.f32 %v650_v10, %v636_v9 }
 0x10c   : > { %v652_v18 = vadd.f32 %v651_v17, %v637_v12  ;;  %v613_v20 = vadd.f32 %v612_v16, %v541_v14 }
 0x10e   : > { %v614_v23 = vadd.f32 %v613_v20, %v546_v15  ;;  %v653_v24 = vadd.f32 %v652_v18, %v638_v21 }
 0x110   : > { %v615_v26 = vadd.f32 %v614_v23, %v549_v19  ;;  %v654_v27 = vadd.f32 %v653_v24, %v639_v22 }
 0x112   : > { %v616_v28 = vrot.slane %v615_v26, 4  ;;  %v655_v29 = vadd.f32 %v654_v27, %v640_v25 }
 0x114   : > { %v617_v30 = vadd.f32 %v616_v28, %v615_v26  ;;  %v656_v31 = vrot.slane %v655_v29, 4 }
 0x116   : > { %v618_v32 = vrot.slane %v617_v30, 2  ;;  %v657_v34 = vadd.f32 %v656_v31, %v655_v29 }
 0x118   : > { %v619_v33 = vadd.f32 %v618_v32, %v617_v30  ;;  %v658_v35 = vrot.slane %v657_v34, 2 }
 0x11a   : > { %v620_v36 = vrot.slane %v619_v33, 1  ;;  %v659_v37 = vadd.f32 %v658_v35, %v657_v34 }
 0x11c   : > { %v621_v13 = vadd.f32 %v620_v36, %v619_v33  ;;  %v660_v39 = vrot.slane %v659_v37, 1 }
 0x11e   : > { %v622_v41 = vadd.f32 %v621_v13, %v600_v38  ;;  %v661_v42 = vadd.f32 %v660_v39, %v659_v37 }
 0x120   : > { %623 = vst [vmem:[#allocation2] sm:$0x1] %v622_v41  ;;  %v662_v43 = vadd.f32 %v661_v42, %v624_v40 }
 0x122   : > { %663 = vst [vmem:[#allocation3] sm:$0x1] %v662_v43 }
 0x123 PF: > { %p1323_p5 = scmp.ne.s32.totalorder %s1598_s21, 1 }
 0x124   : > { %v1534_v44 = vld [vmem:[%s2053_s1 + $0x4] ss:$8 sps:$4 sm:$0xff] (!%p1323_p5)   ;;  %v1536_v45 = vld [vmem:[%s2053_s1] ss:$8 sps:$4 sm:$0xff] (!%p1323_p5)   ;;  %v1609_v46 = vmov (!%p1323_p5), 0   ;;  %vm791_vm2 = vcmask (!%p1323_p5), 1041408   ;;  %v691_v4 = vlaneseq (!%p1323_p5) }
 0x125   : > { %667 = sbr.rel (%p1323_p5) target bundleno = 589 (0x24d), region = 52  ;;  %830 = vmatprep.mubr.bf16.mxu0 (!%p1323_p5), %v1609_v46  ;;  %870 = vmatprep.mubr.bf16.mxu1 (!%p1323_p5), %v1609_v46  ;;  %v1537_v47 = vld [vmem:[%s2053_s1 + $0x14] ss:$8 sps:$4 sm:$0xff] (!%p1323_p5)   ;;  %v688_v48 = vld [vmem:[%s2053_s1 + $0x20] sm:$0x33] (!%p1323_p5)  ;;  %vm766_vm3 = vcmask (!%p1323_p5), 293888  }
 0x126   : > { %798 = vmatprep.subr.bf16.mxu0 (!%p1323_p5), %v1534_v44  ;;  %1489 = vmatprep.subr.bf16.mxu1 (!%p1323_p5), %v1534_v44  ;;  %v1539_v49 = vld [vmem:[%s2053_s1 + $0x10] ss:$8 sps:$4 sm:$0xff] (!%p1323_p5)   ;;  %v1337_v50 = vcombine.high (!%p1323_p5), %v688_v48, %v688_v48  ;;  %v1336_v51 = vcombine.low (!%p1323_p5), %v688_v48, %v688_v48  ;;  %v1542_v53 = vld [vmem:[%s2052_s0] sm:$0xff] (!%p1323_p5)   ;;  %v1544_v55 = vld [vmem:[%s2052_s0 + $0x8] sm:$0xff] (!%p1323_p5)   ;;  %v692_v6 = vshrl.u32 (!%p1323_p5), %v691_v4, 7 }
 0x127   : > { %799 = vmatpush1.bf16.msra.mxu0 (!%p1323_p5), %v1536_v45  ;;  %1492 = vmatpush1.bf16.msra.mxu1 (!%p1323_p5), %v1536_v45  ;;  %v1543_v54 = vld [vmem:[%s2052_s0 + $0x20] sm:$0xff] (!%p1323_p5)   ;;  %v1545_v56 = vld [vmem:[%s2052_s0 + $0x28] sm:$0xff] (!%p1323_p5)   ;;  %v1546_v57 = vld [vmem:[%s2052_s0 + $0x10] sm:$0xff] (!%p1323_p5)  }
 0x128   : > { %800 = vmatprep.subr.bf16.mxu0 (!%p1323_p5), %v1537_v47  ;;  %1490 = vmatprep.subr.bf16.mxu1 (!%p1323_p5), %v1537_v47  ;;  %v793_v52 = vsel (!%p1323_p5), %vm791_vm2, %v1336_v51, 0  ;;  %v1547_v58 = vld [vmem:[%s2052_s0 + $0x30] sm:$0xff] (!%p1323_p5)   ;;  %v1548_v59 = vld [vmem:[%s2052_s0 + $0x18] sm:$0xff] (!%p1323_p5)   ;;  %v927_v61 = vld [vmem:[#allocation2] sm:$0x1] (!%p1323_p5)  ;;  %v693_v7 = vsub.s32 (!%p1323_p5), 0, %v692_v6 }
 0x129   : > { %v1549_v60 = vld [vmem:[%s2052_s0 + $0x38] sm:$0xff] (!%p1323_p5)   ;;  %v928_v62 = vmul.f32 (!%p1323_p5), 0.0078125, %v927_v61  ;;  %v929_v63 = vld [vmem:[#allocation3] sm:$0x1] (!%p1323_p5)  ;;  %v697_v9 = vsub.s32 (!%p1323_p5), 1, %v692_v6 }
 0x12a   : > { %v930_v0 = vmul.f32 (!%p1323_p5), 0.0078125, %v929_v63  ;;  %v689_v8 = vld [vmem:[%s2054_s2] sm:$0x3] (!%p1323_p5) }
 0x12b   : > { %801 = vmatpush1.bf16.msra.mxu0 (!%p1323_p5), %v1539_v49  ;;  %1493 = vmatpush1.bf16.msra.mxu1 (!%p1323_p5), %v1539_v49  ;;  %v931_v1 = vmul.f32 (!%p1323_p5), %v928_v62, %v928_v62  ;;  %v1779_v10 = vrot.slane (!%p1323_p5), %v689_v8, %v693_v7  ;;  %v1781_v11 = vrot.slane (!%p1323_p5), %v689_v8, %v697_v9  ;;  %v1806_v33 = vld [vmem:[%s2055_s3] ss:$0 sm:$0xff] (!%p1323_p5) }
 0x12c   : > { %1338 = vmatprep.subr.msk.bf16.mxu0 %vm791_vm2, %v1337_v50  ;;  %1491 = vmatprep.subr.msk.bf16.mxu1 %vm791_vm2, %v1337_v50  ;;  %v1783_v16 = vrot.slane %v928_v62, %v693_v7  ;;  %v1821_v13 = vld [vmem:[%s2056_s4] ss:$0 sm:$0xff] }
 0x12d   : > { %v932_v2 = vsub.f32 %v930_v0, %v931_v1 }
 0x12f   : > { %803 = vmatpush1.bf16.msra.mxu0 %v793_v52  ;;  %1494 = vmatpush1.bf16.msra.mxu1 %v793_v52  ;;  %v933_v3 = vmax.f32 %v932_v2, 0.0 }
 0x131   : > { %v956_v5 = vadd.f32 1e-05, %v933_v3 }
 0x132   : > { %1339 = vmatmul.mubr.msk.bf16.vlgmr.msra.gmra.mrb[0].mxu0 %vm766_vm3, %v1542_v53  ;;  %1343 = vmatmul.mubr.msk.bf16.vlgmr.msra.gmra.mrb[0].mxu1 %vm766_vm3, %v1543_v54 }
 0x133   : > { %840 = vmatprep.mubr.bf16.mxu0 %v1609_v46  ;;  %880 = vmatprep.mubr.bf16.mxu1 %v1609_v46  ;;  %1550 = vrsqrt.f32 %v956_v5 }
 0x13a   : > { %1340 = vmatmul.mubr.msk.bf16.gmra.mrb[4].mxu0 %vm766_vm3, %v1544_v55  ;;  %1344 = vmatmul.mubr.msk.bf16.gmra.mrb[4].mxu1 %vm766_vm3, %v1545_v56 }
 0x13b   : > { %850 = vmatprep.mubr.bf16.mxu0 %v1609_v46  ;;  %890 = vmatprep.mubr.bf16.mxu1 %v1609_v46 }
 0x13d   : > { %v1551_v12 = vpop.eup %1550 }
 0x13e   : > { %v1788_v22 = vrot.slane %v1551_v12, %v693_v7 }
 0x142   : > { %1341 = vmatmul.mubr.msk.bf16.gmra.mrb[8].mxu0 %vm766_vm3, %v1546_v57  ;;  %1345 = vmatmul.mubr.msk.bf16.gmra.mrb[8].mxu1 %vm766_vm3, %v1547_v58 }
 0x143   : > { %860 = vmatprep.mubr.bf16.mxu0 %v1609_v46  ;;  %900 = vmatprep.mubr.bf16.mxu1 %v1609_v46 }
 0x14a   : > { %1342 = vmatmul.mubr.msk.bf16.gmra.mrb[12].mxu0 %vm766_vm3, %v1548_v59  ;;  %1346 = vmatmul.mubr.msk.bf16.gmra.mrb[12].mxu1 %vm766_vm3, %v1549_v60 }
 0x205   : > { %v832_v14 = vpop.f32.mrb[0].mxu0  ;;  %v872_v15 = vpop.f32.mrb[0].mxu1 }
 0x206   : > { %v833_v17 = vadd.f32 %v832_v14, %v1779_v10  ;;  %v873_v18 = vadd.f32 %v872_v15, %v1779_v10  ;;  %v834_v19 = vpop.f32.mrb[1].mxu0  ;;  %v874_v20 = vpop.f32.mrb[1].mxu1 }
 0x207   : > { %v835_v21 = vadd.f32 %v834_v19, %v1781_v11  ;;  %v875_v23 = vadd.f32 %v874_v20, %v1781_v11  ;;  %v836_v24 = vpop.f32.mrb[2].mxu0  ;;  %v876_v25 = vpop.f32.mrb[2].mxu1 }
 0x208   : > { %911 = vst [vmem:[%s2057_s5] sm:$0xff] %v833_v17  ;;  %919 = vst [vmem:[%s2057_s5 + $0x40] sm:$0xff] %v873_v18  ;;  %v837_v26 = vadd.f32 %v836_v24, %v1779_v10  ;;  %v877_v27 = vadd.f32 %v876_v25, %v1779_v10  ;;  %v838_v28 = vpop.f32.mrb[3].mxu0  ;;  %v878_v29 = vpop.f32.mrb[3].mxu1 }
 0x209   : > { %v940_v30 = vsub.f32 %v835_v21, %v1783_v16  ;;  %v948_v31 = vsub.f32 %v875_v23, %v1783_v16  ;;  %v839_v32 = vadd.f32 %v838_v28, %v1781_v11  ;;  %v879_v34 = vadd.f32 %v878_v29, %v1781_v11 }
 0x20a   : > { %912 = vst [vmem:[%s2057_s5 + $0x8] sm:$0xff] %v837_v26  ;;  %920 = vst [vmem:[%s2057_s5 + $0x48] sm:$0xff] %v877_v27 }
 0x20b   : > { %v964_v35 = vmul.f32 %v1788_v22, %v940_v30  ;;  %v972_v36 = vmul.f32 %v1788_v22, %v948_v31  ;;  %v941_v37 = vsub.f32 %v839_v32, %v1783_v16  ;;  %v949_v38 = vsub.f32 %v879_v34, %v1783_v16 }
 0x20d   : > { %v987_v39 = vmul.f32 %v1806_v33, %v964_v35  ;;  %v995_v40 = vmul.f32 %v1806_v33, %v972_v36  ;;  %v965_v41 = vmul.f32 %v1788_v22, %v941_v37  ;;  %v973_v42 = vmul.f32 %v1788_v22, %v949_v38  ;;  %v842_v43 = vpop.f32.mrb[4].mxu0  ;;  %v882_v44 = vpop.f32.mrb[4].mxu1 }
 0x20e   : > { %v843_v45 = vadd.f32 %v842_v43, %v1779_v10  ;;  %v883_v46 = vadd.f32 %v882_v44, %v1779_v10  ;;  %v844_v47 = vpop.f32.mrb[5].mxu0  ;;  %v884_v48 = vpop.f32.mrb[5].mxu1 }
 0x20f   : > { %v1830_v49 = vadd.f32 %v1821_v13, %v987_v39  ;;  %v1833_v50 = vadd.f32 %v1821_v13, %v995_v40  ;;  %v988_v51 = vmul.f32 %v1806_v33, %v965_v41  ;;  %v996_v52 = vmul.f32 %v1806_v33, %v973_v42  ;;  %v846_v53 = vpop.f32.mrb[6].mxu0  ;;  %v886_v54 = vpop.f32.mrb[6].mxu1 }
 0x210   : > { %913 = vst [vmem:[%s2057_s5 + $0x10] sm:$0xff] %v843_v45  ;;  %921 = vst [vmem:[%s2057_s5 + $0x50] sm:$0xff] %v883_v46  ;;  %v845_v55 = vadd.f32 %v844_v47, %v1781_v11  ;;  %v885_v56 = vadd.f32 %v884_v48, %v1781_v11  ;;  %v847_v57 = vadd.f32 %v846_v53, %v1779_v10  ;;  %v848_v59 = vpop.f32.mrb[7].mxu0  ;;  %v888_v60 = vpop.f32.mrb[7].mxu1 }
 0x211   : > { %v887_v58 = vadd.f32 %v886_v54, %v1779_v10  ;;  %v1042_v61 = vmin.f32 %v1830_v49, 0.0  ;;  %v1050_v62 = vmin.f32 %v1833_v50, 0.0  ;;  %v1850_v63 = vadd.f32 %v1821_v13, %v988_v51 }
 0x212   : > { %v1853_v0 = vadd.f32 %v1821_v13, %v996_v52  ;;  %v942_v1 = vsub.f32 %v845_v55, %v1783_v16  ;;  %v950_v2 = vsub.f32 %v885_v56, %v1783_v16  ;;  %914 = vst [vmem:[%s2057_s5 + $0x18] sm:$0xff] %v847_v57  ;;  %v849_v5 = vadd.f32 %v848_v59, %v1781_v11 }
 0x213   : > { %922 = vst [vmem:[%s2057_s5 + $0x58] sm:$0xff] %v887_v58  ;;  %v1058_v3 = vmul.f32 1.442695, %v1042_v61  ;;  %v1074_v4 = vmul.f32 1.442695, %v1050_v62  ;;  %v889_v6 = vadd.f32 %v888_v60, %v1781_v11  ;;  %v1043_v7 = vmin.f32 %v1850_v63, 0.0 }
 0x214   : > { %v1051_v8 = vmin.f32 %v1853_v0, 0.0  ;;  %v966_v9 = vmul.f32 %v1788_v22, %v942_v1  ;;  %v974_v12 = vmul.f32 %v1788_v22, %v950_v2  ;;  %v943_v14 = vsub.f32 %v849_v5, %v1783_v16 }
 0x215   : > { %1552 = vpow2.f32 %v1058_v3  ;;  %v852_v15 = vpop.f32.mrb[8].mxu0  ;;  %v892_v17 = vpop.f32.mrb[8].mxu1  ;;  %v1060_v18 = vmul.f32 1.442695, %v1043_v7  ;;  %v951_v20 = vsub.f32 %v889_v6, %v1783_v16  ;;  %vm1026_vm4 = vcmp.gt.f32.partialorder %v1830_v49, 0.0 }
 0x216   : > { %1554 = vpow2.f32 %v1074_v4  ;;  %v1076_v19 = vmul.f32 1.442695, %v1051_v8  ;;  %v854_v21 = vpop.f32.mrb[9].mxu0  ;;  %v894_v23 = vpop.f32.mrb[9].mxu1  ;;  %v989_v24 = vmul.f32 %v1806_v33, %v966_v9  ;;  %v997_v25 = vmul.f32 %v1806_v33, %v974_v12 }
 0x217   : > { %v967_v26 = vmul.f32 %v1788_v22, %v943_v14  ;;  %v853_v27 = vadd.f32 %v852_v15, %v1779_v10  ;;  %v856_v28 = vpop.f32.mrb[10].mxu0  ;;  %v896_v29 = vpop.f32.mrb[10].mxu1  ;;  %1556 = vpow2.f32 %v1060_v18  ;;  %v975_v30 = vmul.f32 %v1788_v22, %v951_v20 }
 0x218   : > { %v893_v31 = vadd.f32 %v892_v17, %v1779_v10  ;;  %v855_v32 = vadd.f32 %v854_v21, %v1781_v11  ;;  %v858_v34 = vpop.f32.mrb[11].mxu0  ;;  %v898_v35 = vpop.f32.mrb[11].mxu1  ;;  %1558 = vpow2.f32 %v1076_v19  ;;  %v1879_v36 = vadd.f32 %v1821_v13, %v989_v24 }
 0x219   : > { %v1882_v37 = vadd.f32 %v1821_v13, %v997_v25  ;;  %v990_v38 = vmul.f32 %v1806_v33, %v967_v26  ;;  %915 = vst [vmem:[%s2057_s5 + $0x20] sm:$0xff] %v853_v27  ;;  %v998_v39 = vmul.f32 %v1806_v33, %v975_v30  ;;  %v895_v41 = vadd.f32 %v894_v23, %v1781_v11 }
 0x21a   : > { %923 = vst [vmem:[%s2057_s5 + $0x60] sm:$0xff] %v893_v31  ;;  %v944_v40 = vsub.f32 %v855_v32, %v1783_v16  ;;  %v857_v42 = vadd.f32 %v856_v28, %v1779_v10  ;;  %v1044_v43 = vmin.f32 %v1879_v36, 0.0  ;;  %v897_v53 = vadd.f32 %v896_v29, %v1779_v10 }
 0x21b   : > { %v1052_v44 = vmin.f32 %v1882_v37, 0.0  ;;  %v1898_v45 = vadd.f32 %v1821_v13, %v990_v38  ;;  %v1901_v46 = vadd.f32 %v1821_v13, %v998_v39  ;;  %v952_v48 = vsub.f32 %v895_v41, %v1783_v16 }
 0x21c   : > { %v968_v47 = vmul.f32 %v1788_v22, %v944_v40  ;;  %916 = vst [vmem:[%s2057_s5 + $0x28] sm:$0xff] %v857_v42  ;;  %v1062_v51 = vmul.f32 1.442695, %v1044_v43  ;;  %v859_v54 = vadd.f32 %v858_v34, %v1781_v11  ;;  %vm1034_vm5 = vcmp.gt.f32.partialorder %v1833_v50, 0.0  ;;  %924 = vst [vmem:[%s2057_s5 + $0x68] sm:$0xff] %v897_v53 }
 0x21d   : > { %v1078_v52 = vmul.f32 1.442695, %v1052_v44  ;;  %v862_v55 = vpop.f32.mrb[12].mxu0  ;;  %v902_v56 = vpop.f32.mrb[12].mxu1  ;;  %v1045_v57 = vmin.f32 %v1898_v45, 0.0  ;;  %v1053_v58 = vmin.f32 %v1901_v46, 0.0  ;;  %v976_v1 = vmul.f32 %v1788_v22, %v952_v48 }
 0x21e   : > { %v864_v59 = vpop.f32.mrb[13].mxu0  ;;  %v904_v60 = vpop.f32.mrb[13].mxu1  ;;  %1560 = vpow2.f32 %v1062_v51  ;;  %v991_v62 = vmul.f32 %v1806_v33, %v968_v47  ;;  %v945_v2 = vsub.f32 %v859_v54, %v1783_v16  ;;  %vm1027_vm6 = vcmp.gt.f32.partialorder %v1850_v63, 0.0 }
 0x21f   : > { %v1553_v61 = vpop.eup %1552  ;;  %v866_v3 = vpop.f32.mrb[14].mxu0  ;;  %1562 = vpow2.f32 %v1078_v52  ;;  %v1064_v7 = vmul.f32 1.442695, %v1045_v57  ;;  %v1080_v8 = vmul.f32 1.442695, %v1053_v58  ;;  %v999_v14 = vmul.f32 %v1806_v33, %v976_v1 }
 0x220   : > { %v906_v4 = vpop.f32.mrb[14].mxu1  ;;  %v1555_v5 = vpop.eup %1554  ;;  %v1349_v6 = vadd.f32 -1.0, %v1553_v61  ;;  %v1922_v12 = vadd.f32 %v1821_v13, %v991_v62  ;;  %v969_v15 = vmul.f32 %v1788_v22, %v945_v2  ;;  %v899_v20 = vadd.f32 %v898_v35, %v1781_v11 }
 0x221   : > { %v868_v9 = vpop.f32.mrb[15].mxu0  ;;  %v1926_v17 = vpop.f32.mrb[15].mxu1  ;;  %v1357_v19 = vadd.f32 -1.0, %v1555_v5  ;;  %1564 = vpow2.f32 %v1064_v7  ;;  %v863_v21 = vadd.f32 %v862_v55, %v1779_v10  ;;  %vm1035_vm7 = vcmp.gt.f32.partialorder %v1853_v0, 0.0 }
 0x222   : > { %v1557_v18 = vpop.eup %1556  ;;  %v1106_v24 = vsel %vm1026_vm4, %v1830_v49, %v1349_v6  ;;  %1566 = vpow2.f32 %v1080_v8  ;;  %v1046_v27 = vmin.f32 %v1922_v12, 0.0  ;;  %v1936_v28 = vadd.f32 %v1821_v13, %v999_v14 }
 0x223   : > { %v1559_v23 = vpop.eup %1558  ;;  %v1350_v25 = vadd.f32 -1.0, %v1557_v18  ;;  %v992_v29 = vmul.f32 %v1806_v33, %v969_v15  ;;  %917 = vst [vmem:[%s2057_s5 + $0x30] sm:$0xff] %v863_v21  ;;  %v953_v30 = vsub.f32 %v899_v20, %v1783_v16  ;;  %v903_v31 = vadd.f32 %v902_v56, %v1779_v10 }
 0x224   : > { %v1358_v26 = vadd.f32 -1.0, %v1559_v23  ;;  %v865_v32 = vadd.f32 %v864_v59, %v1781_v11  ;;  %v1114_v34 = vsel %vm1034_vm5, %v1833_v50, %v1357_v19  ;;  %v1066_v39 = vmul.f32 1.442695, %v1046_v27 }
 0x225   : > { %v1107_v49 = vsel %vm1027_vm6, %v1850_v63, %v1350_v25  ;;  %v1054_v41 = vmin.f32 %v1936_v28, 0.0  ;;  %v1954_v42 = vadd.f32 %v1821_v13, %v992_v29  ;;  %v977_v63 = vmul.f32 %v1788_v22, %v953_v30  ;;  %925 = vst [vmem:[%s2057_s5 + $0x70] sm:$0xff] %v903_v31 }
 0x226   : > { %v1406_v35 = vpack.c.bf16 %v1107_v49, %v1106_v24  ;;  %v1115_v38 = vsel %vm1035_vm7, %v1853_v0, %v1358_v26  ;;  %vm1028_vm8 = vcmp.gt.f32.partialorder %v1879_v36, 0.0  ;;  %v946_v50 = vsub.f32 %v865_v32, %v1783_v16 }
 0x227   : > { %v1426_v40 = vpack.c.bf16 %v1115_v38, %v1114_v34  ;;  %v905_v0 = vadd.f32 %v904_v60, %v1781_v11  ;;  %v867_v43 = vadd.f32 %v866_v3, %v1779_v10  ;;  %1568 = vpow2.f32 %v1066_v39 }
 0x228   : > { %1407 = vst [vmem:[%s2058_s6] sm:$0xff] %v1406_v35   ;;  %v1561_v44 = vpop.eup %1560  ;;  %v1082_v47 = vmul.f32 1.442695, %v1054_v41  ;;  %v1047_v48 = vmin.f32 %v1954_v42, 0.0  ;;  %v1000_v51 = vmul.f32 %v1806_v33, %v977_v63  ;;  %vm1036_vm9 = vcmp.gt.f32.partialorder %v1882_v37, 0.0 }
 0x229   : > { %1446 = vst [vmem:[%s2058_s6 + $0x20] sm:$0xff] %v1426_v40   ;;  %v1563_v52 = vpop.eup %1562  ;;  %v970_v53 = vmul.f32 %v1788_v22, %v946_v50  ;;  %v954_v54 = vsub.f32 %v905_v0, %v1783_v16  ;;  %918 = vst [vmem:[%s2057_s5 + $0x38] sm:$0xff] %v867_v43  ;;  %v907_v55 = vadd.f32 %v906_v4, %v1779_v10  ;;  %v1351_v56 = vadd.f32 -1.0, %v1561_v44 }
 0x22a   : > { %v1359_v57 = vadd.f32 -1.0, %v1563_v52  ;;  %v1068_v58 = vmul.f32 1.442695, %v1047_v48  ;;  %v1980_v59 = vadd.f32 %v1821_v13, %v1000_v51  ;;  %1570 = vpow2.f32 %v1082_v47 }
 0x22b   : > { %v1565_v60 = vpop.eup %1564  ;;  %v993_v61 = vmul.f32 %v1806_v33, %v970_v53  ;;  %v978_v62 = vmul.f32 %v1788_v22, %v954_v54  ;;  %926 = vst [vmem:[%s2057_s5 + $0x78] sm:$0xff] %v907_v55  ;;  %v869_v1 = vadd.f32 %v868_v9, %v1781_v11  ;;  %vm1029_vm10 = vcmp.gt.f32.partialorder %v1898_v45, 0.0 }
 0x22c   : > { %v1567_v2 = vpop.eup %1566  ;;  %v1352_v10 = vadd.f32 -1.0, %v1565_v60  ;;  %vm1037_vm11 = vcmp.gt.f32.partialorder %v1901_v46, 0.0  ;;  %1572 = vpow2.f32 %v1068_v58  ;;  %v1055_v4 = vmin.f32 %v1980_v59, 0.0 }
 0x22d   : > { %v1360_v3 = vadd.f32 -1.0, %v1567_v2  ;;  %v1992_v5 = vadd.f32 %v1821_v13, %v993_v61  ;;  %v1001_v6 = vmul.f32 %v1806_v33, %v978_v62  ;;  %v1108_v7 = vsel %vm1028_vm8, %v1879_v36, %v1351_v56 }
 0x22e   : > { %v1109_v8 = vsel %vm1029_vm10, %v1898_v45, %v1352_v10  ;;  %v947_v9 = vsub.f32 %v869_v1, %v1783_v16  ;;  %v909_v14 = vadd.f32 %v1926_v17, %v1781_v11  ;;  %v1116_v15 = vsel %vm1036_vm9, %v1882_v37, %v1359_v57 }
 0x22f   : > { %v1411_v18 = vpack.c.bf16 %v1109_v8, %v1108_v7  ;;  %v1117_v19 = vsel %vm1037_vm11, %v1901_v46, %v1360_v3  ;;  %v1084_v20 = vmul.f32 1.442695, %v1055_v4  ;;  %v1048_v23 = vmin.f32 %v1992_v5, 0.0 }
 0x230   : > { %v1431_v21 = vpack.c.bf16 %v1117_v19, %v1116_v15  ;;  %v1024_v36 = vadd.f32 %v1821_v13, %v1001_v6  ;;  %v971_v45 = vmul.f32 %v1788_v22, %v947_v9  ;;  %v955_v11 = vsub.f32 %v909_v14, %v1783_v16 }
 0x231   : > { %1443 = vst [vmem:[%s2058_s6 + $0x8] sm:$0xff] %v1411_v18   ;;  %1574 = vpow2.f32 %v1084_v20  ;;  %v1569_v17 = vpop.eup %1568  ;;  %v1070_v46 = vmul.f32 1.442695, %v1048_v23  ;;  %vm1030_vm12 = vcmp.gt.f32.partialorder %v1922_v12, 0.0  ;;  %vm1031_vm13 = vcmp.gt.f32.partialorder %v1954_v42, 0.0 }
 0x232   : > { %1447 = vst [vmem:[%s2058_s6 + $0x28] sm:$0xff] %v1431_v21   ;;  %v1056_v37 = vmin.f32 %v1024_v36, 0.0  ;;  %v994_v24 = vmul.f32 %v1806_v33, %v971_v45  ;;  %v979_v25 = vmul.f32 %v1788_v22, %v955_v11  ;;  %v1353_v27 = vadd.f32 -1.0, %v1569_v17 }
 0x233   : > { %1576 = vpow2.f32 %v1070_v46  ;;  %vm1038_vm14 = vcmp.gt.f32.partialorder %v1936_v28, 0.0  ;;  %vm1039_vm15 = vcmp.gt.f32.partialorder %v1980_v59, 0.0  ;;  %vm1032_vm0 = vcmp.gt.f32.partialorder %v1992_v5, 0.0 }
 0x234   : > { %v1571_v26 = vpop.eup %1570  ;;  %v1017_v29 = vadd.f32 %v1821_v13, %v994_v24  ;;  %v1002_v49 = vmul.f32 %v1806_v33, %v979_v25  ;;  %v1086_v31 = vmul.f32 1.442695, %v1056_v37  ;;  %v1110_v35 = vsel %vm1030_vm12, %v1922_v12, %v1353_v27 }
 0x235   : > { %v1361_v39 = vadd.f32 -1.0, %v1571_v26  ;;  %vm1040_vm2 = vcmp.gt.f32.partialorder %v1024_v36, 0.0 }
 0x236   : > { %v1573_v30 = vpop.eup %1572  ;;  %v1049_v32 = vmin.f32 %v1017_v29, 0.0  ;;  %v1025_v34 = vadd.f32 %v1821_v13, %v1002_v49  ;;  %1578 = vpow2.f32 %v1086_v31  ;;  %vm1033_vm1 = vcmp.gt.f32.partialorder %v1017_v29, 0.0 }
 0x237   : > { %v1354_v16 = vadd.f32 -1.0, %v1573_v30  ;;  %v1118_v13 = vsel %vm1038_vm14, %v1936_v28, %v1361_v39 }
 0x238   : > { %v1072_v38 = vmul.f32 1.442695, %v1049_v32  ;;  %v1057_v33 = vmin.f32 %v1025_v34, 0.0  ;;  %vm1041_vm3 = vcmp.gt.f32.partialorder %v1025_v34, 0.0 }
 0x239   : > { %v1111_v22 = vsel %vm1031_vm13, %v1954_v42, %v1354_v16 }
 0x23a   : > { %v1416_v40 = vpack.c.bf16 %v1111_v22, %v1110_v35  ;;  %1580 = vpow2.f32 %v1072_v38  ;;  %v1088_v50 = vmul.f32 1.442695, %v1057_v33 }
 0x23b   : > { %v1575_v41 = vpop.eup %1574 }
 0x23c   : > { %1444 = vst [vmem:[%s2058_s6 + $0x10] sm:$0xff] %v1416_v40   ;;  %v1362_v63 = vadd.f32 -1.0, %v1575_v41  ;;  %1582 = vpow2.f32 %v1088_v50 }
 0x23d   : > { %v1577_v0 = vpop.eup %1576 }
 0x23e   : > { %v1119_v12 = vsel %vm1039_vm15, %v1980_v59, %v1362_v63  ;;  %v1355_v44 = vadd.f32 -1.0, %v1577_v0 }
 0x23f   : > { %v1436_v42 = vpack.c.bf16 %v1119_v12, %v1118_v13 }
 0x240   : > { %v1579_v43 = vpop.eup %1578  ;;  %v1112_v28 = vsel %vm1032_vm0, %v1992_v5, %v1355_v44 }
 0x241   : > { %1448 = vst [vmem:[%s2058_s6 + $0x30] sm:$0xff] %v1436_v42   ;;  %v1363_v51 = vadd.f32 -1.0, %v1579_v43 }
 0x243   : > { %v1120_v56 = vsel %vm1040_vm2, %v1024_v36, %v1363_v51 }
 0x244   : > { %v1581_v47 = vpop.eup %1580 }
 0x245   : > { %v1356_v48 = vadd.f32 -1.0, %v1581_v47 }
 0x246   : > { %v1583_v52 = vpop.eup %1582 }
 0x247   : > { %v1113_v53 = vsel %vm1033_vm1, %v1017_v29, %v1356_v48  ;;  %v1364_v55 = vadd.f32 -1.0, %v1583_v52 }
 0x248   : > { %v1421_v54 = vpack.c.bf16 %v1113_v53, %v1112_v28 }
 0x249   : > { %v1121_v57 = vsel %vm1041_vm3, %v1025_v34, %v1364_v55 }
 0x24a   : > { %1445 = vst [vmem:[%s2058_s6 + $0x18] sm:$0xff] %v1421_v54   ;;  %v1441_v58 = vpack.c.bf16 %v1121_v57, %v1120_v56 }
 0x24c   : > { %1449 = vst [vmem:[%s2058_s6 + $0x38] sm:$0xff] %v1441_v58  }
 0x24d PF: > { %s17_s23 = sadd.s32 1, %s1606_s23   ;;  %s2059_s21 = smov %s1602_s22 }
 0x24e   : > { %p14_p6 = scmp.ge.s32.totalorder %s17_s23, 4   ;;  %s2060_s22 = smov %s2062_s24 }
 0x250   :  { %16 = sbr.rel (!%p14_p6) target bundleno = 2 (0x2), region = 94 }

// kernel: vae_forward_pallas.6
= control target key start
LH: loop header
LB: loop body
LE: loop exit
PB: predicated region body
PF: predicated region fallthrough
CT: control target
= control target key end

     0   :  { %s3598_s24 = smov 0   ;;  %s3600_s25 = smov 0   ;;  %s5036_s0 = inlined_call_operand.vmem [shape: bf16[352,12], index: 0, kind: input, shape index: {}]   ;;  %s5037_s1 = inlined_call_operand.vmem [shape: bf16[3,12,128], index: 1, kind: input, shape index: {}]   ;;  %s5038_s2 = inlined_call_operand.vmem [shape: f32[1,128], index: 2, kind: input, shape index: {}]   ;;  %s5039_s3 = inlined_call_operand.vmem [shape: f32[320,128], index: 3, kind: input, shape index: {}]   ;;  %s5040_s4 = inlined_call_operand.vmem [shape: f32[320,1], index: 4, kind: input, shape index: {}]   ;;  %s5041_s5 = inlined_call_operand.vmem [shape: f32[1,128], index: 5, kind: input, shape index: {}]   ;;  %s5042_s6 = inlined_call_operand.vmem [shape: f32[1,128], index: 6, kind: input, shape index: {}]   ;;  %s5043_s7 = inlined_call_operand.vmem [shape: f32[320,128], index: 7, kind: output, shape index: {}]  }
   0x1   :  { %s3602_s26 = smov 0  }
   0x2 LB: > { %s29_s27 = sadd.s32 1, %s3550_s25  ;;  %p2787_p0 = scmp.ge.s32.totalorder %s3554_s26, 1  ;;  %s3554_s26 = sphi %s3602_s26, %s17_s26   ;;  %s3550_s25 = sphi %s3600_s25, %s5069_s25   ;;  %s3546_s24 = sphi %s3598_s24, %s5068_s24  }
   0x3   : > { %p31_p1 = scmp.ge.s32.totalorder %s29_s27, 2  ;;  %p261_p2 = scmp.lt.s32.totalorder %s3554_s26, 3 }
   0x5   : > { %s5071_s27 = smov (%p31_p1, %s29_s27), 0  ;;  %p262_p3 = pnand %p2787_p0, %p261_p2 }
   0x7   : > { %265 = sbr.rel (%p262_p3) target bundleno = 708 (0x2c4), region = 48 }
   0xe   : > { %v3385_v0 = vld [vmem:[%s5037_s1] sm:$0x3f]   ;;  %vm618_vm0 = vcmask 1045504   ;;  %v3386_v2 = vld [vmem:[%s5037_s1 + $0x8] sm:$0x3f]   ;;  %vm557_vm1 = vcmask 97280  }
   0xf   : > { %v3387_v1 = vld [vmem:[%s5036_s0] sm:$0xff]   ;;  %3355 = vmatprep.subr.msk.bf16.mxu1 %vm618_vm0, %v3385_v0  ;;  %v620_v3 = vsel %vm618_vm0, %v3385_v0, 0  ;;  %3356 = vmatprep.subr.msk.bf16.mxu0 %vm618_vm0, %v3386_v2  ;;  %v1068_v4 = vsel %vm618_vm0, %v3386_v2, 0  ;;  %v3388_v5 = vld [vmem:[%s5036_s0 + $0x8] sm:$0xff]   ;;  %v3390_v7 = vld [vmem:[%s5036_s0 + $0x10] sm:$0xff]   ;;  %p2996_p4 = scmp.ne.s32.totalorder %s3546_s24, 0 }
  0x10   : > { %3108 = vmatpush3.bf16.msra.mxu1 %v620_v3  ;;  %3109 = vmatprep.mubr.msk.bf16.mxu1 %vm557_vm1, %v3387_v1  ;;  %v3389_v6 = vld [vmem:[%s5036_s0 + $0x8] sm:$0xff]   ;;  %v3391_v8 = vld [vmem:[%s5037_s1 + $0x10] sm:$0x3f]   ;;  %v3393_v11 = vld [vmem:[%s5036_s0 + $0x18] sm:$0xff]  }
  0x11   : > { %3357 = vmatprep.subr.msk.bf16.mxu1 %vm618_vm0, %v3386_v2  ;;  %3150 = vmatpush3.bf16.msra.mxu0 %v1068_v4  ;;  %v3392_v9 = vld [vmem:[%s5036_s0 + $0x10] sm:$0xff]   ;;  %v1517_v10 = vsel %vm618_vm0, %v3391_v8, 0  ;;  %v3394_v12 = vld [vmem:[%s5036_s0 + $0x18] sm:$0xff]   ;;  %v3395_v13 = vld [vmem:[%s5036_s0 + $0x20] sm:$0xff]  }
  0x12   : > { %3151 = vmatprep.mubr.msk.bf16.mxu0 %vm557_vm1, %v3388_v5  ;;  %3358 = vmatprep.subr.msk.bf16.mxu0 %vm618_vm0, %v3391_v8  ;;  %v3396_v14 = vld [vmem:[%s5036_s0 + $0x20] sm:$0xff]   ;;  %v3397_v15 = vld [vmem:[%s5036_s0 + $0x28] sm:$0xff]   ;;  %v3399_v17 = vld [vmem:[%s5036_s0 + $0x30] sm:$0xff]  }
  0x13   : > { %3110 = vmatmul.mubr.msk.bf16.vlgmr.msra.gmra.mrb[0].mxu1 %vm557_vm1, %v3389_v6  ;;  %v3398_v16 = vld [vmem:[%s5036_s0 + $0x28] sm:$0xff]   ;;  %v3400_v18 = vld [vmem:[%s5036_s0 + $0x30] sm:$0xff]   ;;  %v3401_v19 = vld [vmem:[%s5036_s0 + $0x38] sm:$0xff]  }
  0x14   : > { %3152 = vmatmul.mubr.msk.bf16.vlgmr.msra.gmra.mrb[0].mxu0 %vm557_vm1, %v3390_v7  ;;  %3234 = vmatpush3.bf16.msra.mxu1 %v1068_v4  ;;  %v3402_v20 = vld [vmem:[%s5036_s0 + $0x38] sm:$0xff]   ;;  %v3403_v21 = vld [vmem:[%s5036_s0 + $0x40] sm:$0xff]   ;;  %v3405_v23 = vld [vmem:[%s5036_s0 + $0x48] sm:$0xff]  }
  0x15   : > { %3192 = vmatpush3.bf16.msra.mxu0 %v1517_v10  ;;  %3113 = vmatprep.mubr.msk.bf16.mxu1 %vm557_vm1, %v3392_v9  ;;  %v3404_v22 = vld [vmem:[%s5036_s0 + $0x40] sm:$0xff]   ;;  %v3406_v24 = vld [vmem:[%s5036_s0 + $0x48] sm:$0xff]   ;;  %v3407_v25 = vld [vmem:[%s5036_s0 + $0x50] sm:$0xff]  }
  0x16   : > { %3155 = vmatprep.mubr.msk.bf16.mxu0 %vm557_vm1, %v3393_v11  ;;  %v3408_v26 = vld [vmem:[%s5036_s0 + $0x50] sm:$0xff]   ;;  %v3410_v28 = vld [vmem:[%s5036_s0 + $0x58] sm:$0xff]   ;;  %v3412_v30 = vld [vmem:[%s5036_s0 + $0x60] sm:$0xff]  }
  0x17   : > { %v3409_v27 = vld [vmem:[%s5036_s0 + $0x10] sm:$0xff]   ;;  %v3411_v29 = vld [vmem:[%s5036_s0 + $0x18] sm:$0xff]   ;;  %v3413_v31 = vld [vmem:[%s5036_s0 + $0x20] sm:$0xff]  }
  0x18   : > { %v3414_v32 = vld [vmem:[%s5036_s0 + $0x68] sm:$0xff]   ;;  %v3416_v34 = vld [vmem:[%s5036_s0 + $0x70] sm:$0xff]   ;;  %v3418_v36 = vld [vmem:[%s5036_s0 + $0x78] sm:$0xff]  }
  0x19   : > { %v3415_v33 = vld [vmem:[%s5036_s0 + $0x28] sm:$0xff]   ;;  %v3417_v35 = vld [vmem:[%s5036_s0 + $0x30] sm:$0xff]   ;;  %v3419_v37 = vld [vmem:[%s5036_s0 + $0x38] sm:$0xff]  }
  0x1a   : > { %v3420_v38 = vld [vmem:[%s5036_s0 + $0x80] sm:$0xff]   ;;  %v3422_v40 = vld [vmem:[%s5036_s0 + $0x88] sm:$0xff]   ;;  %v3424_v42 = vld [vmem:[%s5036_s0 + $0x90] sm:$0xff]  }
  0x1b   : > { %3114 = vmatmul.mubr.msk.bf16.gmra.mrb[4].mxu1 %vm557_vm1, %v3394_v12  ;;  %v3421_v39 = vld [vmem:[%s5036_s0 + $0x40] sm:$0xff]   ;;  %v3423_v41 = vld [vmem:[%s5036_s0 + $0x48] sm:$0xff]   ;;  %v3425_v43 = vld [vmem:[%s5036_s0 + $0x50] sm:$0xff]  }
  0x1c   : > { %3156 = vmatmul.mubr.msk.bf16.gmra.mrb[4].mxu0 %vm557_vm1, %v3395_v13  ;;  %3117 = vmatprep.mubr.msk.bf16.mxu1 %vm557_vm1, %v3396_v14  ;;  %v3426_v44 = vld [vmem:[%s5036_s0 + $0x98] sm:$0xff]   ;;  %v3429_v47 = vld [vmem:[%s5036_s0 + $0x60] sm:$0xff]   ;;  %v3431_v49 = vld [vmem:[%s5036_s0 + $0x68] sm:$0xff]  }
  0x1d   : > { %3159 = vmatprep.mubr.msk.bf16.mxu0 %vm557_vm1, %v3397_v15  ;;  %v3427_v45 = vld [vmem:[%s5036_s0 + $0x58] sm:$0xff]   ;;  %v3430_v48 = vld [vmem:[%s5036_s0 + $0x60] sm:$0xff]   ;;  %v3432_v50 = vld [vmem:[%s5036_s0 + $0x68] sm:$0xff]  }
  0x1e   : > { %v3428_v46 = vld [vmem:[%s5036_s0 + $0x58] sm:$0xff]   ;;  %v3433_v51 = vld [vmem:[%s5036_s0 + $0x70] sm:$0xff]   ;;  %v3437_v55 = vld [vmem:[%s5036_s0 + $0x80] sm:$0xff]  }
  0x1f   : > { %v3434_v52 = vld [vmem:[%s5036_s0 + $0x70] sm:$0xff]   ;;  %v3435_v53 = vld [vmem:[%s5036_s0 + $0x78] sm:$0xff]   ;;  %v3438_v56 = vld [vmem:[%s5036_s0 + $0x80] sm:$0xff]  }
  0x20   : > { %v3436_v54 = vld [vmem:[%s5036_s0 + $0x78] sm:$0xff]   ;;  %v3439_v57 = vld [vmem:[%s5036_s0 + $0x88] sm:$0xff]   ;;  %v3441_v59 = vld [vmem:[%s5036_s0 + $0x90] sm:$0xff]  }
  0x21   : > { %v3440_v58 = vld [vmem:[%s5036_s0 + $0x88] sm:$0xff]   ;;  %v3442_v60 = vld [vmem:[%s5036_s0 + $0x90] sm:$0xff]   ;;  %v3443_v61 = vld [vmem:[%s5036_s0 + $0x98] sm:$0xff]  }
  0x22   : > { %v3444_v62 = vld [vmem:[%s5036_s0 + $0x98] sm:$0xff]   ;;  %v3445_v63 = vld [vmem:[%s5036_s0 + $0xa0] sm:$0xff]   ;;  %v3447_v1 = vld [vmem:[%s5036_s0 + $0xa8] sm:$0xff]  }
  0x23   : > { %3118 = vmatmul.mubr.msk.bf16.gmra.mrb[8].mxu1 %vm557_vm1, %v3398_v16  ;;  %v3446_v0 = vld [vmem:[%s5036_s0 + $0xa0] sm:$0xff]  }
  0x24   : > { %3160 = vmatmul.mubr.msk.bf16.gmra.mrb[8].mxu0 %vm557_vm1, %v3399_v17  ;;  %3121 = vmatprep.mubr.msk.bf16.mxu1 %vm557_vm1, %v3400_v18 }
  0x25   : > { %3163 = vmatprep.mubr.msk.bf16.mxu0 %vm557_vm1, %v3401_v19  ;;  %v321_v19 = vld [vmem:[%s5039_s3 + $0x10] sm:$0xff] }
  0x2b   : > { %3122 = vmatmul.mubr.msk.bf16.gmra.mrb[12].mxu1 %vm557_vm1, %v3402_v20  ;;  %v3894_v20 = vld [vmem:[%s5038_s2] ss:$0 sm:$0xff] }
  0x2c   : > { %3164 = vmatmul.mubr.msk.bf16.gmra.mrb[12].mxu0 %vm557_vm1, %v3403_v21  ;;  %3125 = vmatprep.mubr.msk.bf16.mxu1 %vm557_vm1, %v3404_v22  ;;  %v319_v22 = vld [vmem:[%s5039_s3] sm:$0xff] }
  0x2d   : > { %3167 = vmatprep.mubr.msk.bf16.mxu0 %vm557_vm1, %v3405_v23 }
  0x33   : > { %3126 = vmatmul.mubr.msk.bf16.gmra.mrb[16].mxu1 %vm557_vm1, %v3406_v24  ;;  %v322_v24 = vld [vmem:[%s5039_s3 + $0x18] sm:$0xff] }
  0x34   : > { %3168 = vmatmul.mubr.msk.bf16.gmra.mrb[16].mxu0 %vm557_vm1, %v3407_v25  ;;  %3129 = vmatprep.mubr.msk.bf16.mxu1 %vm557_vm1, %v3408_v26  ;;  %v368_v26 = vadd.f32 %v3894_v20, %v321_v19 }
  0x35   : > { %3193 = vmatprep.mubr.msk.bf16.mxu0 %vm557_vm1, %v3409_v27  ;;  %v320_v27 = vld [vmem:[%s5039_s3 + $0x8] sm:$0xff] }
  0x3b   : > { %3130 = vmatmul.mubr.msk.bf16.gmra.mrb[20].mxu1 %vm557_vm1, %v3410_v28  ;;  %v366_v28 = vadd.f32 %v3894_v20, %v319_v22 }
  0x3c   : > { %3194 = vmatmul.mubr.msk.bf16.vlgmr.msra.gmra.mrb[0].mxu0 %vm557_vm1, %v3411_v29  ;;  %3133 = vmatprep.mubr.msk.bf16.mxu1 %vm557_vm1, %v3412_v30  ;;  %v369_v29 = vadd.f32 %v3894_v20, %v322_v24  ;;  %v367_v30 = vadd.f32 %v3894_v20, %v320_v27  ;;  %v331_v24 = vld [vmem:[%s5039_s3 + $0x60] sm:$0xff] }
  0x3d   : > { %3197 = vmatprep.mubr.msk.bf16.mxu0 %vm557_vm1, %v3413_v31 }
  0x43   : > { %3134 = vmatmul.mubr.msk.bf16.gmra.mrb[24].mxu1 %vm557_vm1, %v3414_v32 }
  0x44   : > { %3198 = vmatmul.mubr.msk.bf16.gmra.mrb[4].mxu0 %vm557_vm1, %v3415_v33  ;;  %3137 = vmatprep.mubr.msk.bf16.mxu1 %vm557_vm1, %v3416_v34  ;;  %v325_v33 = vld [vmem:[%s5039_s3 + $0x30] sm:$0xff] }
  0x45   : > { %3201 = vmatprep.mubr.msk.bf16.mxu0 %vm557_vm1, %v3417_v35 }
  0x4b   : > { %3138 = vmatmul.mubr.msk.bf16.gmra.mrb[28].mxu1 %vm557_vm1, %v3418_v36  ;;  %v323_v36 = vld [vmem:[%s5039_s3 + $0x20] sm:$0xff] }
  0x4c   : > { %3202 = vmatmul.mubr.msk.bf16.gmra.mrb[8].mxu0 %vm557_vm1, %v3419_v37  ;;  %3141 = vmatprep.mubr.msk.bf16.mxu1 %vm557_vm1, %v3420_v38 }
  0x4d   : > { %3205 = vmatprep.mubr.msk.bf16.mxu0 %vm557_vm1, %v3421_v39 }
  0x53   : > { %3142 = vmatmul.mubr.msk.bf16.gmra.mrb[32].mxu1 %vm557_vm1, %v3422_v40  ;;  %v326_v40 = vld [vmem:[%s5039_s3 + $0x38] sm:$0xff] }
  0x54   : > { %3206 = vmatmul.mubr.msk.bf16.gmra.mrb[12].mxu0 %vm557_vm1, %v3423_v41  ;;  %3145 = vmatprep.mubr.msk.bf16.mxu1 %vm557_vm1, %v3424_v42 }
  0x55   : > { %3209 = vmatprep.mubr.msk.bf16.mxu0 %vm557_vm1, %v3425_v43  ;;  %v372_v43 = vadd.f32 %v3894_v20, %v325_v33  ;;  %v378_v33 = vadd.f32 %v3894_v20, %v331_v24 }
  0x5b   : > { %3146 = vmatmul.mubr.msk.bf16.gmra.mrb[36].mxu1 %vm557_vm1, %v3426_v44  ;;  %v324_v44 = vld [vmem:[%s5039_s3 + $0x28] sm:$0xff] }
  0x5c   : > { %3210 = vmatmul.mubr.msk.bf16.gmra.mrb[16].mxu0 %vm557_vm1, %v3427_v45  ;;  %3171 = vmatprep.mubr.msk.bf16.mxu1 %vm557_vm1, %v3428_v46 }
  0x5d   : > { %3213 = vmatprep.mubr.msk.bf16.mxu0 %vm557_vm1, %v3429_v47  ;;  %v370_v47 = vadd.f32 %v3894_v20, %v323_v36 }
  0x63   : > { %3172 = vmatmul.mubr.msk.bf16.vlgmr.msra.gmra.mrb[20].mxu1 %vm557_vm1, %v3430_v48 }
  0x64   : > { %3214 = vmatmul.mubr.msk.bf16.gmra.mrb[20].mxu0 %vm557_vm1, %v3431_v49  ;;  %3175 = vmatprep.mubr.msk.bf16.mxu1 %vm557_vm1, %v3432_v50  ;;  %v373_v49 = vadd.f32 %v3894_v20, %v326_v40  ;;  %v371_v50 = vadd.f32 %v3894_v20, %v324_v44 }
  0x65   : > { %3217 = vmatprep.mubr.msk.bf16.mxu0 %vm557_vm1, %v3433_v51 }
  0x6b   : > { %3176 = vmatmul.mubr.msk.bf16.gmra.mrb[24].mxu1 %vm557_vm1, %v3434_v52 }
  0x6c   : > { %3218 = vmatmul.mubr.msk.bf16.gmra.mrb[24].mxu0 %vm557_vm1, %v3435_v53  ;;  %3179 = vmatprep.mubr.msk.bf16.mxu1 %vm557_vm1, %v3436_v54  ;;  %v329_v53 = vld [vmem:[%s5039_s3 + $0x50] sm:$0xff] }
  0x6d   : > { %3221 = vmatprep.mubr.msk.bf16.mxu0 %vm557_vm1, %v3437_v55 }
  0x73   : > { %3180 = vmatmul.mubr.msk.bf16.gmra.mrb[28].mxu1 %vm557_vm1, %v3438_v56  ;;  %v327_v56 = vld [vmem:[%s5039_s3 + $0x40] sm:$0xff] }
  0x74   : > { %3222 = vmatmul.mubr.msk.bf16.gmra.mrb[28].mxu0 %vm557_vm1, %v3439_v57  ;;  %3183 = vmatprep.mubr.msk.bf16.mxu1 %vm557_vm1, %v3440_v58 }
  0x75   : > { %3225 = vmatprep.mubr.msk.bf16.mxu0 %vm557_vm1, %v3441_v59 }
  0x7b   : > { %3184 = vmatmul.mubr.msk.bf16.gmra.mrb[32].mxu1 %vm557_vm1, %v3442_v60  ;;  %v330_v60 = vld [vmem:[%s5039_s3 + $0x58] sm:$0xff] }
  0x7c   : > { %3226 = vmatmul.mubr.msk.bf16.gmra.mrb[32].mxu0 %vm557_vm1, %v3443_v61  ;;  %3187 = vmatprep.mubr.msk.bf16.mxu1 %vm557_vm1, %v3444_v62 }
  0x7d   : > { %3229 = vmatprep.mubr.msk.bf16.mxu0 %vm557_vm1, %v3445_v63  ;;  %v376_v63 = vadd.f32 %v3894_v20, %v329_v53 }
  0x83   : > { %3188 = vmatmul.mubr.msk.bf16.gmra.mrb[36].mxu1 %vm557_vm1, %v3446_v0  ;;  %v328_v0 = vld [vmem:[%s5039_s3 + $0x48] sm:$0xff] }
  0x84   : > { %3230 = vmatmul.mubr.msk.bf16.gmra.mrb[36].mxu0 %vm557_vm1, %v3447_v1 }
  0xe6   : > { %v3111_v2 = vpop.f32.mrb[0].mxu1 }
  0xe7   : > { %v656_v3 = vpop.f32.mrb[1].mxu1  ;;  %v817_v31 = vadd.f32 %v3111_v2, %v368_v26 }
  0xe8   : > { %v3112_v4 = vpop.f32.mrb[2].mxu1  ;;  %v815_v32 = vadd.f32 %v656_v3, %v366_v28  ;;  %v374_v3 = vadd.f32 %v3894_v20, %v327_v56 }
  0xe9   : > { %v659_v5 = vpop.f32.mrb[3].mxu1  ;;  %v818_v35 = vadd.f32 %v3112_v4, %v369_v29 }
  0xea   : > { %v816_v39 = vadd.f32 %v659_v5, %v367_v30  ;;  %v377_v5 = vadd.f32 %v3894_v20, %v330_v60 }
  0xee   : > { %v3115_v6 = vpop.f32.mrb[4].mxu1 }
  0xef   : > { %v672_v7 = vpop.f32.mrb[5].mxu1  ;;  %v821_v51 = vadd.f32 %v3115_v6, %v372_v43  ;;  %v375_v6 = vadd.f32 %v3894_v20, %v328_v0  ;;  %v335_v43 = vld [vmem:[%s5039_s3 + $0x80] sm:$0xff]  ;;  %v341_v0 = vld [vmem:[%s5039_s3 + $0xb0] sm:$0xff] }
  0xf0   : > { %v3116_v8 = vpop.f32.mrb[6].mxu1  ;;  %v819_v52 = vadd.f32 %v672_v7, %v370_v47  ;;  %v382_v53 = vadd.f32 %v3894_v20, %v335_v43  ;;  %v346_v43 = vld [vmem:[%s5039_s3 + $0xd8] sm:$0xff] }
  0xf1   : > { %v675_v9 = vpop.f32.mrb[7].mxu1  ;;  %v822_v55 = vadd.f32 %v3116_v8, %v373_v49 }
  0xf2   : > { %v820_v59 = vadd.f32 %v675_v9, %v371_v50  ;;  %v333_v9 = vld [vmem:[%s5039_s3 + $0x70] sm:$0xff] }
  0xf3   : > { %v380_v30 = vadd.f32 %v3894_v20, %v333_v9 }
  0xf6   : > { %v3119_v10 = vpop.f32.mrb[8].mxu1 }
  0xf7   : > { %v688_v11 = vpop.f32.mrb[9].mxu1  ;;  %v825_v7 = vadd.f32 %v3119_v10, %v376_v63  ;;  %v334_v10 = vld [vmem:[%s5039_s3 + $0x78] sm:$0xff] }
  0xf8   : > { %v3874_v12 = vpop.f32.mrb[10].mxu1  ;;  %v823_v8 = vadd.f32 %v688_v11, %v374_v3 }
  0xf9   : > { %v3876_v13 = vpop.f32.mrb[11].mxu1  ;;  %v826_v22 = vadd.f32 %v3874_v12, %v377_v5  ;;  %v332_v12 = vld [vmem:[%s5039_s3 + $0x68] sm:$0xff] }
  0xfa   : > { %v824_v28 = vadd.f32 %v3876_v13, %v375_v6  ;;  %v381_v13 = vadd.f32 %v3894_v20, %v334_v10 }
  0xfe   : > { %v3878_v14 = vpop.f32.mrb[12].mxu1 }
  0xff   : > { %v3880_v15 = vpop.f32.mrb[13].mxu1  ;;  %v829_v36 = vadd.f32 %v3878_v14, %v380_v30  ;;  %v338_v14 = vld [vmem:[%s5039_s3 + $0x98] sm:$0xff] }
 0x100   : > { %v3882_v16 = vpop.f32.mrb[14].mxu1 }
 0x101   : > { %v3884_v17 = vpop.f32.mrb[15].mxu1 }
 0x106   : > { %v3886_v18 = vpop.f32.mrb[16].mxu1 }
 0x107   : > { %v3896_v21 = vpop.f32.mrb[17].mxu1 }
 0x108   : > { %v3901_v23 = vpop.f32.mrb[18].mxu1 }
 0x109   : > { %v3906_v25 = vpop.f32.mrb[19].mxu1 }
 0x10f   : > { %v3195_v34 = vpop.f32.mrb[0].mxu0 }
 0x110   : > { %v3921_v37 = vadd.f32 %v3195_v34, %v817_v31  ;;  %v1553_v38 = vpop.f32.mrb[1].mxu0 }
 0x111   : > { %v3926_v41 = vadd.f32 %v1553_v38, %v815_v32  ;;  %v3196_v42 = vpop.f32.mrb[2].mxu0  ;;  %v827_v38 = vadd.f32 %v3880_v15, %v378_v33 }
 0x112   : > { %v3932_v45 = vadd.f32 %v3196_v42, %v818_v35  ;;  %v1556_v46 = vpop.f32.mrb[3].mxu0  ;;  %v379_v35 = vadd.f32 %v3894_v20, %v332_v12  ;;  %v830_v42 = vadd.f32 %v3882_v16, %v381_v13  ;;  %v336_v16 = vld [vmem:[%s5039_s3 + $0x88] sm:$0xff] }
 0x113   : > { %v3935_v48 = vadd.f32 %v1556_v46, %v816_v39  ;;  %v337_v39 = vld [vmem:[%s5039_s3 + $0x90] sm:$0xff] }
 0x114   : > { %v828_v47 = vadd.f32 %v3884_v17, %v379_v35  ;;  %v384_v50 = vadd.f32 %v3894_v20, %v337_v39  ;;  %v385_v17 = vadd.f32 %v3894_v20, %v338_v14  ;;  %v344_v14 = vld [vmem:[%s5039_s3 + $0xc8] sm:$0xff] }
 0x116   : > { %v833_v56 = vadd.f32 %v3886_v18, %v384_v50  ;;  %v834_v60 = vadd.f32 %v3901_v23, %v385_v17  ;;  %v339_v18 = vld [vmem:[%s5039_s3 + $0xa0] sm:$0xff]  ;;  %v342_v23 = vld [vmem:[%s5039_s3 + $0xb8] sm:$0xff] }
 0x117   : > { %v3199_v54 = vpop.f32.mrb[4].mxu0  ;;  %v386_v9 = vadd.f32 %v3894_v20, %v339_v18 }
 0x118   : > { %v3945_v57 = vadd.f32 %v3199_v54, %v821_v51  ;;  %v1569_v58 = vpop.f32.mrb[5].mxu0 }
 0x119   : > { %v3950_v61 = vadd.f32 %v1569_v58, %v819_v52  ;;  %v3200_v62 = vpop.f32.mrb[6].mxu0  ;;  %v831_v58 = vadd.f32 %v3896_v21, %v382_v53  ;;  %v391_v53 = vadd.f32 %v3894_v20, %v344_v14 }
 0x11a   : > { %v3956_v1 = vadd.f32 %v3200_v62, %v822_v55  ;;  %v1572_v2 = vpop.f32.mrb[7].mxu0  ;;  %v383_v55 = vadd.f32 %v3894_v20, %v336_v16  ;;  %v393_v16 = vadd.f32 %v3894_v20, %v346_v43 }
 0x11b   : > { %v3959_v4 = vadd.f32 %v1572_v2, %v820_v59 }
 0x11c   : > { %v832_v2 = vadd.f32 %v3906_v25, %v383_v55  ;;  %v340_v25 = vld [vmem:[%s5039_s3 + $0xa8] sm:$0xff] }
 0x11d   : > { %v387_v24 = vadd.f32 %v3894_v20, %v340_v25 }
 0x11f   : > { %v3203_v19 = vpop.f32.mrb[8].mxu0 }
 0x120   : > { %v3970_v26 = vadd.f32 %v3203_v19, %v825_v7  ;;  %v1585_v27 = vpop.f32.mrb[9].mxu0  ;;  %v389_v19 = vadd.f32 %v3894_v20, %v342_v23 }
 0x121   : > { %v3976_v11 = vadd.f32 %v1585_v27, %v823_v8  ;;  %v3204_v29 = vpop.f32.mrb[10].mxu0  ;;  %v388_v8 = vadd.f32 %v3894_v20, %v341_v0 }
 0x122   : > { %v3982_v31 = vadd.f32 %v3204_v29, %v826_v22  ;;  %v1588_v32 = vpop.f32.mrb[11].mxu0 }
 0x123   : > { %v3985_v34 = vadd.f32 %v1588_v32, %v824_v28  ;;  %v345_v32 = vld [vmem:[%s5039_s3 + $0xd0] sm:$0xff] }
 0x127   : > { %v3207_v40 = vpop.f32.mrb[12].mxu0 }
 0x128   : > { %v3998_v44 = vadd.f32 %v3207_v40, %v829_v36  ;;  %v1601_v46 = vpop.f32.mrb[13].mxu0 }
 0x129   : > { %v4004_v15 = vadd.f32 %v1601_v46, %v827_v38  ;;  %v3208_v49 = vpop.f32.mrb[14].mxu0  ;;  %v343_v38 = vld [vmem:[%s5039_s3 + $0xc0] sm:$0xff] }
 0x12a   : > { %v4010_v51 = vadd.f32 %v3208_v49, %v830_v42  ;;  %v1604_v52 = vpop.f32.mrb[15].mxu0  ;;  %v390_v50 = vadd.f32 %v3894_v20, %v343_v38 }
 0x12b   : > { %v4013_v54 = vadd.f32 %v1604_v52, %v828_v47  ;;  %v392_v47 = vadd.f32 %v3894_v20, %v345_v32 }
 0x12f   : > { %v3211_v59 = vpop.f32.mrb[16].mxu0 }
 0x130   : > { %v4020_v62 = vadd.f32 %v3211_v59, %v833_v56  ;;  %v1617_v63 = vpop.f32.mrb[17].mxu0 }
 0x131   : > { %v4026_v3 = vadd.f32 %v1617_v63, %v831_v58  ;;  %v3212_v5 = vpop.f32.mrb[18].mxu0  ;;  %v349_v63 = vld [vmem:[%s5039_s3 + $0xf0] sm:$0xff] }
 0x132   : > { %v4031_v21 = vadd.f32 %v3212_v5, %v834_v60  ;;  %v1620_v6 = vpop.f32.mrb[19].mxu0 }
 0x133   : > { %v4036_v7 = vadd.f32 %v1620_v6, %v832_v2  ;;  %v347_v6 = vld [vmem:[%s5039_s3 + $0xe0] sm:$0xff] }
 0x136   : > { %v3173_v22 = vpop.f32.mrb[20].mxu1 }
 0x137   : > { %v3275_v27 = vadd.f32 %v3173_v22, %v388_v8  ;;  %v3215_v28 = vpop.f32.mrb[20].mxu0  ;;  %v1184_v10 = vpop.f32.mrb[21].mxu1  ;;  %v396_v22 = vadd.f32 %v3894_v20, %v349_v63 }
 0x138   : > { %v3277_v29 = vadd.f32 %v1184_v10, %v386_v9  ;;  %v1633_v30 = vpop.f32.mrb[21].mxu0  ;;  %v3174_v12 = vpop.f32.mrb[22].mxu1  ;;  %v350_v9 = vld [vmem:[%s5039_s3 + $0xf8] sm:$0xff] }
 0x139   : > { %v4048_v33 = vadd.f32 %v3275_v27, %v3215_v28  ;;  %v3279_v13 = vadd.f32 %v3174_v12, %v389_v19  ;;  %v3216_v35 = vpop.f32.mrb[22].mxu0  ;;  %v1187_v36 = vpop.f32.mrb[23].mxu1  ;;  %v394_v28 = vadd.f32 %v3894_v20, %v347_v6  ;;  %v397_v10 = vadd.f32 %v3894_v20, %v350_v9 }
 0x13a   : > { %v4053_v39 = vadd.f32 %v3277_v29, %v1633_v30  ;;  %v3281_v40 = vadd.f32 %v1187_v36, %v387_v24  ;;  %v1636_v42 = vpop.f32.mrb[23].mxu0  ;;  %v348_v24 = vld [vmem:[%s5039_s3 + $0xe8] sm:$0xff] }
 0x13b   : > { %v4058_v46 = vadd.f32 %v3279_v13, %v3216_v35  ;;  %v395_v30 = vadd.f32 %v3894_v20, %v348_v24  ;;  %v357_v24 = vld [vmem:[%s5039_s3 + $0x130] sm:$0xff] }
 0x13c   : > { %v4064_v49 = vadd.f32 %v3281_v40, %v1636_v42  ;;  %v353_v40 = vld [vmem:[%s5039_s3 + $0x110] sm:$0xff] }
 0x13e   : > { %v3177_v52 = vpop.f32.mrb[24].mxu1 }
 0x13f   : > { %v3283_v17 = vadd.f32 %v3177_v52, %v392_v47  ;;  %v3219_v55 = vpop.f32.mrb[24].mxu0  ;;  %v1200_v56 = vpop.f32.mrb[25].mxu1 }
 0x140   : > { %v3285_v58 = vadd.f32 %v1200_v56, %v390_v50  ;;  %v1649_v59 = vpop.f32.mrb[25].mxu0  ;;  %v3178_v60 = vpop.f32.mrb[26].mxu1  ;;  %v351_v50 = vld [vmem:[%s5039_s3 + $0x100] sm:$0xff]  ;;  %v400_v56 = vadd.f32 %v3894_v20, %v353_v40  ;;  %v404_v40 = vadd.f32 %v3894_v20, %v357_v24 }
 0x141   : > { %v4072_v0 = vadd.f32 %v3283_v17, %v3219_v55  ;;  %v3287_v2 = vadd.f32 %v3178_v60, %v393_v16  ;;  %v3220_v5 = vpop.f32.mrb[26].mxu0  ;;  %v1203_v18 = vpop.f32.mrb[27].mxu1  ;;  %v354_v17 = vld [vmem:[%s5039_s3 + $0x118] sm:$0xff]  ;;  %v398_v60 = vadd.f32 %v3894_v20, %v351_v50 }
 0x142   : > { %v4077_v23 = vadd.f32 %v3285_v58, %v1649_v59  ;;  %v3289_v8 = vadd.f32 %v1203_v18, %v391_v53  ;;  %v1652_v25 = vpop.f32.mrb[27].mxu0  ;;  %v352_v58 = vld [vmem:[%s5039_s3 + $0x108] sm:$0xff]  ;;  %v401_v63 = vadd.f32 %v3894_v20, %v354_v17 }
 0x143   : > { %v4082_v19 = vadd.f32 %v3287_v2, %v3220_v5  ;;  %v399_v5 = vadd.f32 %v3894_v20, %v352_v58 }
 0x144   : > { %v4088_v27 = vadd.f32 %v3289_v8, %v1652_v25 }
 0x146   : > { %v3181_v29 = vpop.f32.mrb[28].mxu1 }
 0x147   : > { %v3291_v12 = vadd.f32 %v3181_v29, %v396_v22  ;;  %v3223_v32 = vpop.f32.mrb[28].mxu0  ;;  %v1216_v13 = vpop.f32.mrb[29].mxu1 }
 0x148   : > { %v3293_v35 = vadd.f32 %v1216_v13, %v394_v28  ;;  %v1665_v36 = vpop.f32.mrb[29].mxu0  ;;  %v3182_v38 = vpop.f32.mrb[30].mxu1 }
 0x149   : > { %v4096_v42 = vadd.f32 %v3291_v12, %v3223_v32  ;;  %v3295_v43 = vadd.f32 %v3182_v38, %v397_v10  ;;  %v3224_v47 = vpop.f32.mrb[30].mxu0  ;;  %v1219_v14 = vpop.f32.mrb[31].mxu1  ;;  %v355_v12 = vld [vmem:[%s5039_s3 + $0x120] sm:$0xff] }
 0x14a   : > { %v4101_v16 = vadd.f32 %v3293_v35, %v1665_v36  ;;  %v3297_v52 = vadd.f32 %v1219_v14, %v395_v30  ;;  %v1668_v53 = vpop.f32.mrb[31].mxu0  ;;  %v358_v36 = vld [vmem:[%s5039_s3 + $0x138] sm:$0xff]  ;;  %v402_v14 = vadd.f32 %v3894_v20, %v355_v12  ;;  %v3556_v12 = vmov (!%p2996_p4), 0  }
 0x14b   : > { %v4106_v55 = vadd.f32 %v3295_v43, %v3224_v47  ;;  %v356_v43 = vld [vmem:[%s5039_s3 + $0x128] sm:$0xff]  ;;  %v405_v50 = vadd.f32 %v3894_v20, %v358_v36  ;;  %3449 = vset.pattern.permute.xlu1 (!%p2996_p4), %v3556_v12  ;;  %3448 = vset.pattern.permute.xlu0 (!%p2996_p4), %v3556_v12 }
 0x14c   : > { %v4112_v59 = vadd.f32 %v3297_v52, %v1668_v53  ;;  %v403_v53 = vadd.f32 %v3894_v20, %v356_v43  ;;  %v1764_v20 = vld [vmem:[%s5040_s4 + $0x10] sm:$0xff] (!%p2996_p4)  ;;  %v1766_v43 = vld [vmem:[%s5040_s4 + $0x20] sm:$0xff] (!%p2996_p4) }
 0x14d   : > { %vm1804_vm2 = vcmp.gt.f32.partialorder (!%p2996_p4), %v1764_v20, 0.0  ;;  %vm1806_vm7 = vcmp.gt.f32.partialorder (!%p2996_p4), %v1766_v43, 0.0  ;;  %v1774_v20 = vld [vmem:[%s5040_s4 + $0x60] sm:$0xff] (!%p2996_p4)  ;;  %v1779_v43 = vld [vmem:[%s5040_s4 + $0x88] sm:$0xff] (!%p2996_p4) }
 0x14e   : > { %v3185_v2 = vpop.f32.mrb[32].mxu1  ;;  %vm1814_vm15 = vcmp.gt.f32.partialorder (!%p2996_p4), %v1774_v20, 0.0  ;;  %v1787_v20 = vld [vmem:[%s5040_s4 + $0xc8] sm:$0xff] (!%p2996_p4) }
 0x14f   : > { %v3299_v18 = vadd.f32 %v3185_v2, %v400_v56  ;;  %v3227_v6 = vpop.f32.mrb[32].mxu0  ;;  %v1232_v8 = vpop.f32.mrb[33].mxu1 }
 0x150   : > { %v3301_v25 = vadd.f32 %v1232_v8, %v398_v60  ;;  %v1681_v9 = vpop.f32.mrb[33].mxu0  ;;  %v3186_v22 = vpop.f32.mrb[34].mxu1 }
 0x151   : > { %v4120_v28 = vadd.f32 %v3299_v18, %v3227_v6  ;;  %v3303_v10 = vadd.f32 %v3186_v22, %v401_v63  ;;  %v3228_v29 = vpop.f32.mrb[34].mxu0  ;;  %v1235_v30 = vpop.f32.mrb[35].mxu1 }
 0x152   : > { %v4125_v32 = vadd.f32 %v3301_v25, %v1681_v9  ;;  %v3305_v13 = vadd.f32 %v1235_v30, %v399_v5  ;;  %v1684_v35 = vpop.f32.mrb[35].mxu0  ;;  %v1765_v30 = vld [vmem:[%s5040_s4 + $0x18] sm:$0xff] (!%p2996_p4) }
 0x153   : > { %v4130_v38 = vadd.f32 %v3303_v10, %v3228_v29  ;;  %v1762_v29 = vld [vmem:[%s5040_s4] sm:$0xff] (!%p2996_p4)  ;;  %vm1805_vm4 = vcmp.gt.f32.partialorder (!%p2996_p4), %v1765_v30, 0.0 }
 0x154   : > { %v4136_v47 = vadd.f32 %v3305_v13, %v1684_v35  ;;  %vm1802_vm3 = vcmp.gt.f32.partialorder (!%p2996_p4), %v1762_v29, 0.0  ;;  %v1763_v13 = vld [vmem:[%s5040_s4 + $0x8] sm:$0xff] (!%p2996_p4)  ;;  %v1844_v35 = vsel (!%p2996_p4), %vm1804_vm2, 1, %v3556_v12  ;;  %vm1819_vm2 = vcmp.gt.f32.partialorder (!%p2996_p4), %v1779_v43, 0.0 }
 0x155   : > { %v1842_v36 = vsel (!%p2996_p4), %vm1802_vm3, 1, %v3556_v12  ;;  %vm1803_vm5 = vcmp.gt.f32.partialorder (!%p2996_p4), %v1763_v13, 0.0  ;;  %1889 = vperm.xlu1 (!%p2996_p4), %3449, %v1844_v35   ;;  %v1777_v13 = vld [vmem:[%s5040_s4 + $0x78] sm:$0xff] (!%p2996_p4)  ;;  %v1776_v35 = vld [vmem:[%s5040_s4 + $0x70] sm:$0xff] (!%p2996_p4) }
 0x156   : > { %v3189_v52 = vpop.f32.mrb[36].mxu1  ;;  %1755 = sbr.rel (%p2996_p4) target bundleno = 571 (0x23b), region = 52  ;;  %1883 = vperm.xlu0 (!%p2996_p4), %3448, %v1842_v36   ;;  %vm1817_vm0 = vcmp.gt.f32.partialorder (!%p2996_p4), %v1777_v13, 0.0  ;;  %vm1816_vm1 = vcmp.gt.f32.partialorder (!%p2996_p4), %v1776_v35, 0.0  ;;  %v1789_v35 = vld [vmem:[%s5040_s4 + $0xd8] sm:$0xff] (!%p2996_p4) }
 0x157   : > { %v3307_v17 = vadd.f32 %v3189_v52, %v404_v40  ;;  %v3231_v56 = vpop.f32.mrb[36].mxu0  ;;  %v1248_v58 = vpop.f32.mrb[37].mxu1  ;;  %v1767_v40 = vld [vmem:[%s5040_s4 + $0x28] sm:$0xff] (!%p2996_p4)  ;;  %v1769_v52 = vld [vmem:[%s5040_s4 + $0x38] sm:$0xff] (!%p2996_p4) }
 0x158   : > { %v3309_v60 = vadd.f32 %v1248_v58, %v402_v14  ;;  %v1697_v63 = vpop.f32.mrb[37].mxu0  ;;  %v3190_v2 = vpop.f32.mrb[38].mxu1  ;;  %v1845_v14 = vsel (!%p2996_p4), %vm1805_vm4, 1, %v3556_v12  ;;  %vm1807_vm6 = vcmp.gt.f32.partialorder (!%p2996_p4), %v1767_v40, 0.0  ;;  %vm1809_vm8 = vcmp.gt.f32.partialorder (!%p2996_p4), %v1769_v52, 0.0  ;;  %v1771_v58 = vld [vmem:[%s5040_s4 + $0x48] sm:$0xff] (!%p2996_p4) }
 0x159   : > { %v4141_v5 = vadd.f32 %v3307_v17, %v3231_v56  ;;  %v3311_v18 = vadd.f32 %v3190_v2, %v405_v50  ;;  %v3232_v6 = vpop.f32.mrb[38].mxu0  ;;  %v1251_v8 = vpop.f32.mrb[39].mxu1  ;;  %v1843_v50 = vsel (!%p2996_p4), %vm1803_vm5, 1, %v3556_v12  ;;  %1892 = vperm.xlu1 (!%p2996_p4), %3449, %v1845_v14   ;;  %v1847_v17 = vsel (!%p2996_p4), %vm1807_vm6, 1, %v3556_v12  ;;  %v1778_v14 = vld [vmem:[%s5040_s4 + $0x80] sm:$0xff] (!%p2996_p4) }
 0x15a   : > { %v4143_v25 = vadd.f32 %v3309_v60, %v1697_v63  ;;  %v3313_v9 = vadd.f32 %v1251_v8, %v403_v53  ;;  %v1700_v22 = vpop.f32.mrb[39].mxu0  ;;  %v1768_v53 = vld [vmem:[%s5040_s4 + $0x30] sm:$0xff] (!%p2996_p4)  ;;  %1886 = vperm.xlu0 (!%p2996_p4), %3448, %v1843_v50   ;;  %v1846_v56 = vsel (!%p2996_p4), %vm1806_vm7, 1, %v3556_v12  ;;  %v1770_v60 = vld [vmem:[%s5040_s4 + $0x40] sm:$0xff] (!%p2996_p4)  ;;  %v1849_v63 = vsel (!%p2996_p4), %vm1809_vm8, 1, %v3556_v12 }
 0x15b   : > { %5046 = vst [vmem:[#allocation4_spill] sm:$0xff] %v4141_v5  ;;  %v4145_v24 = vadd.f32 %v3311_v18, %v3232_v6  ;;  %vm1808_vm9 = vcmp.gt.f32.partialorder (!%p2996_p4), %v1768_v53, 0.0  ;;  %vm1811_vm10 = vcmp.gt.f32.partialorder (!%p2996_p4), %v1771_v58, 0.0  ;;  %vm1810_vm11 = vcmp.gt.f32.partialorder (!%p2996_p4), %v1770_v60, 0.0  ;;  %v1773_v18 = vld [vmem:[%s5040_s4 + $0x58] sm:$0xff] (!%p2996_p4)  ;;  %v1772_v6 = vld [vmem:[%s5040_s4 + $0x50] sm:$0xff] (!%p2996_p4) }
 0x15c   : > { %v4147_v10 = vadd.f32 %v3313_v9, %v1700_v22  ;;  %v1848_v2 = vsel (!%p2996_p4), %vm1808_vm9, 1, %v3556_v12  ;;  %v1851_v8 = vsel (!%p2996_p4), %vm1811_vm10, 1, %v3556_v12  ;;  %v1850_v9 = vsel (!%p2996_p4), %vm1810_vm11, 1, %v3556_v12  ;;  %v1775_v22 = vld [vmem:[%s5040_s4 + $0x68] sm:$0xff] (!%p2996_p4)  ;;  %v1781_v53 = vld [vmem:[%s5040_s4 + $0x98] sm:$0xff] (!%p2996_p4) }
 0x15d   : > { %1898 = vperm.xlu1 %3449, %v1847_v17   ;;  %vm1813_vm12 = vcmp.gt.f32.partialorder %v1773_v18, 0.0  ;;  %vm1812_vm13 = vcmp.gt.f32.partialorder %v1772_v6, 0.0  ;;  %vm1815_vm14 = vcmp.gt.f32.partialorder %v1775_v22, 0.0  ;;  %v1854_v40 = vsel %vm1814_vm15, 1, %v3556_v12  ;;  %v1780_v17 = vld [vmem:[%s5040_s4 + $0x90] sm:$0xff]  ;;  %v1783_v60 = vld [vmem:[%s5040_s4 + $0xa8] sm:$0xff] }
 0x15e   : > { %1895 = vperm.xlu0 %3448, %v1846_v56   ;;  %v1853_v29 = vsel %vm1813_vm12, 1, %v3556_v12  ;;  %v1852_v30 = vsel %vm1812_vm13, 1, %v3556_v12  ;;  %v1855_v36 = vsel %vm1815_vm14, 1, %v3556_v12  ;;  %v1857_v50 = vsel %vm1817_vm0, 1, %v3556_v12  ;;  %v1785_v6 = vld [vmem:[%s5040_s4 + $0xb8] sm:$0xff] }
 0x15f   : > { %v1856_v52 = vsel %vm1816_vm1, 1, %v3556_v12  ;;  %vm1818_vm3 = vcmp.gt.f32.partialorder %v1778_v14, 0.0  ;;  %v1859_v56 = vsel %vm1819_vm2, 1, %v3556_v12  ;;  %vm1821_vm4 = vcmp.gt.f32.partialorder %v1781_v53, 0.0  ;;  %v1791_v14 = vld [vmem:[%s5040_s4 + $0xe8] sm:$0xff] }
 0x160   : > { %v1858_v58 = vsel %vm1818_vm3, 1, %v3556_v12  ;;  %vm1820_vm5 = vcmp.gt.f32.partialorder %v1780_v17, 0.0  ;;  %vm1823_vm6 = vcmp.gt.f32.partialorder %v1783_v60, 0.0  ;;  %vm1825_vm8 = vcmp.gt.f32.partialorder %v1785_v6, 0.0  ;;  %v1793_v17 = vld [vmem:[%s5040_s4 + $0xf8] sm:$0xff] }
 0x161   : > { %1904 = vperm.xlu1 %3449, %v1849_v63   ;;  %v1782_v63 = vld [vmem:[%s5040_s4 + $0xa0] sm:$0xff]  ;;  %v1860_v18 = vsel %vm1820_vm5, 1, %v3556_v12  ;;  %vm1827_vm10 = vcmp.gt.f32.partialorder %v1787_v20, 0.0  ;;  %vm1829_vm12 = vcmp.gt.f32.partialorder %v1789_v35, 0.0  ;;  %vm1831_vm14 = vcmp.gt.f32.partialorder %v1791_v14, 0.0 }
 0x162   : > { %1901 = vperm.xlu0 %3448, %v1848_v2   ;;  %v1861_v2 = vsel %vm1821_vm4, 1, %v3556_v12  ;;  %vm1822_vm7 = vcmp.gt.f32.partialorder %v1782_v63, 0.0  ;;  %vm1833_vm0 = vcmp.gt.f32.partialorder %v1793_v17, 0.0  ;;  %v1795_v63 = vld [vmem:[%s5040_s4 + $0x108] sm:$0xff] }
 0x163   : > { %v1862_v22 = vsel %vm1822_vm7, 1, %v3556_v12  ;;  %vm1835_vm2 = vcmp.gt.f32.partialorder %v1795_v63, 0.0 }
 0x165   : > { %1910 = vperm.xlu1 %3449, %v1851_v8   ;;  %v1784_v8 = vld [vmem:[%s5040_s4 + $0xb0] sm:$0xff] }
 0x166   : > { %1907 = vperm.xlu0 %3448, %v1850_v9   ;;  %v1863_v9 = vsel %vm1823_vm6, 1, %v3556_v12  ;;  %vm1824_vm9 = vcmp.gt.f32.partialorder %v1784_v8, 0.0  ;;  %v1797_v8 = vld [vmem:[%s5040_s4 + $0x118] sm:$0xff] }
 0x167   : > { %v1864_v13 = vsel %vm1824_vm9, 1, %v3556_v12  ;;  %vm1837_vm4 = vcmp.gt.f32.partialorder %v1797_v8, 0.0 }
 0x169   : > { %1916 = vperm.xlu1 %3449, %v1853_v29   ;;  %v1786_v29 = vld [vmem:[%s5040_s4 + $0xc0] sm:$0xff] }
 0x16a   : > { %1913 = vperm.xlu0 %3448, %v1852_v30   ;;  %v1865_v30 = vsel %vm1825_vm8, 1, %v3556_v12  ;;  %vm1826_vm11 = vcmp.gt.f32.partialorder %v1786_v29, 0.0  ;;  %v1799_v29 = vld [vmem:[%s5040_s4 + $0x128] sm:$0xff] }
 0x16b   : > { %v1866_v43 = vsel %vm1826_vm11, 1, %v3556_v12  ;;  %vm1839_vm6 = vcmp.gt.f32.partialorder %v1799_v29, 0.0 }
 0x16d   : > { %1922 = vperm.xlu1 %3449, %v1855_v36   ;;  %v1788_v36 = vld [vmem:[%s5040_s4 + $0xd0] sm:$0xff] }
 0x16e   : > { %1919 = vperm.xlu0 %3448, %v1854_v40   ;;  %v1867_v40 = vsel %vm1827_vm10, 1, %v3556_v12  ;;  %vm1828_vm13 = vcmp.gt.f32.partialorder %v1788_v36, 0.0  ;;  %v1801_v36 = vld [vmem:[%s5040_s4 + $0x138] sm:$0xff] }
 0x16f   : > { %v1868_v53 = vsel %vm1828_vm13, 1, %v3556_v12  ;;  %vm1841_vm8 = vcmp.gt.f32.partialorder %v1801_v36, 0.0 }
 0x171   : > { %1928 = vperm.xlu1 %3449, %v1857_v50   ;;  %v1790_v50 = vld [vmem:[%s5040_s4 + $0xe0] sm:$0xff] }
 0x172   : > { %1925 = vperm.xlu0 %3448, %v1856_v52   ;;  %v1869_v52 = vsel %vm1829_vm12, 1, %v3556_v12  ;;  %vm1830_vm15 = vcmp.gt.f32.partialorder %v1790_v50, 0.0  ;;  %v1881_v50 = vsel %vm1841_vm8, 1, %v3556_v12 }
 0x173   : > { %v1870_v60 = vsel %vm1830_vm15, 1, %v3556_v12 }
 0x175   : > { %1934 = vperm.xlu1 %3449, %v1859_v56   ;;  %v1792_v56 = vld [vmem:[%s5040_s4 + $0xf0] sm:$0xff] }
 0x176   : > { %1931 = vperm.xlu0 %3448, %v1858_v58   ;;  %v1871_v58 = vsel %vm1831_vm14, 1, %v3556_v12  ;;  %vm1832_vm1 = vcmp.gt.f32.partialorder %v1792_v56, 0.0 }
 0x177   : > { %v1872_v6 = vsel %vm1832_vm1, 1, %v3556_v12 }
 0x179   : > { %1940 = vperm.xlu1 %3449, %v1861_v2   ;;  %v1794_v2 = vld [vmem:[%s5040_s4 + $0x100] sm:$0xff] }
 0x17a   : > { %1937 = vperm.xlu0 %3448, %v1860_v18   ;;  %v1873_v18 = vsel %vm1833_vm0, 1, %v3556_v12  ;;  %vm1834_vm3 = vcmp.gt.f32.partialorder %v1794_v2, 0.0 }
 0x17b   : > { %v1874_v20 = vsel %vm1834_vm3, 1, %v3556_v12 }
 0x17d   : > { %1946 = vperm.xlu1 %3449, %v1863_v9   ;;  %v1796_v9 = vld [vmem:[%s5040_s4 + $0x110] sm:$0xff] }
 0x17e   : > { %1943 = vperm.xlu0 %3448, %v1862_v22   ;;  %v1875_v22 = vsel %vm1835_vm2, 1, %v3556_v12  ;;  %vm1836_vm5 = vcmp.gt.f32.partialorder %v1796_v9, 0.0 }
 0x17f   : > { %v1876_v35 = vsel %vm1836_vm5, 1, %v3556_v12 }
 0x181   : > { %1952 = vperm.xlu1 %3449, %v1865_v30   ;;  %v1798_v30 = vld [vmem:[%s5040_s4 + $0x120] sm:$0xff] }
 0x182   : > { %1949 = vperm.xlu0 %3448, %v1864_v13   ;;  %v1877_v13 = vsel %vm1837_vm4, 1, %v3556_v12  ;;  %vm1838_vm7 = vcmp.gt.f32.partialorder %v1798_v30, 0.0 }
 0x183   : > { %v1878_v14 = vsel %vm1838_vm7, 1, %v3556_v12 }
 0x185   : > { %1958 = vperm.xlu1 %3449, %v1867_v40   ;;  %v1800_v40 = vld [vmem:[%s5040_s4 + $0x130] sm:$0xff] }
 0x186   : > { %1955 = vperm.xlu0 %3448, %v1866_v43   ;;  %v1879_v43 = vsel %vm1839_vm6, 1, %v3556_v12  ;;  %vm1840_vm9 = vcmp.gt.f32.partialorder %v1800_v40, 0.0 }
 0x189   : > { %1964 = vperm.xlu1 %3449, %v1869_v52   ;;  %v1880_v52 = vsel %vm1840_vm9, 1, %v3556_v12 }
 0x18a   : > { %1961 = vperm.xlu0 %3448, %v1868_v53   ;;  %v3557_v53 = vmov 0.0  }
 0x18b   : > { %1760 = vst [vmem:[#allocation2] sm:$0x1] %v3557_v53  ;;  %1761 = vst [vmem:[#allocation3] sm:$0x1] %v3557_v53 }
 0x18d   : > { %1970 = vperm.xlu1 %3449, %v1871_v58  }
 0x18e   : > { %1967 = vperm.xlu0 %3448, %v1870_v60  }
 0x191   : > { %1976 = vperm.xlu1 %3449, %v1873_v18  }
 0x192   : > { %1973 = vperm.xlu0 %3448, %v1872_v6  }
 0x195   : > { %1982 = vperm.xlu1 %3449, %v1875_v22  }
 0x196   : > { %1979 = vperm.xlu0 %3448, %v1874_v20  }
 0x199   : > { %1988 = vperm.xlu1 %3449, %v1877_v13  }
 0x19a   : > { %1985 = vperm.xlu0 %3448, %v1876_v35  }
 0x19d   : > { %1994 = vperm.xlu1 %3449, %v1879_v43  }
 0x19e   : > { %1991 = vperm.xlu0 %3448, %v1878_v14  }
 0x1a1   : > { %2000 = vperm.xlu1 %3449, %v1881_v50  }
 0x1a2   : > { %1997 = vperm.xlu0 %3448, %v1880_v52  }
 0x1d4   : > { %v1890_v17 = vpop.permute.xlu1 %1889 }
 0x1d5   : > { %v1884_v56 = vpop.permute.xlu0 %1883  ;;  %vm2004_vm11 = vcmp.eq.s32.totalorder %v1890_v17, 1 }
 0x1d6   : > { %vm2002_vm10 = vcmp.eq.s32.totalorder %v1884_v56, 1  ;;  %v2044_v2 = vsel %vm2004_vm11, %v3921_v37, 0.0 }
 0x1d7   : > { %v2042_v58 = vsel %vm2002_vm10, %v3926_v41, 0.0  ;;  %v2133_v9 = vmul.f32 %v2044_v2, %v2044_v2 }
 0x1d8   : > { %v1893_v60 = vpop.permute.xlu1 %1892  ;;  %v2131_v12 = vmul.f32 %v2042_v58, %v2042_v58 }
 0x1d9   : > { %v1887_v63 = vpop.permute.xlu0 %1886  ;;  %vm2005_vm12 = vcmp.eq.s32.totalorder %v1893_v60, 1 }
 0x1da   : > { %vm2003_vm13 = vcmp.eq.s32.totalorder %v1887_v63, 1  ;;  %v2045_v22 = vsel %vm2005_vm12, %v3932_v45, 0.0 }
 0x1db   : > { %v2043_v18 = vsel %vm2003_vm13, %v3935_v48, 0.0  ;;  %v2134_v36 = vmul.f32 %v2045_v22, %v2045_v22 }
 0x1dc   : > { %v2083_v6 = vadd.f32 %v2043_v18, %v2042_v58  ;;  %v2132_v8 = vmul.f32 %v2043_v18, %v2043_v18  ;;  %v1899_v20 = vpop.permute.xlu1 %1898 }
 0x1dd   : > { %v1896_v29 = vpop.permute.xlu0 %1895  ;;  %vm2007_vm14 = vcmp.eq.s32.totalorder %v1899_v20, 1 }
 0x1de   : > { %v2084_v30 = vadd.f32 %v2083_v6, %v2044_v2  ;;  %v2171_v13 = vadd.f32 %v2132_v8, %v2131_v12  ;;  %vm2006_vm15 = vcmp.eq.s32.totalorder %v1896_v29, 1  ;;  %v2047_v14 = vsel %vm2007_vm14, %v3959_v4, 0.0 }
 0x1df   : > { %v2046_v35 = vsel %vm2006_vm15, %v3950_v61, 0.0  ;;  %v2136_v60 = vmul.f32 %v2047_v14, %v2047_v14 }
 0x1e0   : > { %v2172_v40 = vadd.f32 %v2171_v13, %v2133_v9  ;;  %v2085_v43 = vadd.f32 %v2084_v30, %v2045_v22  ;;  %v2135_v50 = vmul.f32 %v2046_v35, %v2046_v35  ;;  %v1905_v52 = vpop.permute.xlu1 %1904 }
 0x1e1   : > { %v1902_v53 = vpop.permute.xlu0 %1901  ;;  %vm2009_vm0 = vcmp.eq.s32.totalorder %v1905_v52, 1 }
 0x1e2   : > { %v2173_v17 = vadd.f32 %v2172_v40, %v2134_v36  ;;  %v2086_v56 = vadd.f32 %v2085_v43, %v2046_v35  ;;  %vm2008_vm1 = vcmp.eq.s32.totalorder %v1902_v53, 1  ;;  %v2049_v18 = vsel %vm2009_vm0, %v3956_v1, 0.0 }
 0x1e3   : > { %v2048_v58 = vsel %vm2008_vm1, %v3945_v57, 0.0  ;;  %v2138_v29 = vmul.f32 %v2049_v18, %v2049_v18 }
 0x1e4   : > { %v2174_v63 = vadd.f32 %v2173_v17, %v2135_v50  ;;  %v2087_v2 = vadd.f32 %v2086_v56, %v2047_v14  ;;  %v2137_v12 = vmul.f32 %v2048_v58, %v2048_v58  ;;  %v1911_v6 = vpop.permute.xlu1 %1910 }
 0x1e5   : > { %v1908_v8 = vpop.permute.xlu0 %1907  ;;  %vm2011_vm2 = vcmp.eq.s32.totalorder %v1911_v6, 1 }
 0x1e6   : > { %v2175_v9 = vadd.f32 %v2174_v63, %v2136_v60  ;;  %v2088_v22 = vadd.f32 %v2087_v2, %v2048_v58  ;;  %vm2010_vm3 = vcmp.eq.s32.totalorder %v1908_v8, 1  ;;  %v2051_v35 = vsel %vm2011_vm2, %v3985_v34, 0.0 }
 0x1e7   : > { %v2050_v20 = vsel %vm2010_vm3, %v3976_v11, 0.0  ;;  %v2140_v53 = vmul.f32 %v2051_v35, %v2051_v35 }
 0x1e8   : > { %v2176_v30 = vadd.f32 %v2175_v9, %v2137_v12  ;;  %v2089_v13 = vadd.f32 %v2088_v22, %v2049_v18  ;;  %v2139_v36 = vmul.f32 %v2050_v20, %v2050_v20  ;;  %v1917_v40 = vpop.permute.xlu1 %1916 }
 0x1e9   : > { %v1914_v43 = vpop.permute.xlu0 %1913  ;;  %vm2013_vm4 = vcmp.eq.s32.totalorder %v1917_v40, 1 }
 0x1ea   : > { %v2177_v14 = vadd.f32 %v2176_v30, %v2138_v29  ;;  %v2090_v50 = vadd.f32 %v2089_v13, %v2050_v20  ;;  %vm2012_vm5 = vcmp.eq.s32.totalorder %v1914_v43, 1  ;;  %v2053_v58 = vsel %vm2013_vm4, %v3982_v31, 0.0 }
 0x1eb   : > { %v2052_v52 = vsel %vm2012_vm5, %v3970_v26, 0.0  ;;  %v2142_v8 = vmul.f32 %v2053_v58, %v2053_v58 }
 0x1ec   : > { %v2178_v17 = vadd.f32 %v2177_v14, %v2139_v36  ;;  %v2091_v56 = vadd.f32 %v2090_v50, %v2051_v35  ;;  %v2141_v60 = vmul.f32 %v2052_v52, %v2052_v52  ;;  %v1923_v63 = vpop.permute.xlu1 %1922 }
 0x1ed   : > { %v1920_v2 = vpop.permute.xlu0 %1919  ;;  %vm2015_vm6 = vcmp.eq.s32.totalorder %v1923_v63, 1 }
 0x1ee   : > { %v2179_v18 = vadd.f32 %v2178_v17, %v2140_v53  ;;  %v2092_v12 = vadd.f32 %v2091_v56, %v2052_v52  ;;  %vm2014_vm7 = vcmp.eq.s32.totalorder %v1920_v2, 1  ;;  %v2055_v20 = vsel %vm2015_vm6, %v4013_v54, 0.0 }
 0x1ef   : > { %v2054_v6 = vsel %vm2014_vm7, %v4004_v15, 0.0  ;;  %v2144_v43 = vmul.f32 %v2055_v20, %v2055_v20 }
 0x1f0   : > { %v2180_v9 = vadd.f32 %v2179_v18, %v2141_v60  ;;  %v2093_v22 = vadd.f32 %v2092_v12, %v2053_v58  ;;  %v2143_v29 = vmul.f32 %v2054_v6, %v2054_v6  ;;  %v1929_v30 = vpop.permute.xlu1 %1928 }
 0x1f1   : > { %v1926_v13 = vpop.permute.xlu0 %1925  ;;  %vm2017_vm8 = vcmp.eq.s32.totalorder %v1929_v30, 1 }
 0x1f2   : > { %v2181_v35 = vadd.f32 %v2180_v9, %v2142_v8  ;;  %v2094_v36 = vadd.f32 %v2093_v22, %v2054_v6  ;;  %vm2016_vm9 = vcmp.eq.s32.totalorder %v1926_v13, 1  ;;  %v2057_v52 = vsel %vm2017_vm8, %v4010_v51, 0.0 }
 0x1f3   : > { %v2056_v40 = vsel %vm2016_vm9, %v3998_v44, 0.0  ;;  %v2146_v2 = vmul.f32 %v2057_v52, %v2057_v52 }
 0x1f4   : > { %v2182_v14 = vadd.f32 %v2181_v35, %v2143_v29  ;;  %v2095_v50 = vadd.f32 %v2094_v36, %v2055_v20  ;;  %v2145_v53 = vmul.f32 %v2056_v40, %v2056_v40  ;;  %v1935_v17 = vpop.permute.xlu1 %1934 }
 0x1f5   : > { %v1932_v56 = vpop.permute.xlu0 %1931  ;;  %vm2019_vm10 = vcmp.eq.s32.totalorder %v1935_v17, 1 }
 0x1f6   : > { %v2183_v58 = vadd.f32 %v2182_v14, %v2144_v43  ;;  %v2096_v60 = vadd.f32 %v2095_v50, %v2056_v40  ;;  %vm2018_vm11 = vcmp.eq.s32.totalorder %v1932_v56, 1  ;;  %v2059_v6 = vsel %vm2019_vm10, %v4036_v7, 0.0 }
 0x1f7   : > { %v2058_v63 = vsel %vm2018_vm11, %v4026_v3, 0.0  ;;  %v2148_v13 = vmul.f32 %v2059_v6, %v2059_v6 }
 0x1f8   : > { %v2184_v18 = vadd.f32 %v2183_v58, %v2145_v53  ;;  %v2097_v12 = vadd.f32 %v2096_v60, %v2057_v52  ;;  %v2147_v8 = vmul.f32 %v2058_v63, %v2058_v63  ;;  %v1941_v9 = vpop.permute.xlu1 %1940 }
 0x1f9   : > { %v1938_v22 = vpop.permute.xlu0 %1937  ;;  %vm2021_vm12 = vcmp.eq.s32.totalorder %v1941_v9, 1 }
 0x1fa   : > { %v2185_v20 = vadd.f32 %v2184_v18, %v2146_v2  ;;  %v2098_v29 = vadd.f32 %v2097_v12, %v2058_v63  ;;  %vm2020_vm13 = vcmp.eq.s32.totalorder %v1938_v22, 1  ;;  %v2061_v40 = vsel %vm2021_vm12, %v4031_v21, 0.0 }
 0x1fb   : > { %v2060_v30 = vsel %vm2020_vm13, %v4020_v62, 0.0  ;;  %v2150_v56 = vmul.f32 %v2061_v40, %v2061_v40 }
 0x1fc   : > { %v2186_v35 = vadd.f32 %v2185_v20, %v2147_v8  ;;  %v2099_v36 = vadd.f32 %v2098_v29, %v2059_v6  ;;  %v2149_v43 = vmul.f32 %v2060_v30, %v2060_v30  ;;  %v1947_v14 = vpop.permute.xlu1 %1946 }
 0x1fd   : > { %v1944_v50 = vpop.permute.xlu0 %1943  ;;  %vm2023_vm14 = vcmp.eq.s32.totalorder %v1947_v14, 1 }
 0x1fe   : > { %v2187_v52 = vadd.f32 %v2186_v35, %v2148_v13  ;;  %v2100_v53 = vadd.f32 %v2099_v36, %v2060_v30  ;;  %vm2022_vm15 = vcmp.eq.s32.totalorder %v1944_v50, 1  ;;  %v2063_v63 = vsel %vm2023_vm14, %v4064_v49, 0.0 }
 0x1ff   : > { %v2062_v17 = vsel %vm2022_vm15, %v4053_v39, 0.0  ;;  %v2152_v22 = vmul.f32 %v2063_v63, %v2063_v63 }
 0x200   : > { %v2188_v58 = vadd.f32 %v2187_v52, %v2149_v43  ;;  %v2101_v60 = vadd.f32 %v2100_v53, %v2061_v40  ;;  %v2151_v2 = vmul.f32 %v2062_v17, %v2062_v17  ;;  %v1953_v18 = vpop.permute.xlu1 %1952 }
 0x201   : > { %v1950_v12 = vpop.permute.xlu0 %1949  ;;  %vm2025_vm0 = vcmp.eq.s32.totalorder %v1953_v18, 1 }
 0x202   : > { %v2189_v6 = vadd.f32 %v2188_v58, %v2150_v56  ;;  %v2102_v8 = vadd.f32 %v2101_v60, %v2062_v17  ;;  %vm2024_vm1 = vcmp.eq.s32.totalorder %v1950_v12, 1  ;;  %v2065_v30 = vsel %vm2025_vm0, %v4058_v46, 0.0 }
 0x203   : > { %v2064_v9 = vsel %vm2024_vm1, %v4048_v33, 0.0  ;;  %v2154_v50 = vmul.f32 %v2065_v30, %v2065_v30 }
 0x204   : > { %v2190_v20 = vadd.f32 %v2189_v6, %v2151_v2  ;;  %v2103_v29 = vadd.f32 %v2102_v8, %v2063_v63  ;;  %v2153_v13 = vmul.f32 %v2064_v9, %v2064_v9  ;;  %v1959_v35 = vpop.permute.xlu1 %1958 }
 0x205   : > { %v1956_v36 = vpop.permute.xlu0 %1955  ;;  %vm2027_vm2 = vcmp.eq.s32.totalorder %v1959_v35, 1 }
 0x206   : > { %v2191_v40 = vadd.f32 %v2190_v20, %v2152_v22  ;;  %v2104_v43 = vadd.f32 %v2103_v29, %v2064_v9  ;;  %vm2026_vm3 = vcmp.eq.s32.totalorder %v1956_v36, 1  ;;  %v2067_v17 = vsel %vm2027_vm2, %v4088_v27, 0.0 }
 0x207   : > { %v2066_v14 = vsel %vm2026_vm3, %v4077_v23, 0.0  ;;  %v2156_v12 = vmul.f32 %v2067_v17, %v2067_v17 }
 0x208   : > { %v2192_v52 = vadd.f32 %v2191_v40, %v2153_v13  ;;  %v2105_v53 = vadd.f32 %v2104_v43, %v2065_v30  ;;  %v2155_v56 = vmul.f32 %v2066_v14, %v2066_v14  ;;  %v1965_v58 = vpop.permute.xlu1 %1964 }
 0x209   : > { %v1962_v60 = vpop.permute.xlu0 %1961  ;;  %vm2029_vm4 = vcmp.eq.s32.totalorder %v1965_v58, 1 }
 0x20a   : > { %v2193_v63 = vadd.f32 %v2192_v52, %v2154_v50  ;;  %v2106_v2 = vadd.f32 %v2105_v53, %v2066_v14  ;;  %vm2028_vm5 = vcmp.eq.s32.totalorder %v1962_v60, 1  ;;  %v2069_v9 = vsel %vm2029_vm4, %v4082_v19, 0.0 }
 0x20b   : > { %v2068_v18 = vsel %vm2028_vm5, %v4072_v0, 0.0  ;;  %v2158_v36 = vmul.f32 %v2069_v9, %v2069_v9 }
 0x20c   : > { %v2194_v6 = vadd.f32 %v2193_v63, %v2155_v56  ;;  %v2107_v8 = vadd.f32 %v2106_v2, %v2067_v17  ;;  %v2157_v22 = vmul.f32 %v2068_v18, %v2068_v18  ;;  %v1971_v20 = vpop.permute.xlu1 %1970 }
 0x20d   : > { %v1968_v29 = vpop.permute.xlu0 %1967  ;;  %vm2031_vm6 = vcmp.eq.s32.totalorder %v1971_v20, 1 }
 0x20e   : > { %v2195_v30 = vadd.f32 %v2194_v6, %v2156_v12  ;;  %v2108_v13 = vadd.f32 %v2107_v8, %v2068_v18  ;;  %vm2030_vm7 = vcmp.eq.s32.totalorder %v1968_v29, 1  ;;  %v2071_v14 = vsel %vm2031_vm6, %v4112_v59, 0.0 }
 0x20f   : > { %v2070_v35 = vsel %vm2030_vm7, %v4101_v16, 0.0  ;;  %v2160_v60 = vmul.f32 %v2071_v14, %v2071_v14 }
 0x210   : > { %v2196_v40 = vadd.f32 %v2195_v30, %v2157_v22  ;;  %v2109_v43 = vadd.f32 %v2108_v13, %v2069_v9  ;;  %v2159_v50 = vmul.f32 %v2070_v35, %v2070_v35  ;;  %v1977_v52 = vpop.permute.xlu1 %1976 }
 0x211   : > { %v1974_v53 = vpop.permute.xlu0 %1973  ;;  %vm2033_vm8 = vcmp.eq.s32.totalorder %v1977_v52, 1 }
 0x212   : > { %v2197_v17 = vadd.f32 %v2196_v40, %v2158_v36  ;;  %v2110_v56 = vadd.f32 %v2109_v43, %v2070_v35  ;;  %vm2032_vm9 = vcmp.eq.s32.totalorder %v1974_v53, 1  ;;  %v2073_v18 = vsel %vm2033_vm8, %v4106_v55, 0.0 }
 0x213   : > { %v2072_v58 = vsel %vm2032_vm9, %v4096_v42, 0.0  ;;  %v2162_v29 = vmul.f32 %v2073_v18, %v2073_v18 }
 0x214   : > { %v2198_v63 = vadd.f32 %v2197_v17, %v2159_v50  ;;  %v2111_v2 = vadd.f32 %v2110_v56, %v2071_v14  ;;  %v2161_v12 = vmul.f32 %v2072_v58, %v2072_v58  ;;  %v1983_v6 = vpop.permute.xlu1 %1982 }
 0x215   : > { %v1980_v8 = vpop.permute.xlu0 %1979  ;;  %vm2035_vm10 = vcmp.eq.s32.totalorder %v1983_v6, 1 }
 0x216   : > { %v2199_v9 = vadd.f32 %v2198_v63, %v2160_v60  ;;  %v2112_v22 = vadd.f32 %v2111_v2, %v2072_v58  ;;  %vm2034_vm11 = vcmp.eq.s32.totalorder %v1980_v8, 1  ;;  %v2075_v35 = vsel %vm2035_vm10, %v4136_v47, 0.0 }
 0x217   : > { %v2074_v20 = vsel %vm2034_vm11, %v4125_v32, 0.0  ;;  %v2164_v53 = vmul.f32 %v2075_v35, %v2075_v35 }
 0x218   : > { %v2200_v30 = vadd.f32 %v2199_v9, %v2161_v12  ;;  %v2113_v13 = vadd.f32 %v2112_v22, %v2073_v18  ;;  %v2163_v36 = vmul.f32 %v2074_v20, %v2074_v20  ;;  %v1989_v40 = vpop.permute.xlu1 %1988 }
 0x219   : > { %v1986_v43 = vpop.permute.xlu0 %1985  ;;  %vm2037_vm12 = vcmp.eq.s32.totalorder %v1989_v40, 1 }
 0x21a   : > { %v2201_v14 = vadd.f32 %v2200_v30, %v2162_v29  ;;  %v2114_v50 = vadd.f32 %v2113_v13, %v2074_v20  ;;  %vm2036_vm13 = vcmp.eq.s32.totalorder %v1986_v43, 1  ;;  %v2077_v58 = vsel %vm2037_vm12, %v4130_v38, 0.0 }
 0x21b   : > { %v2076_v52 = vsel %vm2036_vm13, %v4120_v28, 0.0  ;;  %v2166_v8 = vmul.f32 %v2077_v58, %v2077_v58 }
 0x21c   : > { %v2202_v17 = vadd.f32 %v2201_v14, %v2163_v36  ;;  %v2115_v56 = vadd.f32 %v2114_v50, %v2075_v35  ;;  %v2165_v60 = vmul.f32 %v2076_v52, %v2076_v52  ;;  %v1995_v63 = vpop.permute.xlu1 %1994 }
 0x21d   : > { %v1992_v2 = vpop.permute.xlu0 %1991  ;;  %vm2039_vm14 = vcmp.eq.s32.totalorder %v1995_v63, 1 }
 0x21e   : > { %v2203_v18 = vadd.f32 %v2202_v17, %v2164_v53  ;;  %v2116_v12 = vadd.f32 %v2115_v56, %v2076_v52  ;;  %vm2038_vm15 = vcmp.eq.s32.totalorder %v1992_v2, 1  ;;  %v2079_v20 = vsel %vm2039_vm14, %v4147_v10, 0.0 }
 0x21f   : > { %v2078_v6 = vsel %vm2038_vm15, %v4143_v25, 0.0  ;;  %v2168_v43 = vmul.f32 %v2079_v20, %v2079_v20 }
 0x220   : > { %v2204_v9 = vadd.f32 %v2203_v18, %v2165_v60  ;;  %v2117_v22 = vadd.f32 %v2116_v12, %v2077_v58  ;;  %v2167_v29 = vmul.f32 %v2078_v6, %v2078_v6  ;;  %v2001_v30 = vpop.permute.xlu1 %2000 }
 0x221   : > { %v1998_v13 = vpop.permute.xlu0 %1997  ;;  %vm2041_vm0 = vcmp.eq.s32.totalorder %v2001_v30, 1 }
 0x222   : > { %v2205_v35 = vadd.f32 %v2204_v9, %v2166_v8  ;;  %v2118_v36 = vadd.f32 %v2117_v22, %v2078_v6  ;;  %vm2040_vm1 = vcmp.eq.s32.totalorder %v1998_v13, 1  ;;  %v2081_v52 = vsel %vm2041_vm0, %v4145_v24, 0.0 }
 0x223   : > { %v2080_v40 = vsel %vm2040_vm1, %v4141_v5, 0.0  ;;  %v2170_v58 = vmul.f32 %v2081_v52, %v2081_v52 }
 0x224   : > { %v2206_v14 = vadd.f32 %v2205_v35, %v2167_v29  ;;  %v2119_v50 = vadd.f32 %v2118_v36, %v2079_v20  ;;  %v2169_v56 = vmul.f32 %v2080_v40, %v2080_v40  ;;  %v2082_v29 = vld [vmem:[#allocation2] sm:$0x1]  ;;  %v2130_v36 = vld [vmem:[#allocation3] sm:$0x1] }
 0x226   : > { %v2207_v53 = vadd.f32 %v2206_v14, %v2168_v43  ;;  %v2120_v17 = vadd.f32 %v2119_v50, %v2080_v40 }
 0x228   : > { %v2121_v60 = vadd.f32 %v2120_v17, %v2081_v52  ;;  %v2208_v63 = vadd.f32 %v2207_v53, %v2169_v56 }
 0x22a   : > { %v2122_v2 = vrot.slane %v2121_v60, 4  ;;  %v2209_v18 = vadd.f32 %v2208_v63, %v2170_v58 }
 0x22c   : > { %v2123_v12 = vadd.f32 %v2122_v2, %v2121_v60  ;;  %v2210_v8 = vrot.slane %v2209_v18, 4 }
 0x22e   : > { %v2124_v6 = vrot.slane %v2123_v12, 2  ;;  %v2211_v9 = vadd.f32 %v2210_v8, %v2209_v18 }
 0x230   : > { %v2125_v22 = vadd.f32 %v2124_v6, %v2123_v12  ;;  %v2212_v30 = vrot.slane %v2211_v9, 2 }
 0x232   : > { %v2126_v13 = vrot.slane %v2125_v22, 1  ;;  %v2213_v5 = vadd.f32 %v2212_v30, %v2211_v9 }
 0x234   : > { %v2127_v20 = vadd.f32 %v2126_v13, %v2125_v22  ;;  %v2214_v35 = vrot.slane %v2213_v5, 1 }
 0x236   : > { %v2128_v43 = vadd.f32 %v2127_v20, %v2082_v29  ;;  %v2215_v14 = vadd.f32 %v2214_v35, %v2213_v5 }
 0x238   : > { %2129 = vst [vmem:[#allocation2] sm:$0x1] %v2128_v43  ;;  %v2216_v40 = vadd.f32 %v2215_v14, %v2130_v36 }
 0x23a   : > { %2217 = vst [vmem:[#allocation3] sm:$0x1] %v2216_v40 }
 0x23b PF: > { %p2997_p5 = scmp.ne.s32.totalorder %s3546_s24, 1 }
 0x23c   : > { %v2230_v53 = vlaneseq (!%p2997_p5) }
 0x23d   : > { %2221 = sbr.rel (%p2997_p5) target bundleno = 708 (0x2c4), region = 60 }
 0x23e   : > { %v2231_v60 = vshrl.u32 (!%p2997_p5), %v2230_v53, 7 }
 0x23f   : > { %v2222_v50 = vld [vmem:[#allocation2] sm:$0x1] (!%p2997_p5) }
 0x240   : > { %v2223_v17 = vmul.f32 (!%p2997_p5), 0.0078125, %v2222_v50  ;;  %v2232_v18 = vsub.s32 (!%p2997_p5), 0, %v2231_v60 }
 0x241   : > { %v2224_v52 = vld [vmem:[#allocation3] sm:$0x1] (!%p2997_p5) }
 0x242   : > { %v2225_v56 = vmul.f32 (!%p2997_p5), 0.0078125, %v2224_v52  ;;  %v2226_v58 = vmul.f32 (!%p2997_p5), %v2223_v17, %v2223_v17  ;;  %v4353_v5 = vrot.slane (!%p2997_p5), %v2223_v17, %v2232_v18 }
 0x244   : > { %v2227_v63 = vsub.f32 %v2225_v56, %v2226_v58  ;;  %v2235_v8 = vsub.f32 %v3926_v41, %v4353_v5  ;;  %v2236_v6 = vsub.f32 %v3935_v48, %v4353_v5  ;;  %v2237_v9 = vsub.f32 %v3921_v37, %v4353_v5 }
 0x245   : > { %v2238_v22 = vsub.f32 %v3932_v45, %v4353_v5  ;;  %v2239_v30 = vsub.f32 %v3950_v61, %v4353_v5  ;;  %v2240_v13 = vsub.f32 %v3959_v4, %v4353_v5  ;;  %v2241_v29 = vsub.f32 %v3945_v57, %v4353_v5 }
 0x246   : > { %v2228_v2 = vmax.f32 %v2227_v63, 0.0  ;;  %v2242_v41 = vsub.f32 %v3956_v1, %v4353_v5  ;;  %v2243_v48 = vsub.f32 %v3976_v11, %v4353_v5  ;;  %v2244_v37 = vsub.f32 %v3985_v34, %v4353_v5  ;;  %v4412_v63 = vld [vmem:[%s5041_s5] ss:$0 sm:$0xff] }
 0x247   : > { %v2245_v45 = vsub.f32 %v3970_v26, %v4353_v5  ;;  %v2246_v61 = vsub.f32 %v3982_v31, %v4353_v5  ;;  %v2247_v4 = vsub.f32 %v4004_v15, %v4353_v5  ;;  %v2248_v57 = vsub.f32 %v4013_v54, %v4353_v5 }
 0x248   : > { %v2275_v12 = vadd.f32 1e-05, %v2228_v2  ;;  %v4429_v2 = vld [vmem:[%s5042_s6] ss:$0 sm:$0xff]  ;;  %v2270_v20 = vsub.f32 %v4130_v38, %v4353_v5 }
 0x24a   : > { %3450 = vrsqrt.f32 %v2275_v12 }
 0x254   : > { %v3451_v14 = vpop.eup %3450 }
 0x255   : > { %v4401_v17 = vrot.slane %v3451_v14, %v2232_v18 }
 0x257   : > { %v2283_v58 = vmul.f32 %v4401_v17, %v2235_v8  ;;  %v2284_v60 = vmul.f32 %v4401_v17, %v2236_v6  ;;  %v2285_v56 = vmul.f32 %v4401_v17, %v2237_v9  ;;  %v2286_v53 = vmul.f32 %v4401_v17, %v2238_v22 }
 0x258   : > { %v2287_v18 = vmul.f32 %v4401_v17, %v2239_v30  ;;  %v2288_v12 = vmul.f32 %v4401_v17, %v2240_v13  ;;  %v2289_v52 = vmul.f32 %v4401_v17, %v2241_v29  ;;  %v2290_v14 = vmul.f32 %v4401_v17, %v2242_v41 }
 0x259   : > { %v2330_v8 = vmul.f32 %v4412_v63, %v2283_v58  ;;  %v2331_v6 = vmul.f32 %v4412_v63, %v2284_v60  ;;  %v2332_v9 = vmul.f32 %v4412_v63, %v2285_v56  ;;  %v2333_v22 = vmul.f32 %v4412_v63, %v2286_v53 }
 0x25a   : > { %v2334_v50 = vmul.f32 %v4412_v63, %v2287_v18  ;;  %v2335_v40 = vmul.f32 %v4412_v63, %v2288_v12  ;;  %v2336_v30 = vmul.f32 %v4412_v63, %v2289_v52  ;;  %v2337_v13 = vmul.f32 %v4412_v63, %v2290_v14 }
 0x25b   : > { %v4444_v29 = vadd.f32 %v4429_v2, %v2330_v8  ;;  %v4447_v41 = vadd.f32 %v4429_v2, %v2331_v6  ;;  %v4450_v58 = vadd.f32 %v4429_v2, %v2332_v9  ;;  %v4453_v56 = vadd.f32 %v4429_v2, %v2333_v22 }
 0x25c   : > { %v4456_v53 = vadd.f32 %v4429_v2, %v2334_v50  ;;  %v4459_v60 = vadd.f32 %v4429_v2, %v2335_v40  ;;  %v4468_v8 = vadd.f32 %v4429_v2, %v2336_v30  ;;  %v4475_v9 = vadd.f32 %v4429_v2, %v2337_v13 }
 0x25d   : > { %v2457_v12 = vmin.f32 %v4444_v29, 0.0  ;;  %v2458_v14 = vmin.f32 %v4447_v41, 0.0  ;;  %v2459_v6 = vmin.f32 %v4450_v58, 0.0  ;;  %v2460_v40 = vmin.f32 %v4453_v56, 0.0 }
 0x25e   : > { %v2461_v43 = vmin.f32 %v4456_v53, 0.0  ;;  %v2269_v30 = vsub.f32 %v4120_v28, %v4353_v5  ;;  %v2462_v50 = vmin.f32 %v4459_v60, 0.0  ;;  %v2463_v1 = vmin.f32 %v4468_v8, 0.0 }
 0x25f   : > { %v2497_v18 = vmul.f32 1.442695, %v2457_v12  ;;  %v2499_v52 = vmul.f32 1.442695, %v2458_v14  ;;  %v2501_v36 = vmul.f32 1.442695, %v2459_v6  ;;  %v2271_v12 = vsub.f32 %v4143_v25, %v4353_v5 }
 0x260   : > { %v2503_v35 = vmul.f32 1.442695, %v2460_v40  ;;  %v2505_v13 = vmul.f32 1.442695, %v2461_v43  ;;  %v2507_v14 = vmul.f32 1.442695, %v2462_v50  ;;  %v2272_v6 = vsub.f32 %v4147_v10, %v4353_v5 }
 0x261   : > { %3452 = vpow2.f32 %v2497_v18  ;;  %v2464_v22 = vmin.f32 %v4475_v9, 0.0  ;;  %vm2417_vm2 = vcmp.gt.f32.partialorder %v4444_v29, 0.0  ;;  %v2509_v40 = vmul.f32 1.442695, %v2463_v1 }
 0x262   : > { %3454 = vpow2.f32 %v2499_v52  ;;  %v2291_v43 = vmul.f32 %v4401_v17, %v2243_v48  ;;  %v2292_v52 = vmul.f32 %v4401_v17, %v2244_v37  ;;  %vm2418_vm3 = vcmp.gt.f32.partialorder %v4447_v41, 0.0 }
 0x263   : > { %3456 = vpow2.f32 %v2501_v36  ;;  %v2511_v18 = vmul.f32 1.442695, %v2464_v22  ;;  %v2293_v36 = vmul.f32 %v4401_v17, %v2245_v45  ;;  %v2294_v11 = vmul.f32 %v4401_v17, %v2246_v61 }
 0x264   : > { %3458 = vpow2.f32 %v2503_v35  ;;  %v2338_v48 = vmul.f32 %v4412_v63, %v2291_v43  ;;  %v2339_v34 = vmul.f32 %v4412_v63, %v2292_v52  ;;  %v2295_v37 = vmul.f32 %v4401_v17, %v2247_v4 }
 0x265   : > { %3460 = vpow2.f32 %v2505_v13  ;;  %v2340_v26 = vmul.f32 %v4412_v63, %v2293_v36  ;;  %v2341_v45 = vmul.f32 %v4412_v63, %v2294_v11  ;;  %v2296_v31 = vmul.f32 %v4401_v17, %v2248_v57 }
 0x266   : > { %3462 = vpow2.f32 %v2507_v14  ;;  %v4522_v61 = vadd.f32 %v4429_v2, %v2338_v48  ;;  %v4525_v1 = vadd.f32 %v4429_v2, %v2339_v34  ;;  %v2342_v15 = vmul.f32 %v4412_v63, %v2295_v37 }
 0x267   : > { %3464 = vpow2.f32 %v2509_v40  ;;  %v4529_v4 = vadd.f32 %v4429_v2, %v2340_v26  ;;  %v4532_v35 = vadd.f32 %v4429_v2, %v2341_v45  ;;  %v2343_v54 = vmul.f32 %v4412_v63, %v2296_v31 }
 0x268   : > { %3466 = vpow2.f32 %v2511_v18  ;;  %vm2419_vm4 = vcmp.gt.f32.partialorder %v4450_v58, 0.0  ;;  %vm2420_vm5 = vcmp.gt.f32.partialorder %v4453_v56, 0.0  ;;  %v2465_v57 = vmin.f32 %v4522_v61, 0.0 }
 0x269   : > { %v2466_v50 = vmin.f32 %v4525_v1, 0.0  ;;  %vm2421_vm6 = vcmp.gt.f32.partialorder %v4456_v53, 0.0  ;;  %vm2422_vm7 = vcmp.gt.f32.partialorder %v4459_v60, 0.0  ;;  %v2467_v22 = vmin.f32 %v4529_v4, 0.0 }
 0x26a   : > { %v2468_v13 = vmin.f32 %v4532_v35, 0.0  ;;  %vm2423_vm8 = vcmp.gt.f32.partialorder %v4468_v8, 0.0  ;;  %v2513_v40 = vmul.f32 1.442695, %v2465_v57  ;;  %v4545_v52 = vadd.f32 %v4429_v2, %v2342_v15 }
 0x26b   : > { %v3453_v14 = vpop.eup %3452  ;;  %v2515_v43 = vmul.f32 1.442695, %v2466_v50  ;;  %v2517_v11 = vmul.f32 1.442695, %v2467_v22  ;;  %v4548_v34 = vadd.f32 %v4429_v2, %v2343_v54  ;;  %v5047_v31 = vsub.f32 %v3998_v44, %v4353_v5 }
 0x26c   : > { %v3455_v18 = vpop.eup %3454  ;;  %v3000_v36 = vadd.f32 -1.0, %v3453_v14  ;;  %v2519_v48 = vmul.f32 1.442695, %v2468_v13  ;;  %3468 = vpow2.f32 %v2513_v40  ;;  %v2469_v45 = vmin.f32 %v4545_v52, 0.0 }
 0x26d   : > { %v3457_v37 = vpop.eup %3456  ;;  %v3001_v26 = vadd.f32 -1.0, %v3455_v18  ;;  %v2297_v57 = vmul.f32 %v4401_v17, %v5047_v31  ;;  %vm2424_vm9 = vcmp.gt.f32.partialorder %v4475_v9, 0.0  ;;  %3470 = vpow2.f32 %v2515_v43 }
 0x26e   : > { %v3459_v50 = vpop.eup %3458  ;;  %v2617_v15 = vsel %vm2417_vm2, %v4444_v29, %v3000_v36  ;;  %v3002_v22 = vadd.f32 -1.0, %v3457_v37  ;;  %vm2425_vm10 = vcmp.gt.f32.partialorder %v4522_v61, 0.0  ;;  %3472 = vpow2.f32 %v2517_v11 }
 0x26f   : > { %v3461_v54 = vpop.eup %3460  ;;  %2657 = vst [vmem:[%s5043_s7] sm:$0xff] %v2617_v15  ;;  %v2618_v44 = vsel %vm2418_vm3, %v4447_v41, %v3001_v26  ;;  %v3003_v13 = vadd.f32 -1.0, %v3459_v50  ;;  %v2521_v14 = vmul.f32 1.442695, %v2469_v45  ;;  %vm2426_vm11 = vcmp.gt.f32.partialorder %v4525_v1, 0.0 }
 0x270   : > { %v3463_v40 = vpop.eup %3462  ;;  %2658 = vst [vmem:[%s5043_s7 + $0x8] sm:$0xff] %v2618_v44  ;;  %v2619_v29 = vsel %vm2419_vm4, %v4450_v58, %v3002_v22  ;;  %v3004_v43 = vadd.f32 -1.0, %v3461_v54  ;;  %3474 = vpow2.f32 %v2519_v48  ;;  %v2470_v41 = vmin.f32 %v4548_v34, 0.0 }
 0x271   : > { %v3465_v18 = vpop.eup %3464  ;;  %2659 = vst [vmem:[%s5043_s7 + $0x10] sm:$0xff] %v2619_v29  ;;  %v2620_v36 = vsel %vm2420_vm5, %v4453_v56, %v3003_v13  ;;  %v3005_v11 = vadd.f32 -1.0, %v3463_v40  ;;  %3476 = vpow2.f32 %v2521_v14  ;;  %v2344_v37 = vmul.f32 %v4412_v63, %v2297_v57 }
 0x272   : > { %v3467_v58 = vpop.eup %3466  ;;  %2660 = vst [vmem:[%s5043_s7 + $0x18] sm:$0xff] %v2620_v36  ;;  %v2621_v48 = vsel %vm2421_vm6, %v4456_v53, %v3004_v43  ;;  %v3006_v26 = vadd.f32 -1.0, %v3465_v18  ;;  %v2523_v45 = vmul.f32 1.442695, %v2470_v41  ;;  %v5048_v31 = vsub.f32 %v4010_v51, %v4353_v5 }
 0x273   : > { %2661 = vst [vmem:[%s5043_s7 + $0x20] sm:$0xff] %v2621_v48  ;;  %v2622_v57 = vsel %vm2422_vm7, %v4459_v60, %v3005_v11  ;;  %v3007_v50 = vadd.f32 -1.0, %v3467_v58  ;;  %v4598_v15 = vadd.f32 %v4429_v2, %v2344_v37  ;;  %v5049_v53 = vsub.f32 %v4026_v3, %v4353_v5 }
 0x274   : > { %v2298_v56 = vmul.f32 %v4401_v17, %v5048_v31  ;;  %2662 = vst [vmem:[%s5043_s7 + $0x28] sm:$0xff] %v2622_v57  ;;  %v2623_v51 = vsel %vm2423_vm8, %v4468_v8, %v3006_v26  ;;  %3478 = vpow2.f32 %v2523_v45  ;;  %v5050_v54 = vsub.f32 %v4036_v7, %v4353_v5 }
 0x275   : > { %v2299_v22 = vmul.f32 %v4401_v17, %v5049_v53  ;;  %2663 = vst [vmem:[%s5043_s7 + $0x30] sm:$0xff] %v2623_v51  ;;  %v2624_v3 = vsel %vm2424_vm9, %v4475_v9, %v3007_v50  ;;  %vm2427_vm12 = vcmp.gt.f32.partialorder %v4529_v4, 0.0  ;;  %v2471_v8 = vmin.f32 %v4598_v15, 0.0 }
 0x276   : > { %v2345_v60 = vmul.f32 %v4412_v63, %v2298_v56  ;;  %v2300_v44 = vmul.f32 %v4401_v17, %v5050_v54  ;;  %2664 = vst [vmem:[%s5043_s7 + $0x38] sm:$0xff] %v2624_v3  ;;  %vm2428_vm13 = vcmp.gt.f32.partialorder %v4532_v35, 0.0  ;;  %vm2429_vm14 = vcmp.gt.f32.partialorder %v4545_v52, 0.0  ;;  %v3469_v9 = vpop.eup %3468 }
 0x277   : > { %v2346_v13 = vmul.f32 %v4412_v63, %v2299_v22  ;;  %vm2430_vm15 = vcmp.gt.f32.partialorder %v4548_v34, 0.0  ;;  %v2525_v40 = vmul.f32 1.442695, %v2471_v8  ;;  %v5051_v43 = vsub.f32 %v4020_v62, %v4353_v5  ;;  %v3471_v18 = vpop.eup %3470 }
 0x278   : > { %v4630_v7 = vadd.f32 %v4429_v2, %v2345_v60  ;;  %v2347_v14 = vmul.f32 %v4412_v63, %v2300_v44  ;;  %v3008_v36 = vadd.f32 -1.0, %v3469_v9  ;;  %v5052_v58 = vsub.f32 %v4031_v21, %v4353_v5  ;;  %v3473_v26 = vpop.eup %3472 }
 0x279   : > { %v4635_v29 = vadd.f32 %v4429_v2, %v2346_v13  ;;  %v2301_v41 = vmul.f32 %v4401_v17, %v5051_v43  ;;  %v3009_v45 = vadd.f32 -1.0, %v3471_v18  ;;  %3480 = vpow2.f32 %v2525_v40 }
 0x27a   : > { %v2472_v11 = vmin.f32 %v4630_v7, 0.0  ;;  %v4643_v37 = vadd.f32 %v4429_v2, %v2347_v14  ;;  %v2302_v48 = vmul.f32 %v4401_v17, %v5052_v58  ;;  %v5053_v62 = vsub.f32 %v4053_v39, %v4353_v5  ;;  %v3475_v57 = vpop.eup %3474 }
 0x27b   : > { %v2473_v31 = vmin.f32 %v4635_v29, 0.0  ;;  %v2625_v50 = vsel %vm2425_vm10, %v4522_v61, %v3008_v36  ;;  %v3010_v53 = vadd.f32 -1.0, %v3473_v26  ;;  %v5054_v21 = vsub.f32 %v4064_v49, %v4353_v5  ;;  %v3477_v60 = vpop.eup %3476  ;;  %v5056_v26 = vld [vmem:[#allocation4_spill] sm:$0xff] }
 0x27c   : > { %v2303_v56 = vmul.f32 %v4401_v17, %v5053_v62  ;;  %v2527_v22 = vmul.f32 1.442695, %v2472_v11  ;;  %2665 = vst [vmem:[%s5043_s7 + $0x40] sm:$0xff] %v2625_v50  ;;  %v2626_v39 = vsel %vm2426_vm11, %v4525_v1, %v3009_v45  ;;  %v3011_v54 = vadd.f32 -1.0, %v3475_v57 }
 0x27d   : > { %v2304_v51 = vmul.f32 %v4401_v17, %v5054_v21  ;;  %v2529_v44 = vmul.f32 1.442695, %v2473_v31  ;;  %v2474_v61 = vmin.f32 %v4643_v37, 0.0  ;;  %2666 = vst [vmem:[%s5043_s7 + $0x48] sm:$0xff] %v2626_v39  ;;  %v2627_v49 = vsel %vm2427_vm12, %v4529_v4, %v3010_v53 }
 0x27e   : > { %v3012_v3 = vadd.f32 -1.0, %v3477_v60  ;;  %3482 = vpow2.f32 %v2527_v22  ;;  %v2348_v8 = vmul.f32 %v4412_v63, %v2301_v41  ;;  %2667 = vst [vmem:[%s5043_s7 + $0x50] sm:$0xff] %v2627_v49  ;;  %v2628_v1 = vsel %vm2428_vm13, %v4532_v35, %v3011_v54  ;;  %v3479_v9 = vpop.eup %3478 }
 0x27f   : > { %3484 = vpow2.f32 %v2529_v44  ;;  %v2531_v13 = vmul.f32 1.442695, %v2474_v61  ;;  %v2349_v14 = vmul.f32 %v4412_v63, %v2302_v48  ;;  %2668 = vst [vmem:[%s5043_s7 + $0x58] sm:$0xff] %v2628_v1  ;;  %v2350_v43 = vmul.f32 %v4412_v63, %v2303_v56 }
 0x280   : > { %v2629_v4 = vsel %vm2429_vm14, %v4545_v52, %v3012_v3  ;;  %v4689_v40 = vadd.f32 %v4429_v2, %v2348_v8  ;;  %v2351_v35 = vmul.f32 %v4412_v63, %v2304_v51  ;;  %v3013_v41 = vadd.f32 -1.0, %v3479_v9 }
 0x281   : > { %2669 = vst [vmem:[%s5043_s7 + $0x60] sm:$0xff] %v2629_v4  ;;  %3486 = vpow2.f32 %v2531_v13  ;;  %v4697_v18 = vadd.f32 %v4429_v2, %v2349_v14  ;;  %v5055_v36 = vsub.f32 %v4048_v33, %v4353_v5  ;;  %v4705_v58 = vadd.f32 %v4429_v2, %v2350_v43 }
 0x282   : > { %v2475_v11 = vmin.f32 %v4689_v40, 0.0  ;;  %v4708_v48 = vadd.f32 %v4429_v2, %v2351_v35  ;;  %v2273_v45 = vsub.f32 %v5056_v26, %v4353_v5  ;;  %v2630_v31 = vsel %vm2430_vm15, %v4548_v34, %v3013_v41 }
 0x283   : > { %v2305_v52 = vmul.f32 %v4401_v17, %v5055_v36  ;;  %vm2431_vm0 = vcmp.gt.f32.partialorder %v4598_v15, 0.0  ;;  %v2476_v33 = vmin.f32 %v4697_v18, 0.0  ;;  %2670 = vst [vmem:[%s5043_s7 + $0x68] sm:$0xff] %v2630_v31  ;;  %vm2432_vm1 = vcmp.gt.f32.partialorder %v4630_v7, 0.0  ;;  %v3481_v50 = vpop.eup %3480 }
 0x284   : > { %vm2433_vm2 = vcmp.gt.f32.partialorder %v4635_v29, 0.0  ;;  %v2533_v56 = vmul.f32 1.442695, %v2475_v11  ;;  %v2477_v57 = vmin.f32 %v4705_v58, 0.0  ;;  %v2478_v34 = vmin.f32 %v4708_v48, 0.0 }
 0x285   : > { %v2352_v62 = vmul.f32 %v4412_v63, %v2305_v52  ;;  %v2535_v53 = vmul.f32 1.442695, %v2476_v33  ;;  %v5057_v21 = vsub.f32 %v4058_v46, %v4353_v5  ;;  %v3014_v60 = vadd.f32 -1.0, %v3481_v50 }
 0x286   : > { %3488 = vpow2.f32 %v2533_v56  ;;  %v2537_v39 = vmul.f32 1.442695, %v2477_v57  ;;  %v5058_v54 = vsub.f32 %v4077_v23, %v4353_v5  ;;  %vm2434_vm3 = vcmp.gt.f32.partialorder %v4643_v37, 0.0 }
 0x287   : > { %v4726_v22 = vadd.f32 %v4429_v2, %v2352_v62  ;;  %v2306_v51 = vmul.f32 %v4401_v17, %v5057_v21  ;;  %3490 = vpow2.f32 %v2535_v53  ;;  %v2539_v61 = vmul.f32 1.442695, %v2478_v34 }
 0x288   : > { %v2307_v44 = vmul.f32 %v4401_v17, %v5058_v54  ;;  %v3483_v3 = vpop.eup %3482  ;;  %v2631_v46 = vsel %vm2431_vm0, %v4598_v15, %v3014_v60  ;;  %3492 = vpow2.f32 %v2537_v39  ;;  %v5059_v9 = vsub.f32 %v4088_v27, %v4353_v5 }
 0x289   : > { %v2479_v49 = vmin.f32 %v4726_v22, 0.0  ;;  %v2353_v8 = vmul.f32 %v4412_v63, %v2306_v51  ;;  %v3485_v13 = vpop.eup %3484  ;;  %2671 = vst [vmem:[%s5043_s7 + $0x70] sm:$0xff] %v2631_v46  ;;  %v3015_v23 = vadd.f32 -1.0, %v3483_v3  ;;  %3494 = vpow2.f32 %v2539_v61 }
 0x28a   : > { %v2354_v1 = vmul.f32 %v4412_v63, %v2307_v44  ;;  %v2308_v4 = vmul.f32 %v4401_v17, %v5059_v9  ;;  %v3016_v43 = vadd.f32 -1.0, %v3485_v13  ;;  %v5060_v41 = vsub.f32 %v4072_v0, %v4353_v5 }
 0x28b   : > { %v2541_v14 = vmul.f32 1.442695, %v2479_v49  ;;  %v4751_v15 = vadd.f32 %v4429_v2, %v2353_v8  ;;  %v3487_v52 = vpop.eup %3486  ;;  %v2632_v11 = vsel %vm2432_vm1, %v4630_v7, %v3015_v23  ;;  %v5061_v31 = vsub.f32 %v4082_v19, %v4353_v5 }
 0x28c   : > { %v4754_v35 = vadd.f32 %v4429_v2, %v2354_v1  ;;  %v2309_v36 = vmul.f32 %v4401_v17, %v5060_v41  ;;  %v2355_v27 = vmul.f32 %v4412_v63, %v2308_v4  ;;  %2672 = vst [vmem:[%s5043_s7 + $0x78] sm:$0xff] %v2632_v11  ;;  %v2633_v0 = vsel %vm2433_vm2, %v4635_v29, %v3016_v43 }
 0x28d   : > { %3496 = vpow2.f32 %v2541_v14  ;;  %v2310_v33 = vmul.f32 %v4401_v17, %v5061_v31  ;;  %v3017_v62 = vadd.f32 -1.0, %v3487_v52  ;;  %vm2435_vm4 = vcmp.gt.f32.partialorder %v4689_v40, 0.0  ;;  %2673 = vst [vmem:[%s5043_s7 + $0x80] sm:$0xff] %v2633_v0 }
 0x28e   : > { %v2480_v7 = vmin.f32 %v4751_v15, 0.0  ;;  %vm2436_vm5 = vcmp.gt.f32.partialorder %v4697_v18, 0.0  ;;  %v2481_v19 = vmin.f32 %v4754_v35, 0.0  ;;  %v4782_v56 = vadd.f32 %v4429_v2, %v2355_v27 }
 0x28f   : > { %v2356_v57 = vmul.f32 %v4412_v63, %v2309_v36  ;;  %v2634_v29 = vsel %vm2434_vm3, %v4643_v37, %v3017_v62  ;;  %v2357_v53 = vmul.f32 %v4412_v63, %v2310_v33  ;;  %v5062_v34 = vsub.f32 %v4101_v16, %v4353_v5 }
 0x290   : > { %v2543_v50 = vmul.f32 1.442695, %v2480_v7  ;;  %2674 = vst [vmem:[%s5043_s7 + $0x88] sm:$0xff] %v2634_v29  ;;  %vm2437_vm6 = vcmp.gt.f32.partialorder %v4705_v58, 0.0  ;;  %v2545_v51 = vmul.f32 1.442695, %v2481_v19  ;;  %v3489_v37 = vpop.eup %3488  ;;  %v5063_v3 = vsub.f32 %v4112_v59, %v4353_v5 }
 0x291   : > { %v2311_v21 = vmul.f32 %v4401_v17, %v5062_v34  ;;  %v2482_v60 = vmin.f32 %v4782_v56, 0.0  ;;  %v4799_v39 = vadd.f32 %v4429_v2, %v2356_v57  ;;  %vm2438_vm7 = vcmp.gt.f32.partialorder %v4708_v48, 0.0  ;;  %v3491_v44 = vpop.eup %3490 }
 0x292   : > { %3498 = vpow2.f32 %v2543_v50  ;;  %v4803_v16 = vadd.f32 %v4429_v2, %v2357_v53  ;;  %v3018_v61 = vadd.f32 -1.0, %v3489_v37  ;;  %v2312_v46 = vmul.f32 %v4401_v17, %v5063_v3  ;;  %v3493_v8 = vpop.eup %3492 }
 0x293   : > { %v2358_v54 = vmul.f32 %v4412_v63, %v2311_v21  ;;  %3500 = vpow2.f32 %v2545_v51  ;;  %v2547_v49 = vmul.f32 1.442695, %v2482_v60  ;;  %v3019_v1 = vadd.f32 -1.0, %v3491_v44  ;;  %v3495_v14 = vpop.eup %3494 }
 0x294   : > { %vm2439_vm8 = vcmp.gt.f32.partialorder %v4726_v22, 0.0  ;;  %v2483_v13 = vmin.f32 %v4799_v39, 0.0  ;;  %v2484_v23 = vmin.f32 %v4803_v16, 0.0  ;;  %v2635_v9 = vsel %vm2435_vm4, %v4689_v40, %v3018_v61 }
 0x295   : > { %v3020_v4 = vadd.f32 -1.0, %v3493_v8  ;;  %3502 = vpow2.f32 %v2547_v49  ;;  %v4817_v43 = vadd.f32 %v4429_v2, %v2358_v54  ;;  %2675 = vst [vmem:[%s5043_s7 + $0x90] sm:$0xff] %v2635_v9  ;;  %v2636_v59 = vsel %vm2436_vm5, %v4697_v18, %v3019_v1 }
 0x296   : > { %v3021_v41 = vadd.f32 -1.0, %v3495_v14  ;;  %v2549_v36 = vmul.f32 1.442695, %v2483_v13  ;;  %v2551_v52 = vmul.f32 1.442695, %v2484_v23  ;;  %2676 = vst [vmem:[%s5043_s7 + $0x98] sm:$0xff] %v2636_v59  ;;  %v2359_v31 = vmul.f32 %v4412_v63, %v2312_v46 }
 0x297   : > { %v3497_v11 = vpop.eup %3496  ;;  %v2637_v40 = vsel %vm2437_vm6, %v4705_v58, %v3020_v4  ;;  %vm2440_vm9 = vcmp.gt.f32.partialorder %v4751_v15, 0.0  ;;  %v2485_v27 = vmin.f32 %v4817_v43, 0.0  ;;  %v5064_v0 = vsub.f32 %v4096_v42, %v4353_v5 }
 0x298   : > { %2677 = vst [vmem:[%s5043_s7 + $0xa0] sm:$0xff] %v2637_v40  ;;  %v2638_v18 = vsel %vm2438_vm7, %v4708_v48, %v3021_v41  ;;  %v3022_v33 = vadd.f32 -1.0, %v3497_v11  ;;  %3504 = vpow2.f32 %v2549_v36  ;;  %v4848_v7 = vadd.f32 %v4429_v2, %v2359_v31 }
 0x299   : > { %v2313_v58 = vmul.f32 %v4401_v17, %v5064_v0  ;;  %2678 = vst [vmem:[%s5043_s7 + $0xa8] sm:$0xff] %v2638_v18  ;;  %3506 = vpow2.f32 %v2551_v52  ;;  %v2553_v62 = vmul.f32 1.442695, %v2485_v27  ;;  %v5065_v19 = vsub.f32 %v4106_v55, %v4353_v5 }
 0x29a   : > { %v2639_v42 = vsel %vm2439_vm8, %v4726_v22, %v3022_v33  ;;  %v5066_v29 = vsub.f32 %v4125_v32, %v4353_v5  ;;  %v5067_v53 = vsub.f32 %v4136_v47, %v4353_v5  ;;  %vm2441_vm10 = vcmp.gt.f32.partialorder %v4754_v35, 0.0 }
 0x29b   : > { %v2314_v48 = vmul.f32 %v4401_v17, %v5065_v19  ;;  %v2360_v57 = vmul.f32 %v4412_v63, %v2313_v58  ;;  %2679 = vst [vmem:[%s5043_s7 + $0xb0] sm:$0xff] %v2639_v42  ;;  %3508 = vpow2.f32 %v2553_v62  ;;  %v2486_v55 = vmin.f32 %v4848_v7, 0.0 }
 0x29c   : > { %v2315_v50 = vmul.f32 %v4401_v17, %v5066_v29  ;;  %v2316_v34 = vmul.f32 %v4401_v17, %v5067_v53  ;;  %v3499_v21 = vpop.eup %3498  ;;  %vm2442_vm11 = vcmp.gt.f32.partialorder %v4782_v56, 0.0  ;;  %v2317_v61 = vmul.f32 %v4401_v17, %v2269_v30 }
 0x29d   : > { %v2361_v22 = vmul.f32 %v4412_v63, %v2314_v48  ;;  %v4874_v32 = vadd.f32 %v4429_v2, %v2360_v57  ;;  %v3501_v60 = vpop.eup %3500  ;;  %v3023_v37 = vadd.f32 -1.0, %v3499_v21  ;;  %v2555_v54 = vmul.f32 1.442695, %v2486_v55 }
 0x29e   : > { %v2362_v47 = vmul.f32 %v4412_v63, %v2315_v50  ;;  %v2363_v51 = vmul.f32 %v4412_v63, %v2316_v34  ;;  %v3024_v49 = vadd.f32 -1.0, %v3501_v60  ;;  %v2318_v8 = vmul.f32 %v4401_v17, %v2270_v20 }
 0x29f   : > { %v4879_v44 = vadd.f32 %v4429_v2, %v2361_v22  ;;  %v2487_v3 = vmin.f32 %v4874_v32, 0.0  ;;  %v3503_v1 = vpop.eup %3502  ;;  %v2640_v13 = vsel %vm2440_vm9, %v4751_v15, %v3023_v37  ;;  %vm2443_vm12 = vcmp.gt.f32.partialorder %v4799_v39, 0.0 }
 0x2a0   : > { %v4887_v46 = vadd.f32 %v4429_v2, %v2362_v47  ;;  %3510 = vpow2.f32 %v2555_v54  ;;  %2680 = vst [vmem:[%s5043_s7 + $0xb8] sm:$0xff] %v2640_v13  ;;  %v2641_v38 = vsel %vm2441_vm10, %v4754_v35, %v3024_v49  ;;  %v3025_v30 = vadd.f32 -1.0, %v3503_v1 }
 0x2a1   : > { %v2488_v28 = vmin.f32 %v4879_v44, 0.0  ;;  %vm2444_vm13 = vcmp.gt.f32.partialorder %v4803_v16, 0.0  ;;  %v2557_v20 = vmul.f32 1.442695, %v2487_v3  ;;  %2681 = vst [vmem:[%s5043_s7 + $0xc0] sm:$0xff] %v2641_v38  ;;  %v4910_v14 = vadd.f32 %v4429_v2, %v2363_v51 }
 0x2a2   : > { %v2489_v23 = vmin.f32 %v4887_v46, 0.0  ;;  %v2364_v9 = vmul.f32 %v4412_v63, %v2317_v61  ;;  %v3505_v4 = vpop.eup %3504  ;;  %v2642_v35 = vsel %vm2442_vm11, %v4782_v56, %v3025_v30  ;;  %v2365_v59 = vmul.f32 %v4412_v63, %v2318_v8 }
 0x2a3   : > { %v2559_v15 = vmul.f32 1.442695, %v2488_v28  ;;  %3512 = vpow2.f32 %v2557_v20  ;;  %v2319_v41 = vmul.f32 %v4401_v17, %v2271_v12  ;;  %v3507_v36 = vpop.eup %3506  ;;  %2682 = vst [vmem:[%s5043_s7 + $0xc8] sm:$0xff] %v2642_v35  ;;  %v3026_v52 = vadd.f32 -1.0, %v3505_v4 }
 0x2a4   : > { %vm2445_vm14 = vcmp.gt.f32.partialorder %v4817_v43, 0.0  ;;  %v2561_v11 = vmul.f32 1.442695, %v2489_v23  ;;  %v3027_v40 = vadd.f32 -1.0, %v3507_v36  ;;  %v2490_v56 = vmin.f32 %v4910_v14, 0.0 }
 0x2a5   : > { %3514 = vpow2.f32 %v2559_v15  ;;  %v4927_v27 = vadd.f32 %v4429_v2, %v2364_v9  ;;  %v4930_v25 = vadd.f32 %v4429_v2, %v2365_v59  ;;  %v3509_v12 = vpop.eup %3508  ;;  %v2643_v31 = vsel %vm2443_vm12, %v4799_v39, %v3026_v52 }
 0x2a6   : > { %3516 = vpow2.f32 %v2561_v11  ;;  %v2366_v18 = vmul.f32 %v4412_v63, %v2319_v41  ;;  %v2320_v33 = vmul.f32 %v4401_v17, %v2272_v6  ;;  %2683 = vst [vmem:[%s5043_s7 + $0xd0] sm:$0xff] %v2643_v31  ;;  %v2644_v0 = vsel %vm2444_vm13, %v4803_v16, %v3027_v40 }
 0x2a7   : > { %v3028_v58 = vadd.f32 -1.0, %v3509_v12  ;;  %v2563_v62 = vmul.f32 1.442695, %v2490_v56  ;;  %v2274_v39 = vsub.f32 %v4145_v24, %v4353_v5  ;;  %2684 = vst [vmem:[%s5043_s7 + $0xd8] sm:$0xff] %v2644_v0  ;;  %v2491_v10 = vmin.f32 %v4927_v27, 0.0 }
 0x2a8   : > { %v2492_v6 = vmin.f32 %v4930_v25, 0.0  ;;  %v4954_v19 = vadd.f32 %v4429_v2, %v2366_v18  ;;  %v2367_v48 = vmul.f32 %v4412_v63, %v2320_v33  ;;  %v2321_v24 = vmul.f32 %v4401_v17, %v2273_v45 }
 0x2a9   : > { %v2645_v16 = vsel %vm2445_vm14, %v4817_v43, %v3028_v58  ;;  %3518 = vpow2.f32 %v2563_v62  ;;  %vm2446_vm15 = vcmp.gt.f32.partialorder %v4848_v7, 0.0  ;;  %v2565_v57 = vmul.f32 1.442695, %v2491_v10 }
 0x2aa   : > { %v3511_v42 = vpop.eup %3510  ;;  %2685 = vst [vmem:[%s5043_s7 + $0xe0] sm:$0xff] %v2645_v16  ;;  %v2567_v29 = vmul.f32 1.442695, %v2492_v6  ;;  %v2493_v50 = vmin.f32 %v4954_v19, 0.0  ;;  %v2414_v53 = vadd.f32 %v4429_v2, %v2367_v48  ;;  %v2368_v34 = vmul.f32 %v4412_v63, %v2321_v24 }
 0x2ab   : > { %v3029_v43 = vadd.f32 -1.0, %v3511_v42  ;;  %v2322_v5 = vmul.f32 %v4401_v17, %v2274_v39  ;;  %vm2447_vm0 = vcmp.gt.f32.partialorder %v4874_v32, 0.0  ;;  %3520 = vpow2.f32 %v2565_v57 }
 0x2ac   : > { %v2569_v26 = vmul.f32 1.442695, %v2493_v50  ;;  %vm2448_vm1 = vcmp.gt.f32.partialorder %v4879_v44, 0.0  ;;  %3522 = vpow2.f32 %v2567_v29  ;;  %v2494_v22 = vmin.f32 %v2414_v53, 0.0 }
 0x2ad   : > { %v3513_v45 = vpop.eup %3512  ;;  %v2646_v55 = vsel %vm2446_vm15, %v4848_v7, %v3029_v43  ;;  %v2415_v17 = vadd.f32 %v4429_v2, %v2368_v34  ;;  %v2369_v51 = vmul.f32 %v4412_v63, %v2322_v5  ;;  %vm2449_vm2 = vcmp.gt.f32.partialorder %v4887_v46, 0.0 }
 0x2ae   : > { %2686 = vst [vmem:[%s5043_s7 + $0xe8] sm:$0xff] %v2646_v55  ;;  %v3030_v47 = vadd.f32 -1.0, %v3513_v45  ;;  %3524 = vpow2.f32 %v2569_v26  ;;  %v2571_v37 = vmul.f32 1.442695, %v2494_v22  ;;  %vm2450_vm3 = vcmp.gt.f32.partialorder %v4910_v14, 0.0 }
 0x2af   : > { %v3515_v21 = vpop.eup %3514  ;;  %v2495_v61 = vmin.f32 %v2415_v17, 0.0  ;;  %v2416_v49 = vadd.f32 %v4429_v2, %v2369_v51  ;;  %vm2451_vm4 = vcmp.gt.f32.partialorder %v4927_v27, 0.0  ;;  %vm2452_vm5 = vcmp.gt.f32.partialorder %v4930_v25, 0.0 }
 0x2b0   : > { %v3031_v60 = vadd.f32 -1.0, %v3515_v21  ;;  %v3517_v54 = vpop.eup %3516  ;;  %v2647_v7 = vsel %vm2447_vm0, %v4874_v32, %v3030_v47  ;;  %3526 = vpow2.f32 %v2571_v37  ;;  %vm2453_vm6 = vcmp.gt.f32.partialorder %v4954_v19, 0.0 }
 0x2b1   : > { %2687 = vst [vmem:[%s5043_s7 + $0xf0] sm:$0xff] %v2647_v7  ;;  %v3032_v3 = vadd.f32 -1.0, %v3517_v54  ;;  %v2573_v32 = vmul.f32 1.442695, %v2495_v61  ;;  %v2496_v8 = vmin.f32 %v2416_v49, 0.0  ;;  %vm2454_vm7 = vcmp.gt.f32.partialorder %v2414_v53, 0.0 }
 0x2b2   : > { %v2648_v63 = vsel %vm2448_vm1, %v4879_v44, %v3031_v60  ;;  %vm2455_vm8 = vcmp.gt.f32.partialorder %v2415_v17, 0.0  ;;  %vm2456_vm9 = vcmp.gt.f32.partialorder %v2416_v49, 0.0 }
 0x2b3   : > { %2688 = vst [vmem:[%s5043_s7 + $0xf8] sm:$0xff] %v2648_v63  ;;  %v3519_v1 = vpop.eup %3518  ;;  %v2649_v13 = vsel %vm2449_vm2, %v4887_v46, %v3032_v3  ;;  %3528 = vpow2.f32 %v2573_v32  ;;  %v2575_v44 = vmul.f32 1.442695, %v2496_v8 }
 0x2b4   : > { %2689 = vst [vmem:[%s5043_s7 + $0x100] sm:$0xff] %v2649_v13  ;;  %v3033_v2 = vadd.f32 -1.0, %v3519_v1 }
 0x2b5   : > { %v3521_v28 = vpop.eup %3520  ;;  %3530 = vpow2.f32 %v2575_v44 }
 0x2b6   : > { %v2650_v38 = vsel %vm2450_vm3, %v4910_v14, %v3033_v2  ;;  %v3523_v30 = vpop.eup %3522  ;;  %v3034_v46 = vadd.f32 -1.0, %v3521_v28 }
 0x2b7   : > { %2690 = vst [vmem:[%s5043_s7 + $0x108] sm:$0xff] %v2650_v38  ;;  %v3035_v15 = vadd.f32 -1.0, %v3523_v30 }
 0x2b8   : > { %v3525_v20 = vpop.eup %3524  ;;  %v2651_v23 = vsel %vm2451_vm4, %v4927_v27, %v3034_v46 }
 0x2b9   : > { %v3036_v9 = vadd.f32 -1.0, %v3525_v20  ;;  %2691 = vst [vmem:[%s5043_s7 + $0x110] sm:$0xff] %v2651_v23  ;;  %v2652_v14 = vsel %vm2452_vm5, %v4930_v25, %v3035_v15 }
 0x2ba   : > { %v3527_v4 = vpop.eup %3526  ;;  %2692 = vst [vmem:[%s5043_s7 + $0x118] sm:$0xff] %v2652_v14 }
 0x2bb   : > { %v2653_v35 = vsel %vm2453_vm6, %v4954_v19, %v3036_v9  ;;  %v3037_v59 = vadd.f32 -1.0, %v3527_v4 }
 0x2bc   : > { %2693 = vst [vmem:[%s5043_s7 + $0x120] sm:$0xff] %v2653_v35 }
 0x2bd   : > { %v3529_v41 = vpop.eup %3528  ;;  %v2654_v36 = vsel %vm2454_vm7, %v2414_v53, %v3037_v59 }
 0x2be   : > { %2694 = vst [vmem:[%s5043_s7 + $0x128] sm:$0xff] %v2654_v36  ;;  %v3038_v52 = vadd.f32 -1.0, %v3529_v41 }
 0x2bf   : > { %v3531_v11 = vpop.eup %3530 }
 0x2c0   : > { %v2655_v40 = vsel %vm2455_vm8, %v2415_v17, %v3038_v52  ;;  %v3039_v56 = vadd.f32 -1.0, %v3531_v11 }
 0x2c1   : > { %2695 = vst [vmem:[%s5043_s7 + $0x130] sm:$0xff] %v2655_v40 }
 0x2c2   : > { %v2656_v27 = vsel %vm2456_vm9, %v2416_v49, %v3039_v56 }
 0x2c3   : > { %2696 = vst [vmem:[%s5043_s7 + $0x138] sm:$0xff] %v2656_v27 }
 0x2c4 PF: > { %s17_s26 = sadd.s32 1, %s3554_s26   ;;  %s5068_s24 = smov %s3550_s25 }
 0x2c5   : > { %p14_p6 = scmp.ge.s32.totalorder %s17_s26, 4   ;;  %s5069_s25 = smov %s5071_s27 }
 0x2c7   :  { %16 = sbr.rel (!%p14_p6) target bundleno = 2 (0x2), region = 98 }

// kernel: vae_forward_pallas.7
= control target key start
LH: loop header
LB: loop body
LE: loop exit
PB: predicated region body
PF: predicated region fallthrough
CT: control target
= control target key end

     0   :  { %s1024_s21 = smov 0   ;;  %s1026_s22 = smov 0   ;;  %s1139_s0 = inlined_call_operand.vmem [shape: bf16[32,72], index: 0, kind: input, shape index: {}]   ;;  %s1140_s1 = inlined_call_operand.vmem [shape: bf16[72,256], index: 1, kind: input, shape index: {}]   ;;  %s1141_s2 = inlined_call_operand.vmem [shape: f32[1,256], index: 2, kind: input, shape index: {}]   ;;  %s1142_s3 = inlined_call_operand.vmem [shape: f32[1,128], index: 3, kind: input, shape index: {}]   ;;  %s1143_s4 = inlined_call_operand.vmem [shape: f32[1,128], index: 4, kind: input, shape index: {}]   ;;  %s1144_s5 = inlined_call_operand.vmem [shape: f32[32,128], index: 5, kind: output, shape index: {0}]   ;;  %s1145_s6 = inlined_call_operand.vmem [shape: bf16[32,128], index: 6, kind: output, shape index: {1}]  }
   0x1   :  { %s1028_s23 = smov 0  }
   0x2 LB: > { %s29_s24 = sadd.s32 1, %s981_s22  ;;  %p813_p0 = scmp.ge.s32.totalorder %s985_s23, 1  ;;  %s985_s23 = sphi %s1028_s23, %s17_s23   ;;  %s981_s22 = sphi %s1026_s22, %s1147_s22   ;;  %s977_s21 = sphi %s1024_s21, %s1146_s21  }
   0x3   : > { %p31_p1 = scmp.ge.s32.totalorder %s29_s24, 2  ;;  %p228_p2 = scmp.lt.s32.totalorder %s985_s23, 3 }
   0x5   : > { %s1149_s24 = smov (%p31_p1, %s29_s24), 0  ;;  %p229_p3 = pnand %p813_p0, %p228_p2 }
   0x6   : > { %p814_p4 = scmp.ne.s32.totalorder (!%p229_p3), %s977_s21, 0 }
   0x7   : > { %232 = sbr.rel (%p229_p3) target bundleno = 545 (0x221), region = 40 }
   0xe   : > { %300 = sbr.rel (%p814_p4) target bundleno = 275 (0x113), region = 44  ;;  %v930_v0 = vld [vmem:[%s1140_s1 + $0x4] ss:$8 sps:$4 sm:$0xff] (!%p814_p4)   ;;  %v931_v1 = vld [vmem:[%s1140_s1 + $0x14] ss:$8 sps:$4 sm:$0xff] (!%p814_p4)   ;;  %vm364_vm0 = vcmask (!%p814_p4), 588800  }
   0xf   : > { %879 = vmatprep.subr.bf16.mxu0 (!%p814_p4), %v930_v0  ;;  %v932_v2 = vld [vmem:[%s1140_s1 + $0x24] ss:$8 sps:$4 sm:$0xff] (!%p814_p4)   ;;  %v933_v4 = vld [vmem:[%s1140_s1 + $0x34] ss:$8 sps:$4 sm:$0xff] (!%p814_p4)   ;;  %vm371_vm1 = vcmask (!%p814_p4), 1043456   ;;  %v987_v8 = vmov (!%p814_p4), 0.0  }
  0x10   : > { %880 = vmatpush3.bf16.msra.mxu0 (!%p814_p4), %v930_v0  ;;  %v935_v3 = vld [vmem:[%s1139_s0] sm:$0xff] (!%p814_p4)   ;;  %v936_v7 = vld [vmem:[%s1139_s0 + $0x8] sm:$0xff] (!%p814_p4)   ;;  %305 = vst [vmem:[#allocation2] sm:$0x1] (!%p814_p4), %v987_v8  ;;  %306 = vst [vmem:[#allocation3] sm:$0x1] (!%p814_p4), %v987_v8 }
  0x11   : > { %881 = vmatprep.subr.bf16.mxu0 (!%p814_p4), %v931_v1  ;;  %889 = vmatprep.mubr.msk.bf16.mxu0 (!%p814_p4), %vm364_vm0, %v935_v3  ;;  %v934_v5 = vld [vmem:[%s1140_s1 + $0x44] ss:$0 sps:$4 sm:$0xff] (!%p814_p4)   ;;  %v815_v9 = vld [vmem:[%s1141_s2 + $0x1] ss:$0 sm:$0xff] (!%p814_p4) }
  0x12   : > { %v373_v6 = vsel (!%p814_p4), %vm371_vm1, %v934_v5, 0 }
  0x14   : > { %882 = vmatpush3.bf16.msra.mxu0 (!%p814_p4), %v931_v1 }
  0x15   : > { %883 = vmatprep.subr.bf16.mxu0 %v932_v2 }
  0x17   : > { %v436_v37 = vld [vmem:[#allocation2] sm:$0x1]  ;;  %v448_v40 = vld [vmem:[#allocation3] sm:$0x1] }
  0x18   : > { %884 = vmatpush3.bf16.msra.mxu0 %v932_v2 }
  0x19   : > { %885 = vmatprep.subr.bf16.mxu0 %v933_v4 }
  0x1c   : > { %886 = vmatpush3.bf16.msra.mxu0 %v933_v4 }
  0x1d   : > { %903 = vmatprep.subr.msk.bf16.mxu0 %vm371_vm1, %v934_v5 }
  0x20   : > { %888 = vmatpush3.bf16.msra.mxu0 %v373_v6 }
  0x23   : > { %890 = vmatmul.mubr.msk.bf16.vlgmr.msra.gmra.mrb[0].mxu0 %vm364_vm0, %v936_v7 }
  0xf6   : > { %v891_v10 = vpop.f32.mrb[0].mxu0 }
  0xf7   : > { %v409_v11 = vpop.f32.mrb[1].mxu0  ;;  %v418_v15 = vadd.f32 %v891_v10, %v815_v9 }
  0xf8   : > { %v410_v12 = vadd.f32 %v815_v9, %v409_v11  ;;  %v892_v13 = vpop.f32.mrb[2].mxu0 }
  0xf9   : > { %v412_v14 = vpop.f32.mrb[3].mxu0  ;;  %v421_v18 = vadd.f32 %v892_v13, %v815_v9  ;;  %v451_v21 = vmul.f32 %v418_v15, %v418_v15 }
  0xfa   : > { %v413_v16 = vadd.f32 %v815_v9, %v412_v14  ;;  %v449_v17 = vmul.f32 %v410_v12, %v410_v12 }
  0xfb   : > { %v452_v24 = vmul.f32 %v421_v18, %v421_v18 }
  0xfc   : > { %v437_v19 = vadd.f32 %v413_v16, %v410_v12  ;;  %v450_v20 = vmul.f32 %v413_v16, %v413_v16 }
  0xfe   : > { %v438_v22 = vadd.f32 %v437_v19, %v418_v15  ;;  %v453_v23 = vadd.f32 %v450_v20, %v449_v17 }
 0x100   : > { %v439_v25 = vadd.f32 %v438_v22, %v421_v18  ;;  %v454_v26 = vadd.f32 %v453_v23, %v451_v21 }
 0x102   : > { %v440_v27 = vrot.slane %v439_v25, 4  ;;  %v455_v28 = vadd.f32 %v454_v26, %v452_v24 }
 0x104   : > { %v441_v29 = vadd.f32 %v440_v27, %v439_v25  ;;  %v456_v30 = vrot.slane %v455_v28, 4 }
 0x106   : > { %v442_v31 = vrot.slane %v441_v29, 2  ;;  %v457_v32 = vadd.f32 %v456_v30, %v455_v28 }
 0x108   : > { %v443_v33 = vadd.f32 %v442_v31, %v441_v29  ;;  %v458_v34 = vrot.slane %v457_v32, 2 }
 0x10a   : > { %v444_v35 = vrot.slane %v443_v33, 1  ;;  %v459_v36 = vadd.f32 %v458_v34, %v457_v32 }
 0x10c   : > { %v445_v38 = vadd.f32 %v444_v35, %v443_v33  ;;  %v460_v39 = vrot.slane %v459_v36, 1 }
 0x10e   : > { %v446_v41 = vadd.f32 %v445_v38, %v436_v37  ;;  %v461_v42 = vadd.f32 %v460_v39, %v459_v36 }
 0x110   : > { %447 = vst [vmem:[#allocation2] sm:$0x1] %v446_v41  ;;  %v462_v43 = vadd.f32 %v461_v42, %v448_v40 }
 0x112   : > { %463 = vst [vmem:[#allocation3] sm:$0x1] %v462_v43 }
 0x113 PF: > { %p825_p5 = scmp.ne.s32.totalorder %s977_s21, 1 }
 0x114   : > { %v937_v44 = vld [vmem:[%s1140_s1 + $0x4] ss:$8 sps:$4 sm:$0xff] (!%p825_p5)   ;;  %v939_v45 = vld [vmem:[%s1140_s1] ss:$8 sps:$4 sm:$0xff] (!%p825_p5)   ;;  %v988_v46 = vmov (!%p825_p5), 0   ;;  %vm555_vm2 = vcmask (!%p825_p5), 1043456   ;;  %v483_v2 = vlaneseq (!%p825_p5) }
 0x115   : > { %467 = sbr.rel (%p825_p5) target bundleno = 545 (0x221), region = 52  ;;  %594 = vmatprep.mubr.bf16.mxu0 (!%p825_p5), %v988_v46  ;;  %604 = vmatprep.mubr.bf16.mxu1 (!%p825_p5), %v988_v46  ;;  %v940_v47 = vld [vmem:[%s1140_s1 + $0x14] ss:$8 sps:$4 sm:$0xff] (!%p825_p5)   ;;  %v942_v48 = vld [vmem:[%s1140_s1 + $0x10] ss:$8 sps:$4 sm:$0xff] (!%p825_p5)   ;;  %v480_v52 = vld [vmem:[%s1140_s1 + $0x40] sm:$0xff] (!%p825_p5) }
 0x116   : > { %562 = vmatprep.subr.bf16.mxu0 (!%p825_p5), %v937_v44  ;;  %893 = vmatprep.subr.bf16.mxu1 (!%p825_p5), %v937_v44  ;;  %v943_v49 = vld [vmem:[%s1140_s1 + $0x24] ss:$8 sps:$4 sm:$0xff] (!%p825_p5)   ;;  %v945_v50 = vld [vmem:[%s1140_s1 + $0x20] ss:$8 sps:$4 sm:$0xff] (!%p825_p5)   ;;  %v946_v51 = vld [vmem:[%s1140_s1 + $0x34] ss:$8 sps:$4 sm:$0xff] (!%p825_p5)   ;;  %v837_v54 = vcombine.high (!%p825_p5), %v480_v52, %v480_v52  ;;  %v836_v55 = vcombine.low (!%p825_p5), %v480_v52, %v480_v52 }
 0x117   : > { %563 = vmatpush1.bf16.msra.mxu0 (!%p825_p5), %v939_v45  ;;  %898 = vmatpush1.bf16.msra.mxu1 (!%p825_p5), %v939_v45  ;;  %v948_v53 = vld [vmem:[%s1140_s1 + $0x30] ss:$8 sps:$4 sm:$0xff] (!%p825_p5)   ;;  %v951_v57 = vld [vmem:[%s1139_s0] sm:$0xff] (!%p825_p5)   ;;  %v952_v58 = vld [vmem:[%s1139_s0 + $0x8] sm:$0xff] (!%p825_p5)   ;;  %vm548_vm3 = vcmask (!%p825_p5), 588800   ;;  %v484_v4 = vshrl.u32 (!%p825_p5), %v483_v2, 7 }
 0x118   : > { %564 = vmatprep.subr.bf16.mxu0 (!%p825_p5), %v940_v47  ;;  %894 = vmatprep.subr.bf16.mxu1 (!%p825_p5), %v940_v47  ;;  %v557_v56 = vsel (!%p825_p5), %vm555_vm2, %v836_v55, 0  ;;  %v619_v59 = vld [vmem:[#allocation2] sm:$0x1] (!%p825_p5) }
 0x119   : > { %v620_v60 = vmul.f32 (!%p825_p5), 0.03125, %v619_v59  ;;  %v621_v61 = vld [vmem:[#allocation3] sm:$0x1] (!%p825_p5)  ;;  %v485_v5 = vsub.s32 (!%p825_p5), 0, %v484_v4  ;;  %v489_v7 = vsub.s32 (!%p825_p5), 1, %v484_v4 }
 0x11a   : > { %v622_v62 = vmul.f32 (!%p825_p5), 0.03125, %v621_v61  ;;  %v481_v6 = vld [vmem:[%s1141_s2] sm:$0x3] (!%p825_p5) }
 0x11b   : > { %565 = vmatpush1.bf16.msra.mxu0 (!%p825_p5), %v942_v48  ;;  %899 = vmatpush1.bf16.msra.mxu1 (!%p825_p5), %v942_v48  ;;  %v623_v63 = vmul.f32 (!%p825_p5), %v620_v60, %v620_v60  ;;  %v486_v8 = vrot.slane (!%p825_p5), %v481_v6, %v485_v5  ;;  %v490_v9 = vrot.slane (!%p825_p5), %v481_v6, %v489_v7  ;;  %v841_v31 = vld [vmem:[%s1142_s3] ss:$0 sm:$0xff] (!%p825_p5) }
 0x11c   : > { %566 = vmatprep.subr.bf16.mxu0 %v943_v49  ;;  %895 = vmatprep.subr.bf16.mxu1 %v943_v49  ;;  %v630_v13 = vrot.slane %v620_v60, %v485_v5  ;;  %v842_v36 = vld [vmem:[%s1143_s4] ss:$0 sm:$0xff] }
 0x11d   : > { %v624_v0 = vsub.f32 %v622_v62, %v623_v63 }
 0x11f   : > { %567 = vmatpush1.bf16.msra.mxu0 %v945_v50  ;;  %900 = vmatpush1.bf16.msra.mxu1 %v945_v50  ;;  %v625_v1 = vmax.f32 %v624_v0, 0.0 }
 0x120   : > { %568 = vmatprep.subr.bf16.mxu0 %v946_v51  ;;  %896 = vmatprep.subr.bf16.mxu1 %v946_v51 }
 0x121   : > { %v636_v3 = vadd.f32 1e-05, %v625_v1 }
 0x123   : > { %569 = vmatpush1.bf16.msra.mxu0 %v948_v53  ;;  %901 = vmatpush1.bf16.msra.mxu1 %v948_v53  ;;  %953 = vrsqrt.f32 %v636_v3 }
 0x124   : > { %838 = vmatprep.subr.msk.bf16.mxu0 %vm555_vm2, %v837_v54  ;;  %897 = vmatprep.subr.msk.bf16.mxu1 %vm555_vm2, %v837_v54 }
 0x127   : > { %571 = vmatpush1.bf16.msra.mxu0 %v557_v56  ;;  %902 = vmatpush1.bf16.msra.mxu1 %v557_v56 }
 0x12a   : > { %839 = vmatmul.mubr.msk.bf16.vlgmr.msra.gmra.mrb[0].mxu0 %vm548_vm3, %v951_v57  ;;  %840 = vmatmul.mubr.msk.bf16.vlgmr.msra.gmra.mrb[0].mxu1 %vm548_vm3, %v952_v58 }
 0x12d   : > { %v954_v10 = vpop.eup %953 }
 0x12e   : > { %v642_v19 = vrot.slane %v954_v10, %v485_v5 }
 0x1fd   : > { %v596_v11 = vpop.f32.mrb[0].mxu0  ;;  %v606_v12 = vpop.f32.mrb[0].mxu1 }
 0x1fe   : > { %v597_v14 = vadd.f32 %v596_v11, %v486_v8  ;;  %v607_v15 = vadd.f32 %v606_v12, %v486_v8  ;;  %v598_v16 = vpop.f32.mrb[1].mxu0  ;;  %v608_v17 = vpop.f32.mrb[1].mxu1 }
 0x1ff   : > { %v599_v18 = vadd.f32 %v598_v16, %v490_v9  ;;  %v609_v20 = vadd.f32 %v608_v17, %v490_v9  ;;  %v600_v21 = vpop.f32.mrb[2].mxu0  ;;  %v610_v22 = vpop.f32.mrb[2].mxu1 }
 0x200   : > { %615 = vst [vmem:[%s1144_s5] sm:$0xff] %v597_v14  ;;  %617 = vst [vmem:[%s1144_s5 + $0x10] sm:$0xff] %v607_v15  ;;  %v601_v23 = vadd.f32 %v600_v21, %v486_v8  ;;  %v611_v24 = vadd.f32 %v610_v22, %v486_v8  ;;  %v602_v25 = vpop.f32.mrb[3].mxu0  ;;  %v612_v26 = vpop.f32.mrb[3].mxu1 }
 0x201   : > { %v632_v27 = vsub.f32 %v599_v18, %v630_v13  ;;  %v634_v28 = vsub.f32 %v609_v20, %v630_v13  ;;  %v603_v29 = vadd.f32 %v602_v25, %v490_v9  ;;  %v613_v30 = vadd.f32 %v612_v26, %v490_v9 }
 0x202   : > { %616 = vst [vmem:[%s1144_s5 + $0x8] sm:$0xff] %v601_v23  ;;  %618 = vst [vmem:[%s1144_s5 + $0x18] sm:$0xff] %v611_v24 }
 0x203   : > { %v644_v32 = vmul.f32 %v642_v19, %v632_v27  ;;  %v646_v33 = vmul.f32 %v642_v19, %v634_v28  ;;  %v633_v34 = vsub.f32 %v603_v29, %v630_v13  ;;  %v635_v35 = vsub.f32 %v613_v30, %v630_v13 }
 0x205   : > { %v655_v37 = vmul.f32 %v841_v31, %v644_v32  ;;  %v657_v38 = vmul.f32 %v841_v31, %v646_v33  ;;  %v645_v39 = vmul.f32 %v642_v19, %v633_v34  ;;  %v647_v40 = vmul.f32 %v642_v19, %v635_v35 }
 0x207   : > { %v666_v41 = vadd.f32 %v842_v36, %v655_v37  ;;  %v668_v42 = vadd.f32 %v842_v36, %v657_v38  ;;  %v656_v43 = vmul.f32 %v841_v31, %v645_v39  ;;  %v658_v44 = vmul.f32 %v841_v31, %v647_v40 }
 0x209   : > { %v674_v45 = vmin.f32 %v666_v41, 0.0  ;;  %v676_v46 = vmin.f32 %v668_v42, 0.0  ;;  %v667_v47 = vadd.f32 %v842_v36, %v656_v43  ;;  %v669_v48 = vadd.f32 %v842_v36, %v658_v44 }
 0x20a   : > { %vm670_vm4 = vcmp.gt.f32.partialorder %v666_v41, 0.0  ;;  %vm672_vm6 = vcmp.gt.f32.partialorder %v668_v42, 0.0 }
 0x20b   : > { %v678_v49 = vmul.f32 1.442695, %v674_v45  ;;  %v682_v50 = vmul.f32 1.442695, %v676_v46  ;;  %v675_v51 = vmin.f32 %v667_v47, 0.0  ;;  %v677_v52 = vmin.f32 %v669_v48, 0.0 }
 0x20c   : > { %vm671_vm5 = vcmp.gt.f32.partialorder %v667_v47, 0.0  ;;  %vm673_vm7 = vcmp.gt.f32.partialorder %v669_v48, 0.0 }
 0x20d   : > { %955 = vpow2.f32 %v678_v49  ;;  %v680_v53 = vmul.f32 1.442695, %v675_v51  ;;  %v684_v54 = vmul.f32 1.442695, %v677_v52 }
 0x20e   : > { %957 = vpow2.f32 %v682_v50 }
 0x20f   : > { %959 = vpow2.f32 %v680_v53 }
 0x210   : > { %961 = vpow2.f32 %v684_v54 }
 0x217   : > { %v956_v55 = vpop.eup %955 }
 0x218   : > { %v958_v56 = vpop.eup %957  ;;  %v843_v57 = vadd.f32 -1.0, %v956_v55 }
 0x219   : > { %v960_v58 = vpop.eup %959  ;;  %v845_v59 = vadd.f32 -1.0, %v958_v56 }
 0x21a   : > { %v962_v60 = vpop.eup %961  ;;  %v844_v61 = vadd.f32 -1.0, %v960_v58  ;;  %v690_v63 = vsel %vm670_vm4, %v666_v41, %v843_v57 }
 0x21b   : > { %v846_v62 = vadd.f32 -1.0, %v962_v60  ;;  %v692_v1 = vsel %vm672_vm6, %v668_v42, %v845_v59 }
 0x21c   : > { %v691_v0 = vsel %vm671_vm5, %v667_v47, %v844_v61 }
 0x21d   : > { %v864_v2 = vpack.c.bf16 %v691_v0, %v690_v63  ;;  %v693_v3 = vsel %vm673_vm7, %v669_v48, %v846_v62 }
 0x21e   : > { %v869_v4 = vpack.c.bf16 %v693_v3, %v692_v1 }
 0x21f   : > { %865 = vst [vmem:[%s1145_s6] sm:$0xff] %v864_v2  }
 0x220   : > { %871 = vst [vmem:[%s1145_s6 + $0x8] sm:$0xff] %v869_v4  }
 0x221 PF: > { %s17_s23 = sadd.s32 1, %s985_s23   ;;  %s1146_s21 = smov %s981_s22 }
 0x222   : > { %p14_p6 = scmp.ge.s32.totalorder %s17_s23, 4   ;;  %s1147_s22 = smov %s1149_s24 }
 0x224   :  { %16 = sbr.rel (!%p14_p6) target bundleno = 2 (0x2), region = 94 }

// kernel: vae_forward_pallas.9
= control target key start
LH: loop header
LB: loop body
LE: loop exit
PB: predicated region body
PF: predicated region fallthrough
CT: control target
= control target key end

     0   :  { %v278_v6 = vmov 1966171168   ;;  %v67_v8 = vlaneseq  ;;  %s356_s1 = inlined_call_operand.vmem [shape: bf16[256,128], index: 1, kind: input, shape index: {}]   ;;  %s357_s0 = inlined_call_operand.vmem [shape: bf16[2,256], index: 0, kind: input, shape index: {}]   ;;  %s358_s2 = inlined_call_operand.vmem [shape: f32[1,128], index: 2, kind: input, shape index: {}]   ;;  %s359_s3 = inlined_call_operand.vmem [shape: f32[2,128], index: 3, kind: output, shape index: {}]  }
   0x1   :  { %v262_v0 = vld [vmem:[%s356_s1 + $0x40] sm:$0xff]   ;;  %v264_v2 = vld [vmem:[%s356_s1 + $0x48] sm:$0xff]   ;;  %v266_v4 = vld [vmem:[%s356_s1 + $0x50] sm:$0xff]   ;;  %v65_v7 = vunpack.c.l.s4 %v278_v6 }
   0x2   :  { %v263_v1 = vld [vmem:[%s356_s1] sm:$0xff]   ;;  %239 = vmatprep.subr.bf16.mxu0 %v262_v0  ;;  %v265_v3 = vld [vmem:[%s356_s1 + $0x8] sm:$0xff]   ;;  %v267_v5 = vld [vmem:[%s356_s1 + $0x10] sm:$0xff]   ;;  %v68_v12 = vshrl.u32 %v67_v8, 7 }
   0x3   :  { %240 = vmatpush3.bf16.msra.mxu0 %v263_v1  ;;  %v268_v9 = vld [vmem:[%s356_s1 + $0x58] sm:$0xff]   ;;  %v66_v11 = vunpack.c.0.s8 %v65_v7  ;;  %v270_v13 = vld [vmem:[%s356_s1 + $0x60] sm:$0xff]   ;;  %v272_v16 = vld [vmem:[%s356_s1 + $0x68] sm:$0xff]  }
   0x4   :  { %241 = vmatprep.subr.bf16.mxu0 %v264_v2  ;;  %v269_v10 = vld [vmem:[%s356_s1 + $0x18] sm:$0xff]   ;;  %v271_v14 = vld [vmem:[%s356_s1 + $0x20] sm:$0xff]   ;;  %v273_v19 = vld [vmem:[%s356_s1 + $0x28] sm:$0xff]  }
   0x5   :  { %v69_v15 = vsub.s32 %v66_v11, %v68_v12  ;;  %v222_v17 = vld.sshfl [vmem:[%s357_s0] sm:$0x11 pattern:$0x75316420]  ;;  %v274_v21 = vld [vmem:[%s356_s1 + $0x70] sm:$0xff]   ;;  %v276_v23 = vld [vmem:[%s356_s1 + $0x78] sm:$0xff]  }
   0x6   :  { %v63_v18 = vcombine.high %v222_v17, %v222_v17  ;;  %v275_v22 = vld [vmem:[%s356_s1 + $0x30] sm:$0xff]   ;;  %v277_v24 = vld [vmem:[%s356_s1 + $0x38] sm:$0xff]   ;;  %v221_v27 = vld [vmem:[%s358_s2] ss:$0 sm:$0xff] }
   0x7   :  { %242 = vmatpush3.bf16.msra.mxu0 %v265_v3  ;;  %v70_v25 = vrot.slane %v222_v17, %v69_v15 }
   0x8   :  { %243 = vmatprep.subr.bf16.mxu0 %v266_v4  ;;  %v77_v20 = vrot.slane %v63_v18, %v69_v15 }
   0xa   :  { %208 = vmatprep.mubr.bf16.mxu0 %v77_v20 }
   0xb   :  { %244 = vmatpush3.bf16.msra.mxu0 %v267_v5 }
   0xc   :  { %245 = vmatprep.subr.bf16.mxu0 %v268_v9 }
   0xf   :  { %246 = vmatpush3.bf16.msra.mxu0 %v269_v10 }
  0x10   :  { %247 = vmatprep.subr.bf16.mxu0 %v270_v13 }
  0x13   :  { %248 = vmatpush3.bf16.msra.mxu0 %v271_v14 }
  0x14   :  { %249 = vmatprep.subr.bf16.mxu0 %v272_v16 }
  0x17   :  { %250 = vmatpush3.bf16.msra.mxu0 %v273_v19 }
  0x18   :  { %251 = vmatprep.subr.bf16.mxu0 %v274_v21 }
  0x1b   :  { %252 = vmatpush3.bf16.msra.mxu0 %v275_v22 }
  0x1c   :  { %253 = vmatprep.subr.bf16.mxu0 %v276_v23 }
  0x1f   :  { %254 = vmatpush3.bf16.msra.mxu0 %v277_v24 }
  0x22   :  { %209 = vmatmul.mubr.bf16.vlgmr.msra.gmra.mrb[0].mxu0 %v70_v25 }
  0xf5   :  { %v255_v26 = vpop.f32.mrb[0].mxu0 }
  0xf6   :  { %v256_v28 = vpop.f32.mrb[1].mxu0 }
  0xf7   :  { %v257_v29 = vadd.f32 %v256_v28, %v255_v26  ;;  %v258_v30 = vpop.f32.mrb[2].mxu0 }
  0xf8   :  { %v259_v31 = vpop.f32.mrb[3].mxu0 }
  0xf9   :  { %v211_v32 = vadd.f32 %v257_v29, %v221_v27 }
  0xfb   :  { %216 = vst [vmem:[%s359_s3] sm:$0x3] %v211_v32 }

// kernel: vae_forward_pallas.8
= control target key start
LH: loop header
LB: loop body
LE: loop exit
PB: predicated region body
PF: predicated region fallthrough
CT: control target
= control target key end

     0   :  { %s1644_s24 = smov 0   ;;  %s1646_s25 = smov 0   ;;  %s2013_s0 = inlined_call_operand.vmem [shape: bf16[112,24], index: 0, kind: input, shape index: {}]   ;;  %s2014_s1 = inlined_call_operand.vmem [shape: bf16[3,24,128], index: 1, kind: input, shape index: {}]   ;;  %s2015_s2 = inlined_call_operand.vmem [shape: f32[1,128], index: 2, kind: input, shape index: {}]   ;;  %s2016_s3 = inlined_call_operand.vmem [shape: f32[96,128], index: 3, kind: input, shape index: {}]   ;;  %s2017_s4 = inlined_call_operand.vmem [shape: f32[96,1], index: 4, kind: input, shape index: {}]   ;;  %s2018_s5 = inlined_call_operand.vmem [shape: f32[1,128], index: 5, kind: input, shape index: {}]   ;;  %s2019_s6 = inlined_call_operand.vmem [shape: f32[1,128], index: 6, kind: input, shape index: {}]   ;;  %s2020_s7 = inlined_call_operand.vmem [shape: f32[96,128], index: 7, kind: output, shape index: {}]  }
   0x1   :  { %s1648_s26 = smov 0  }
   0x2 LB: > { %s29_s27 = sadd.s32 1, %s1596_s25  ;;  %p1290_p0 = scmp.ge.s32.totalorder %s1600_s26, 1  ;;  %s1600_s26 = sphi %s1648_s26, %s17_s26   ;;  %s1596_s25 = sphi %s1646_s25, %s2022_s25   ;;  %s1592_s24 = sphi %s1644_s24, %s2021_s24  }
   0x3   : > { %p31_p1 = scmp.ge.s32.totalorder %s29_s27, 2  ;;  %p261_p2 = scmp.lt.s32.totalorder %s1600_s26, 3 }
   0x5   : > { %s2024_s27 = smov (%p31_p1, %s29_s27), 0  ;;  %p262_p3 = pnand %p1290_p0, %p261_p2 }
   0x6   : > { %v1526_v0 = vld [vmem:[%s2014_s1] sm:$0xff] (!%p262_p3)   ;;  %vm427_vm0 = vcmask (!%p262_p3), 1043456   ;;  %v1527_v1 = vld [vmem:[%s2014_s1 + $0xc] sm:$0xff] (!%p262_p3)   ;;  %vm408_vm1 = vcmask (!%p262_p3), 195584   ;;  %v1528_v2 = vld [vmem:[%s2014_s1 + $0x8] ss:$0 sps:$4 sm:$0xff] (!%p262_p3)  }
   0x7   : > { %265 = sbr.rel (%p262_p3) target bundleno = 478 (0x1de), region = 48  ;;  %1408 = vmatprep.subr.bf16.mxu1 (!%p262_p3), %v1526_v0  ;;  %1424 = vmatprep.subr.bf16.mxu0 (!%p262_p3), %v1527_v1  ;;  %v1529_v3 = vld [vmem:[%s2014_s1 + $0x14] ss:$0 sps:$4 sm:$0xff] (!%p262_p3)   ;;  %v429_v4 = vsel (!%p262_p3), %vm427_vm0, %v1528_v2, 0  ;;  %v1530_v5 = vld [vmem:[%s2013_s0] sm:$0xff] (!%p262_p3)   ;;  %v1532_v8 = vld [vmem:[%s2013_s0 + $0x8] sm:$0xff] (!%p262_p3)  }
   0x8   : > { %1409 = vmatpush3.bf16.msra.mxu1 (!%p262_p3), %v1526_v0  ;;  %1425 = vmatpush3.bf16.msra.mxu0 (!%p262_p3), %v1527_v1  ;;  %v602_v6 = vsel (!%p262_p3), %vm427_vm0, %v1529_v3, 0  ;;  %v1531_v7 = vld [vmem:[%s2013_s0 + $0x4] sm:$0xff] (!%p262_p3)   ;;  %v1533_v9 = vld [vmem:[%s2013_s0 + $0xc] sm:$0xff] (!%p262_p3)   ;;  %v1534_v10 = vld [vmem:[%s2014_s1 + $0x18] sm:$0xff] (!%p262_p3)   ;;  %p1364_p4 = scmp.ne.s32.totalorder (!%p262_p3), %s1592_s24, 0 }
   0x9   : > { %1496 = vmatprep.subr.msk.bf16.mxu1 (!%p262_p3), %vm427_vm0, %v1528_v2  ;;  %1497 = vmatprep.subr.msk.bf16.mxu0 (!%p262_p3), %vm427_vm0, %v1529_v3  ;;  %v1535_v11 = vld [vmem:[%s2013_s0 + $0x10] sm:$0xff] (!%p262_p3)   ;;  %v1537_v12 = vld [vmem:[%s2014_s1 + $0x20] ss:$0 sps:$4 sm:$0xff] (!%p262_p3)   ;;  %v1538_v13 = vld [vmem:[%s2013_s0 + $0x8] sm:$0xff] (!%p262_p3)  }
   0xa   : > { %1412 = vmatprep.mubr.msk.bf16.mxu1 (!%p262_p3), %vm408_vm1, %v1530_v5  ;;  %1428 = vmatprep.mubr.msk.bf16.mxu0 (!%p262_p3), %vm408_vm1, %v1531_v7  ;;  %v776_v14 = vsel (!%p262_p3), %vm427_vm0, %v1537_v12, 0  ;;  %v1536_v15 = vld [vmem:[%s2013_s0 + $0x18] sm:$0xff] (!%p262_p3)   ;;  %v1540_v16 = vld [vmem:[%s2013_s0 + $0x20] sm:$0xff] (!%p262_p3)   ;;  %v1539_v17 = vld [vmem:[%s2013_s0 + $0x10] sm:$0xff] (!%p262_p3)  }
   0xb   : > { %v1543_v18 = vld [vmem:[%s2013_s0 + $0x18] sm:$0xff] (!%p262_p3)   ;;  %v1541_v19 = vld [vmem:[%s2013_s0 + $0x28] sm:$0xff] (!%p262_p3)   ;;  %v1545_v21 = vld [vmem:[%s2013_s0 + $0x20] sm:$0xff] (!%p262_p3)  }
   0xc   : > { %1411 = vmatpush3.bf16.msra.mxu1 (!%p262_p3), %v429_v4  ;;  %1427 = vmatpush3.bf16.msra.mxu0 (!%p262_p3), %v602_v6  ;;  %v1542_v20 = vld [vmem:[%s2013_s0 + $0x14] sm:$0xff] (!%p262_p3)   ;;  %v1547_v22 = vld [vmem:[%s2013_s0 + $0x28] sm:$0xff] (!%p262_p3)   ;;  %v1544_v23 = vld [vmem:[%s2013_s0 + $0x1c] sm:$0xff] (!%p262_p3)  }
   0xd   : > { %1456 = vmatprep.subr.bf16.mxu1 (!%p262_p3), %v1527_v1  ;;  %1440 = vmatprep.subr.bf16.mxu0 (!%p262_p3), %v1534_v10  ;;  %v1546_v24 = vld [vmem:[%s2013_s0 + $0x24] sm:$0xff] (!%p262_p3)   ;;  %v1549_v25 = vld [vmem:[%s2013_s0 + $0x30] sm:$0xff] (!%p262_p3)   ;;  %v1291_v32 = vld [vmem:[%s2015_s2] ss:$0 sm:$0xff] (!%p262_p3) }
   0xe   : > { %v1548_v26 = vld [vmem:[%s2013_s0 + $0x2c] sm:$0xff]   ;;  %v319_v33 = vld [vmem:[%s2016_s3] sm:$0xff]  ;;  %v322_v34 = vld [vmem:[%s2016_s3 + $0x18] sm:$0xff] }
   0xf   : > { %1413 = vmatmul.mubr.msk.bf16.vlgmr.msra.gmra.mrb[0].mxu1 %vm408_vm1, %v1532_v8  ;;  %1429 = vmatmul.mubr.msk.bf16.vlgmr.msra.gmra.mrb[0].mxu0 %vm408_vm1, %v1533_v9  ;;  %v321_v31 = vld [vmem:[%s2016_s3 + $0x10] sm:$0xff]  ;;  %v320_v36 = vld [vmem:[%s2016_s3 + $0x8] sm:$0xff]  ;;  %v338_v37 = vadd.f32 %v1291_v32, %v319_v33  ;;  %v341_v38 = vadd.f32 %v1291_v32, %v322_v34  ;;  %v323_v53 = vld [vmem:[%s2016_s3 + $0x20] sm:$0xff] }
  0x10   : > { %1458 = vmatpush3.bf16.msra.mxu1 %v1527_v1  ;;  %1441 = vmatpush3.bf16.msra.mxu0 %v1534_v10  ;;  %v340_v35 = vadd.f32 %v1291_v32, %v321_v31  ;;  %v339_v39 = vadd.f32 %v1291_v32, %v320_v36  ;;  %v325_v52 = vld [vmem:[%s2016_s3 + $0x30] sm:$0xff]  ;;  %v326_v54 = vld [vmem:[%s2016_s3 + $0x38] sm:$0xff]  ;;  %v324_v57 = vld [vmem:[%s2016_s3 + $0x28] sm:$0xff]  ;;  %v342_v58 = vadd.f32 %v1291_v32, %v323_v53 }
  0x11   : > { %1416 = vmatprep.mubr.msk.bf16.mxu1 %vm408_vm1, %v1535_v11  ;;  %1499 = vmatprep.subr.msk.bf16.mxu0 %vm427_vm0, %v1537_v12  ;;  %v344_v55 = vadd.f32 %v1291_v32, %v325_v52  ;;  %v345_v60 = vadd.f32 %v1291_v32, %v326_v54  ;;  %v343_v63 = vadd.f32 %v1291_v32, %v324_v57  ;;  %v329_v5 = vld [vmem:[%s2016_s3 + $0x50] sm:$0xff]  ;;  %v327_v9 = vld [vmem:[%s2016_s3 + $0x40] sm:$0xff]  ;;  %v330_v12 = vld [vmem:[%s2016_s3 + $0x58] sm:$0xff] }
  0x12   : > { %1444 = vmatprep.mubr.msk.bf16.mxu0 %vm408_vm1, %v1538_v13  ;;  %1498 = vmatprep.subr.msk.bf16.mxu1 %vm427_vm0, %v1529_v3  ;;  %v887_v52 = vld [vmem:[%s2017_s4 + $0x30] sm:$0xff] (!%p1364_p4) }
  0x13   : > { %vm899_vm9 = vcmp.gt.f32.partialorder (!%p1364_p4), %v887_v52, 0.0 }
  0x14   : > { %1459 = vmatpush3.bf16.msra.mxu1 %v602_v6  ;;  %1443 = vmatpush3.bf16.msra.mxu0 %v776_v14  ;;  %v348_v14 = vadd.f32 %v1291_v32, %v329_v5 }
  0x17   : > { %1417 = vmatmul.mubr.msk.bf16.gmra.mrb[4].mxu1 %vm408_vm1, %v1536_v15 }
  0x18   : > { %1420 = vmatprep.mubr.msk.bf16.mxu1 %vm408_vm1, %v1540_v16  ;;  %v328_v16 = vld [vmem:[%s2016_s3 + $0x48] sm:$0xff] }
  0x1b   : > { %1445 = vmatmul.mubr.msk.bf16.vlgmr.msra.gmra.mrb[0].mxu0 %vm408_vm1, %v1539_v17 }
  0x1c   : > { %1448 = vmatprep.mubr.msk.bf16.mxu0 %vm408_vm1, %v1543_v18  ;;  %v346_v18 = vadd.f32 %v1291_v32, %v327_v9 }
  0x1f   : > { %1421 = vmatmul.mubr.msk.bf16.gmra.mrb[8].mxu1 %vm408_vm1, %v1541_v19 }
  0x20   : > { %1432 = vmatprep.mubr.msk.bf16.mxu1 %vm408_vm1, %v1542_v20  ;;  %v349_v20 = vadd.f32 %v1291_v32, %v330_v12 }
  0x23   : > { %1449 = vmatmul.mubr.msk.bf16.gmra.mrb[4].mxu0 %vm408_vm1, %v1545_v21 }
  0x24   : > { %1452 = vmatprep.mubr.msk.bf16.mxu0 %vm408_vm1, %v1547_v22 }
  0x27   : > { %1433 = vmatmul.mubr.msk.bf16.vlgmr.msra.gmra.mrb[4].mxu1 %vm408_vm1, %v1544_v23  ;;  %v347_v23 = vadd.f32 %v1291_v32, %v328_v16  ;;  %v883_v32 = vld [vmem:[%s2017_s4 + $0x10] sm:$0xff] (!%p1364_p4) }
  0x28   : > { %1436 = vmatprep.mubr.msk.bf16.mxu1 %vm408_vm1, %v1546_v24  ;;  %vm895_vm2 = vcmp.gt.f32.partialorder (!%p1364_p4), %v883_v32, 0.0 }
  0x2b   : > { %1453 = vmatmul.mubr.msk.bf16.gmra.mrb[8].mxu0 %vm408_vm1, %v1549_v25 }
  0x2f   : > { %1437 = vmatmul.mubr.msk.bf16.gmra.mrb[8].mxu1 %vm408_vm1, %v1548_v26 }
  0xe2   : > { %v1414_v27 = vpop.f32.mrb[0].mxu1 }
  0xe3   : > { %v465_v28 = vpop.f32.mrb[1].mxu1  ;;  %v514_v40 = vadd.f32 %v1414_v27, %v340_v35 }
  0xe4   : > { %v1415_v29 = vpop.f32.mrb[2].mxu1  ;;  %v512_v41 = vadd.f32 %v465_v28, %v338_v37  ;;  %v881_v37 = vld [vmem:[%s2017_s4] sm:$0xff] (!%p1364_p4) }
  0xe5   : > { %v468_v30 = vpop.f32.mrb[3].mxu1  ;;  %v515_v43 = vadd.f32 %v1415_v29, %v341_v38  ;;  %v884_v38 = vld [vmem:[%s2017_s4 + $0x18] sm:$0xff] (!%p1364_p4)  ;;  %vm893_vm3 = vcmp.gt.f32.partialorder (!%p1364_p4), %v881_v37, 0.0 }
  0xe6   : > { %v513_v46 = vadd.f32 %v468_v30, %v339_v39  ;;  %v1602_v39 = vmov (!%p1364_p4), 0   ;;  %vm896_vm4 = vcmp.gt.f32.partialorder (!%p1364_p4), %v884_v38, 0.0 }
  0xe7   : > { %1551 = vset.pattern.permute.xlu1 (!%p1364_p4), %v1602_v39  ;;  %1550 = vset.pattern.permute.xlu0 (!%p1364_p4), %v1602_v39 }
  0xee   : > { %v1446_v42 = vpop.f32.mrb[0].mxu0 }
  0xef   : > { %v1776_v44 = vadd.f32 %v1446_v42, %v514_v40  ;;  %v812_v45 = vpop.f32.mrb[1].mxu0  ;;  %v882_v40 = vld [vmem:[%s2017_s4 + $0x8] sm:$0xff] (!%p1364_p4)  ;;  %v905_v42 = vsel (!%p1364_p4), %vm893_vm3, 1, %v1602_v39 }
  0xf0   : > { %v1778_v47 = vadd.f32 %v812_v45, %v512_v41  ;;  %v1447_v48 = vpop.f32.mrb[2].mxu0  ;;  %v907_v41 = vsel (!%p1364_p4), %vm895_vm2, 1, %v1602_v39  ;;  %vm894_vm5 = vcmp.gt.f32.partialorder (!%p1364_p4), %v882_v40, 0.0  ;;  %v885_v45 = vld [vmem:[%s2017_s4 + $0x20] sm:$0xff] (!%p1364_p4)  ;;  %918 = vperm.xlu0 (!%p1364_p4), %1550, %v905_v42  }
  0xf1   : > { %v1780_v49 = vadd.f32 %v1447_v48, %v515_v43  ;;  %v815_v50 = vpop.f32.mrb[3].mxu0  ;;  %v886_v43 = vld [vmem:[%s2017_s4 + $0x28] sm:$0xff] (!%p1364_p4)  ;;  %924 = vperm.xlu1 (!%p1364_p4), %1551, %v907_v41   ;;  %v906_v48 = vsel (!%p1364_p4), %vm894_vm5, 1, %v1602_v39  ;;  %vm897_vm7 = vcmp.gt.f32.partialorder (!%p1364_p4), %v885_v45, 0.0 }
  0xf2   : > { %v1782_v51 = vadd.f32 %v815_v50, %v513_v46  ;;  %v908_v46 = vsel (!%p1364_p4), %vm896_vm4, 1, %v1602_v39  ;;  %vm898_vm6 = vcmp.gt.f32.partialorder (!%p1364_p4), %v886_v43, 0.0  ;;  %v888_v50 = vld [vmem:[%s2017_s4 + $0x38] sm:$0xff] (!%p1364_p4)  ;;  %v909_v54 = vsel (!%p1364_p4), %vm897_vm7, 1, %v1602_v39 }
  0xf3   : > { %v910_v53 = vsel (!%p1364_p4), %vm898_vm6, 1, %v1602_v39  ;;  %vm900_vm8 = vcmp.gt.f32.partialorder (!%p1364_p4), %v888_v50, 0.0 }
  0xf4   : > { %921 = vperm.xlu0 (!%p1364_p4), %1550, %v906_v48   ;;  %v912_v57 = vsel (!%p1364_p4), %vm900_vm8, 1, %v1602_v39 }
  0xf5   : > { %927 = vperm.xlu1 (!%p1364_p4), %1551, %v908_v46  }
  0xf6   : > { %v1450_v56 = vpop.f32.mrb[4].mxu0 }
  0xf7   : > { %v828_v59 = vpop.f32.mrb[5].mxu0 }
  0xf8   : > { %v1451_v61 = vpop.f32.mrb[6].mxu0  ;;  %930 = vperm.xlu0 (!%p1364_p4), %1550, %v909_v54  }
  0xf9   : > { %v831_v0 = vpop.f32.mrb[7].mxu0  ;;  %933 = vperm.xlu1 (!%p1364_p4), %1551, %v910_v53  }
  0xfa   : > { %v1434_v62 = vpop.f32.mrb[4].mxu1 }
  0xfb   : > { %v1468_v1 = vadd.f32 %v1434_v62, %v344_v55  ;;  %v654_v2 = vpop.f32.mrb[5].mxu1  ;;  %v890_v55 = vld [vmem:[%s2017_s4 + $0x48] sm:$0xff] (!%p1364_p4) }
  0xfc   : > { %v1470_v3 = vadd.f32 %v654_v2, %v342_v58  ;;  %v1435_v4 = vpop.f32.mrb[6].mxu1  ;;  %v911_v58 = vsel (!%p1364_p4), %vm899_vm9, 1, %v1602_v39  ;;  %vm902_vm10 = vcmp.gt.f32.partialorder (!%p1364_p4), %v890_v55, 0.0 }
  0xfd   : > { %v1799_v6 = vadd.f32 %v1468_v1, %v1450_v56  ;;  %v1472_v7 = vadd.f32 %v1435_v4, %v345_v60  ;;  %v657_v8 = vpop.f32.mrb[7].mxu1  ;;  %v889_v56 = vld [vmem:[%s2017_s4 + $0x40] sm:$0xff] (!%p1364_p4)  ;;  %v891_v60 = vld [vmem:[%s2017_s4 + $0x50] sm:$0xff] (!%p1364_p4)  ;;  %939 = vperm.xlu1 (!%p1364_p4), %1551, %v912_v57   ;;  %936 = vperm.xlu0 (!%p1364_p4), %1550, %v911_v58   ;;  %v1603_v1 = vmov (!%p1364_p4), 0.0  }
  0xfe   : > { %v1804_v10 = vadd.f32 %v1470_v3, %v828_v59  ;;  %v1474_v11 = vadd.f32 %v657_v8, %v343_v63  ;;  %v1454_v15 = vpop.f32.mrb[8].mxu0  ;;  %vm901_vm11 = vcmp.gt.f32.partialorder (!%p1364_p4), %v889_v56, 0.0  ;;  %v892_v59 = vld [vmem:[%s2017_s4 + $0x58] sm:$0xff] (!%p1364_p4)  ;;  %vm903_vm13 = vcmp.gt.f32.partialorder (!%p1364_p4), %v891_v60, 0.0  ;;  %879 = vst [vmem:[#allocation2] sm:$0x1] (!%p1364_p4), %v1603_v1 }
  0xff   : > { %v1809_v13 = vadd.f32 %v1472_v7, %v1451_v61  ;;  %v844_v19 = vpop.f32.mrb[9].mxu0  ;;  %v914_v61 = vsel (!%p1364_p4), %vm902_vm10, 1, %v1602_v39  ;;  %v913_v62 = vsel (!%p1364_p4), %vm901_vm11, 1, %v1602_v39  ;;  %vm904_vm12 = vcmp.gt.f32.partialorder (!%p1364_p4), %v892_v59, 0.0  ;;  %880 = vst [vmem:[#allocation3] sm:$0x1] (!%p1364_p4), %v1603_v1 }
 0x100   : > { %v1814_v17 = vadd.f32 %v1474_v11, %v831_v0  ;;  %v1455_v21 = vpop.f32.mrb[10].mxu0  ;;  %v916_v63 = vsel (!%p1364_p4), %vm904_vm12, 1, %v1602_v39  ;;  %v915_v0 = vsel (!%p1364_p4), %vm903_vm13, 1, %v1602_v39 }
 0x101   : > { %v847_v24 = vpop.f32.mrb[11].mxu0  ;;  %945 = vperm.xlu1 (!%p1364_p4), %1551, %v914_v61   ;;  %942 = vperm.xlu0 (!%p1364_p4), %1550, %v913_v62  }
 0x102   : > { %v1438_v22 = vpop.f32.mrb[8].mxu1  ;;  %874 = sbr.rel (%p1364_p4) target bundleno = 413 (0x19d), region = 52 }
 0x103   : > { %v1476_v25 = vadd.f32 %v1438_v22, %v348_v14  ;;  %v670_v26 = vpop.f32.mrb[9].mxu1 }
 0x104   : > { %v1478_v27 = vadd.f32 %v670_v26, %v346_v18  ;;  %v1439_v28 = vpop.f32.mrb[10].mxu1 }
 0x105   : > { %v1816_v29 = vadd.f32 %v1476_v25, %v1454_v15  ;;  %v1480_v30 = vadd.f32 %v1439_v28, %v349_v20  ;;  %v673_v31 = vpop.f32.mrb[11].mxu1  ;;  %951 = vperm.xlu1 (!%p1364_p4), %1551, %v916_v63   ;;  %948 = vperm.xlu0 (!%p1364_p4), %1550, %v915_v0  }
 0x106   : > { %v1818_v33 = vadd.f32 %v1478_v27, %v844_v19  ;;  %v1482_v34 = vadd.f32 %v673_v31, %v347_v23 }
 0x107   : > { %v1820_v35 = vadd.f32 %v1480_v30, %v1455_v21 }
 0x108   : > { %v1822_v36 = vadd.f32 %v1482_v34, %v847_v24 }
 0x16f   : > { %v919_v3 = vpop.permute.xlu0 %918 }
 0x170   : > { %v925_v2 = vpop.permute.xlu1 %924  ;;  %vm953_vm14 = vcmp.eq.s32.totalorder %v919_v3, 1 }
 0x171   : > { %vm955_vm15 = vcmp.eq.s32.totalorder %v925_v2, 1  ;;  %v965_v4 = vsel %vm953_vm14, %v1778_v47, 0.0 }
 0x172   : > { %v967_v8 = vsel %vm955_vm15, %v1776_v44, 0.0  ;;  %v998_v11 = vmul.f32 %v965_v4, %v965_v4 }
 0x173   : > { %v922_v7 = vpop.permute.xlu0 %921  ;;  %v1000_v15 = vmul.f32 %v967_v8, %v967_v8 }
 0x174   : > { %v928_v5 = vpop.permute.xlu1 %927  ;;  %vm954_vm1 = vcmp.eq.s32.totalorder %v922_v7, 1 }
 0x175   : > { %vm956_vm0 = vcmp.eq.s32.totalorder %v928_v5, 1  ;;  %v966_v9 = vsel %vm954_vm1, %v1782_v51, 0.0 }
 0x176   : > { %v978_v12 = vadd.f32 %v966_v9, %v965_v4  ;;  %v999_v14 = vmul.f32 %v966_v9, %v966_v9  ;;  %v968_v16 = vsel %vm956_vm0, %v1780_v49, 0.0 }
 0x177   : > { %v931_v19 = vpop.permute.xlu0 %930  ;;  %v1001_v23 = vmul.f32 %v968_v16, %v968_v16 }
 0x178   : > { %v934_v18 = vpop.permute.xlu1 %933  ;;  %v979_v20 = vadd.f32 %v978_v12, %v967_v8  ;;  %v1010_v21 = vadd.f32 %v999_v14, %v998_v11  ;;  %vm957_vm3 = vcmp.eq.s32.totalorder %v931_v19, 1 }
 0x179   : > { %vm958_vm2 = vcmp.eq.s32.totalorder %v934_v18, 1  ;;  %v969_v22 = vsel %vm957_vm3, %v1804_v10, 0.0 }
 0x17a   : > { %v1011_v24 = vadd.f32 %v1010_v21, %v1000_v15  ;;  %v980_v25 = vadd.f32 %v979_v20, %v968_v16  ;;  %v970_v26 = vsel %vm958_vm2, %v1814_v17, 0.0  ;;  %v1002_v27 = vmul.f32 %v969_v22, %v969_v22  ;;  %v977_v21 = vld [vmem:[#allocation2] sm:$0x1] }
 0x17b   : > { %v1003_v37 = vmul.f32 %v970_v26, %v970_v26 }
 0x17c   : > { %v940_v28 = vpop.permute.xlu1 %939  ;;  %v937_v30 = vpop.permute.xlu0 %936  ;;  %v1012_v31 = vadd.f32 %v1011_v24, %v1001_v23  ;;  %v981_v34 = vadd.f32 %v980_v25, %v969_v22  ;;  %v997_v24 = vld [vmem:[#allocation3] sm:$0x1] }
 0x17d   : > { %vm960_vm4 = vcmp.eq.s32.totalorder %v940_v28, 1  ;;  %vm959_vm5 = vcmp.eq.s32.totalorder %v937_v30, 1 }
 0x17e   : > { %v971_v32 = vsel %vm959_vm5, %v1799_v6, 0.0  ;;  %v1013_v38 = vadd.f32 %v1012_v31, %v1002_v27  ;;  %v982_v39 = vadd.f32 %v981_v34, %v970_v26  ;;  %v972_v40 = vsel %vm960_vm4, %v1809_v13, 0.0 }
 0x17f   : > { %v1004_v41 = vmul.f32 %v971_v32, %v971_v32  ;;  %v1005_v50 = vmul.f32 %v972_v40, %v972_v40 }
 0x180   : > { %v946_v42 = vpop.permute.xlu1 %945  ;;  %v943_v43 = vpop.permute.xlu0 %942  ;;  %v1014_v45 = vadd.f32 %v1013_v38, %v1003_v37  ;;  %v983_v46 = vadd.f32 %v982_v39, %v971_v32 }
 0x181   : > { %vm962_vm6 = vcmp.eq.s32.totalorder %v946_v42, 1  ;;  %vm961_vm7 = vcmp.eq.s32.totalorder %v943_v43, 1 }
 0x182   : > { %v973_v48 = vsel %vm961_vm7, %v1818_v33, 0.0  ;;  %v1015_v52 = vadd.f32 %v1014_v45, %v1004_v41  ;;  %v984_v53 = vadd.f32 %v983_v46, %v972_v40  ;;  %v974_v54 = vsel %vm962_vm6, %v1822_v36, 0.0 }
 0x183   : > { %v1006_v55 = vmul.f32 %v973_v48, %v973_v48  ;;  %v1007_v61 = vmul.f32 %v974_v54, %v974_v54 }
 0x184   : > { %v952_v56 = vpop.permute.xlu1 %951  ;;  %v949_v57 = vpop.permute.xlu0 %948  ;;  %v1016_v58 = vadd.f32 %v1015_v52, %v1005_v50  ;;  %v985_v59 = vadd.f32 %v984_v53, %v973_v48 }
 0x185   : > { %vm964_vm8 = vcmp.eq.s32.totalorder %v952_v56, 1  ;;  %vm963_vm9 = vcmp.eq.s32.totalorder %v949_v57, 1 }
 0x186   : > { %v975_v60 = vsel %vm963_vm9, %v1816_v29, 0.0  ;;  %v1017_v62 = vadd.f32 %v1016_v58, %v1006_v55  ;;  %v986_v63 = vadd.f32 %v985_v59, %v974_v54  ;;  %v976_v0 = vsel %vm964_vm8, %v1820_v35, 0.0 }
 0x187   : > { %v1008_v3 = vmul.f32 %v975_v60, %v975_v60  ;;  %v1009_v4 = vmul.f32 %v976_v0, %v976_v0 }
 0x188   : > { %v1018_v1 = vadd.f32 %v1017_v62, %v1007_v61  ;;  %v987_v2 = vadd.f32 %v986_v63, %v975_v60 }
 0x18a   : > { %v988_v5 = vadd.f32 %v987_v2, %v976_v0  ;;  %v1019_v7 = vadd.f32 %v1018_v1, %v1008_v3 }
 0x18c   : > { %v989_v8 = vrot.slane %v988_v5, 4  ;;  %v1020_v9 = vadd.f32 %v1019_v7, %v1009_v4 }
 0x18e   : > { %v990_v11 = vadd.f32 %v989_v8, %v988_v5  ;;  %v1021_v12 = vrot.slane %v1020_v9, 4 }
 0x190   : > { %v991_v14 = vrot.slane %v990_v11, 2  ;;  %v1022_v15 = vadd.f32 %v1021_v12, %v1020_v9 }
 0x192   : > { %v992_v16 = vadd.f32 %v991_v14, %v990_v11  ;;  %v1023_v18 = vrot.slane %v1022_v15, 2 }
 0x194   : > { %v993_v19 = vrot.slane %v992_v16, 1  ;;  %v1024_v20 = vadd.f32 %v1023_v18, %v1022_v15 }
 0x196   : > { %v994_v22 = vadd.f32 %v993_v19, %v992_v16  ;;  %v1025_v23 = vrot.slane %v1024_v20, 1 }
 0x198   : > { %v995_v25 = vadd.f32 %v994_v22, %v977_v21  ;;  %v1026_v26 = vadd.f32 %v1025_v23, %v1024_v20 }
 0x19a   : > { %996 = vst [vmem:[#allocation2] sm:$0x1] %v995_v25  ;;  %v1027_v27 = vadd.f32 %v1026_v26, %v997_v24 }
 0x19c   : > { %1028 = vst [vmem:[#allocation3] sm:$0x1] %v1027_v27 }
 0x19d PF: > { %p1365_p5 = scmp.ne.s32.totalorder %s1592_s24, 1 }
 0x19e   : > { %v1041_v37 = vlaneseq (!%p1365_p5) }
 0x19f   : > { %1032 = sbr.rel (%p1365_p5) target bundleno = 478 (0x1de), region = 60 }
 0x1a0   : > { %v1042_v40 = vshrl.u32 (!%p1365_p5), %v1041_v37, 7 }
 0x1a1   : > { %v1033_v28 = vld [vmem:[#allocation2] sm:$0x1] (!%p1365_p5) }
 0x1a2   : > { %v1034_v31 = vmul.f32 (!%p1365_p5), 0.03125, %v1033_v28  ;;  %v1043_v42 = vsub.s32 (!%p1365_p5), 0, %v1042_v40 }
 0x1a3   : > { %v1035_v30 = vld [vmem:[#allocation3] sm:$0x1] (!%p1365_p5) }
 0x1a4   : > { %v1036_v34 = vmul.f32 (!%p1365_p5), 0.03125, %v1035_v30  ;;  %v1037_v32 = vmul.f32 (!%p1365_p5), %v1034_v31, %v1034_v31  ;;  %v1874_v43 = vrot.slane (!%p1365_p5), %v1034_v31, %v1043_v42 }
 0x1a6   : > { %v1038_v38 = vsub.f32 %v1036_v34, %v1037_v32  ;;  %v1046_v45 = vsub.f32 %v1778_v47, %v1874_v43  ;;  %v1047_v46 = vsub.f32 %v1782_v51, %v1874_v43  ;;  %v1048_v48 = vsub.f32 %v1776_v44, %v1874_v43  ;;  %v1366_v44 = vld [vmem:[%s2018_s5] ss:$0 sm:$0xff] }
 0x1a7   : > { %v1049_v50 = vsub.f32 %v1780_v49, %v1874_v43  ;;  %v1050_v53 = vsub.f32 %v1804_v10, %v1874_v43  ;;  %v1051_v54 = vsub.f32 %v1814_v17, %v1874_v43  ;;  %v1052_v55 = vsub.f32 %v1799_v6, %v1874_v43  ;;  %v1367_v10 = vld [vmem:[%s2019_s6] ss:$0 sm:$0xff] }
 0x1a8   : > { %v1039_v39 = vmax.f32 %v1038_v38, 0.0  ;;  %v1053_v47 = vsub.f32 %v1809_v13, %v1874_v43  ;;  %v1054_v16 = vsub.f32 %v1818_v33, %v1874_v43  ;;  %v1055_v21 = vsub.f32 %v1822_v36, %v1874_v43 }
 0x1a9   : > { %v1056_v25 = vsub.f32 %v1816_v29, %v1874_v43  ;;  %v1057_v28 = vsub.f32 %v1820_v35, %v1874_v43 }
 0x1aa   : > { %v1058_v41 = vadd.f32 1e-05, %v1039_v39 }
 0x1ac   : > { %1552 = vrsqrt.f32 %v1058_v41 }
 0x1b6   : > { %v1553_v52 = vpop.eup %1552 }
 0x1b7   : > { %v1064_v51 = vrot.slane %v1553_v52, %v1043_v42 }
 0x1b9   : > { %v1066_v56 = vmul.f32 %v1064_v51, %v1046_v45  ;;  %v1067_v49 = vmul.f32 %v1064_v51, %v1047_v46  ;;  %v1068_v57 = vmul.f32 %v1064_v51, %v1048_v48  ;;  %v1069_v58 = vmul.f32 %v1064_v51, %v1049_v50 }
 0x1ba   : > { %v1070_v17 = vmul.f32 %v1064_v51, %v1050_v53  ;;  %v1071_v59 = vmul.f32 %v1064_v51, %v1051_v54  ;;  %v1072_v60 = vmul.f32 %v1064_v51, %v1052_v55  ;;  %v1073_v6 = vmul.f32 %v1064_v51, %v1053_v47 }
 0x1bb   : > { %v1085_v61 = vmul.f32 %v1366_v44, %v1066_v56  ;;  %v1086_v62 = vmul.f32 %v1366_v44, %v1067_v49  ;;  %v1087_v13 = vmul.f32 %v1366_v44, %v1068_v57  ;;  %v1088_v63 = vmul.f32 %v1366_v44, %v1069_v58 }
 0x1bc   : > { %v1089_v0 = vmul.f32 %v1366_v44, %v1070_v17  ;;  %v1090_v1 = vmul.f32 %v1366_v44, %v1071_v59  ;;  %v1091_v2 = vmul.f32 %v1366_v44, %v1072_v60  ;;  %v1092_v3 = vmul.f32 %v1366_v44, %v1073_v6 }
 0x1bd   : > { %v1898_v4 = vadd.f32 %v1367_v10, %v1085_v61  ;;  %v1900_v5 = vadd.f32 %v1367_v10, %v1086_v62  ;;  %v1902_v7 = vadd.f32 %v1367_v10, %v1087_v13  ;;  %v1904_v8 = vadd.f32 %v1367_v10, %v1088_v63 }
 0x1be   : > { %v1906_v9 = vadd.f32 %v1367_v10, %v1089_v0  ;;  %v1908_v11 = vadd.f32 %v1367_v10, %v1090_v1  ;;  %v1912_v15 = vadd.f32 %v1367_v10, %v1091_v2  ;;  %v1918_v20 = vadd.f32 %v1367_v10, %v1092_v3 }
 0x1bf   : > { %v1128_v12 = vmin.f32 %v1898_v4, 0.0  ;;  %v1129_v14 = vmin.f32 %v1900_v5, 0.0  ;;  %v1130_v18 = vmin.f32 %v1902_v7, 0.0  ;;  %v1131_v19 = vmin.f32 %v1904_v8, 0.0 }
 0x1c0   : > { %v1132_v24 = vmin.f32 %v1906_v9, 0.0  ;;  %v1133_v33 = vmin.f32 %v1908_v11, 0.0  ;;  %v1134_v31 = vmin.f32 %v1912_v15, 0.0  ;;  %v1135_v34 = vmin.f32 %v1918_v20, 0.0 }
 0x1c1   : > { %v1140_v22 = vmul.f32 1.442695, %v1128_v12  ;;  %v1142_v23 = vmul.f32 1.442695, %v1129_v14  ;;  %v1144_v26 = vmul.f32 1.442695, %v1130_v18  ;;  %v1074_v37 = vmul.f32 %v1064_v51, %v1054_v16 }
 0x1c2   : > { %v1146_v27 = vmul.f32 1.442695, %v1131_v19  ;;  %v1148_v30 = vmul.f32 1.442695, %v1132_v24  ;;  %v1150_v36 = vmul.f32 1.442695, %v1133_v33  ;;  %v1075_v38 = vmul.f32 %v1064_v51, %v1055_v21 }
 0x1c3   : > { %1554 = vpow2.f32 %v1140_v22  ;;  %v1152_v32 = vmul.f32 1.442695, %v1134_v31  ;;  %v1154_v29 = vmul.f32 1.442695, %v1135_v34  ;;  %v1076_v39 = vmul.f32 %v1064_v51, %v1056_v25 }
 0x1c4   : > { %1556 = vpow2.f32 %v1142_v23  ;;  %v1077_v40 = vmul.f32 %v1064_v51, %v1057_v28  ;;  %v1093_v41 = vmul.f32 %v1366_v44, %v1074_v37  ;;  %v1094_v42 = vmul.f32 %v1366_v44, %v1075_v38 }
 0x1c5   : > { %1558 = vpow2.f32 %v1144_v26  ;;  %v1095_v35 = vmul.f32 %v1366_v44, %v1076_v39  ;;  %vm1116_vm10 = vcmp.gt.f32.partialorder %v1898_v4, 0.0  ;;  %vm1117_vm11 = vcmp.gt.f32.partialorder %v1900_v5, 0.0 }
 0x1c6   : > { %1560 = vpow2.f32 %v1146_v27  ;;  %v1096_v43 = vmul.f32 %v1366_v44, %v1077_v40  ;;  %v1930_v45 = vadd.f32 %v1367_v10, %v1093_v41  ;;  %v1932_v46 = vadd.f32 %v1367_v10, %v1094_v42 }
 0x1c7   : > { %1562 = vpow2.f32 %v1148_v30  ;;  %v1934_v48 = vadd.f32 %v1367_v10, %v1095_v35  ;;  %vm1118_vm12 = vcmp.gt.f32.partialorder %v1902_v7, 0.0  ;;  %vm1119_vm13 = vcmp.gt.f32.partialorder %v1904_v8, 0.0 }
 0x1c8   : > { %1564 = vpow2.f32 %v1150_v36  ;;  %v1936_v50 = vadd.f32 %v1367_v10, %v1096_v43  ;;  %v1136_v52 = vmin.f32 %v1930_v45, 0.0  ;;  %v1137_v53 = vmin.f32 %v1932_v46, 0.0 }
 0x1c9   : > { %1566 = vpow2.f32 %v1152_v32  ;;  %v1138_v54 = vmin.f32 %v1934_v48, 0.0  ;;  %vm1120_vm14 = vcmp.gt.f32.partialorder %v1906_v9, 0.0  ;;  %vm1121_vm15 = vcmp.gt.f32.partialorder %v1908_v11, 0.0 }
 0x1ca   : > { %1568 = vpow2.f32 %v1154_v29  ;;  %v1139_v55 = vmin.f32 %v1936_v50, 0.0  ;;  %v1156_v51 = vmul.f32 1.442695, %v1136_v52  ;;  %v1158_v44 = vmul.f32 1.442695, %v1137_v53 }
 0x1cb   : > { %v1160_v57 = vmul.f32 1.442695, %v1138_v54  ;;  %vm1122_vm0 = vcmp.gt.f32.partialorder %v1912_v15, 0.0  ;;  %vm1123_vm1 = vcmp.gt.f32.partialorder %v1918_v20, 0.0  ;;  %vm1124_vm2 = vcmp.gt.f32.partialorder %v1930_v45, 0.0 }
 0x1cc   : > { %v1162_v58 = vmul.f32 1.442695, %v1139_v55  ;;  %1570 = vpow2.f32 %v1156_v51  ;;  %vm1125_vm3 = vcmp.gt.f32.partialorder %v1932_v46, 0.0  ;;  %vm1126_vm4 = vcmp.gt.f32.partialorder %v1934_v48, 0.0 }
 0x1cd   : > { %v1555_v47 = vpop.eup %1554  ;;  %1572 = vpow2.f32 %v1158_v44  ;;  %vm1127_vm5 = vcmp.gt.f32.partialorder %v1936_v50, 0.0 }
 0x1ce   : > { %v1557_v56 = vpop.eup %1556  ;;  %v1368_v49 = vadd.f32 -1.0, %v1555_v47  ;;  %1574 = vpow2.f32 %v1160_v57 }
 0x1cf   : > { %v1559_v10 = vpop.eup %1558  ;;  %v1369_v17 = vadd.f32 -1.0, %v1557_v56  ;;  %1576 = vpow2.f32 %v1162_v58 }
 0x1d0   : > { %v1561_v59 = vpop.eup %1560  ;;  %v1176_v60 = vsel %vm1116_vm10, %v1898_v4, %v1368_v49  ;;  %v1370_v6 = vadd.f32 -1.0, %v1559_v10 }
 0x1d1   : > { %v1563_v61 = vpop.eup %1562  ;;  %1188 = vst [vmem:[%s2020_s7] sm:$0xff] %v1176_v60  ;;  %v1177_v62 = vsel %vm1117_vm11, %v1900_v5, %v1369_v17  ;;  %v1371_v13 = vadd.f32 -1.0, %v1561_v59 }
 0x1d2   : > { %v1565_v63 = vpop.eup %1564  ;;  %1189 = vst [vmem:[%s2020_s7 + $0x8] sm:$0xff] %v1177_v62  ;;  %v1178_v0 = vsel %vm1118_vm12, %v1902_v7, %v1370_v6  ;;  %v1372_v1 = vadd.f32 -1.0, %v1563_v61 }
 0x1d3   : > { %v1567_v2 = vpop.eup %1566  ;;  %1190 = vst [vmem:[%s2020_s7 + $0x10] sm:$0xff] %v1178_v0  ;;  %v1179_v3 = vsel %vm1119_vm13, %v1904_v8, %v1371_v13  ;;  %v1373_v4 = vadd.f32 -1.0, %v1565_v63 }
 0x1d4   : > { %v1569_v5 = vpop.eup %1568  ;;  %1191 = vst [vmem:[%s2020_s7 + $0x18] sm:$0xff] %v1179_v3  ;;  %v1180_v7 = vsel %vm1120_vm14, %v1906_v9, %v1372_v1  ;;  %v1374_v12 = vadd.f32 -1.0, %v1567_v2 }
 0x1d5   : > { %1192 = vst [vmem:[%s2020_s7 + $0x20] sm:$0xff] %v1180_v7  ;;  %v1181_v14 = vsel %vm1121_vm15, %v1908_v11, %v1373_v4  ;;  %v1375_v8 = vadd.f32 -1.0, %v1569_v5 }
 0x1d6   : > { %1193 = vst [vmem:[%s2020_s7 + $0x28] sm:$0xff] %v1181_v14  ;;  %v1182_v16 = vsel %vm1122_vm0, %v1912_v15, %v1374_v12  ;;  %v1571_v18 = vpop.eup %1570 }
 0x1d7   : > { %1194 = vst [vmem:[%s2020_s7 + $0x30] sm:$0xff] %v1182_v16  ;;  %v1183_v9 = vsel %vm1123_vm1, %v1918_v20, %v1375_v8  ;;  %v1573_v11 = vpop.eup %1572  ;;  %v1376_v19 = vadd.f32 -1.0, %v1571_v18 }
 0x1d8   : > { %1195 = vst [vmem:[%s2020_s7 + $0x38] sm:$0xff] %v1183_v9  ;;  %v1575_v21 = vpop.eup %1574  ;;  %v1377_v22 = vadd.f32 -1.0, %v1573_v11 }
 0x1d9   : > { %v1577_v15 = vpop.eup %1576  ;;  %v1184_v23 = vsel %vm1124_vm2, %v1930_v45, %v1376_v19  ;;  %v1378_v24 = vadd.f32 -1.0, %v1575_v21 }
 0x1da   : > { %1196 = vst [vmem:[%s2020_s7 + $0x40] sm:$0xff] %v1184_v23  ;;  %v1185_v20 = vsel %vm1125_vm3, %v1932_v46, %v1377_v22  ;;  %v1379_v25 = vadd.f32 -1.0, %v1577_v15 }
 0x1db   : > { %1197 = vst [vmem:[%s2020_s7 + $0x48] sm:$0xff] %v1185_v20  ;;  %v1186_v26 = vsel %vm1126_vm4, %v1934_v48, %v1378_v24 }
 0x1dc   : > { %1198 = vst [vmem:[%s2020_s7 + $0x50] sm:$0xff] %v1186_v26  ;;  %v1187_v27 = vsel %vm1127_vm5, %v1936_v50, %v1379_v25 }
 0x1dd   : > { %1199 = vst [vmem:[%s2020_s7 + $0x58] sm:$0xff] %v1187_v27 }
 0x1de PF: > { %s17_s26 = sadd.s32 1, %s1600_s26   ;;  %s2021_s24 = smov %s1596_s25 }
 0x1df   : > { %p14_p6 = scmp.ge.s32.totalorder %s17_s26, 4   ;;  %s2022_s25 = smov %s2024_s27 }
 0x1e1   :  { %16 = sbr.rel (!%p14_p6) target bundleno = 2 (0x2), region = 98 }

</bundles_post_ra>
